<compile_context>
chip_gen: v6e
topology: v6e:2x2x1
jax: 0.10.0
libtpu: 0.0.40
codegen_flags: <defaults>
</compile_context>

<pallas_src>
import functools
import math

import numpy as np
import jax
import jax.numpy as jnp
from jax import lax
from jax.experimental import pallas as pl
from jax.experimental.pallas import tpu as pltpu

DT = 0.05                        # delta_t of the Euler flow
N_STEPS = int(round(1.0 / DT))   # T=1 -> 20 explicit Euler steps
DIM = 2                          # controller's 2x2 solve is hard-wired to dim == 2

_TWO_PI = 2.0 * math.pi
_INV_TWO_PI = 1.0 / _TWO_PI


# ----------------------------------------------------------------------------------------
# Device-derived defaults (bf16 EUP availability, TensorCore count -> tiling policy)
# ----------------------------------------------------------------------------------------
def _device_kind() -> str:
    try:
        return jax.devices()[0].device_kind.lower()
    except Exception:  # pragma: no cover - defensive; fall back to conservative defaults
        return ""


def _default_bf16_trig() -> bool:
    # bf16 EUP exists on v6e / v7x; v5e (and older) stay on the f32 path.
    k = _device_kind()
    return ("v6" in k) or ("v7" in k) or ("7x" in k)


def _num_core_splits() -> int:
    # v7x has 2 TensorCores per chip -> keep the grid a multiple of 2 for core balance.
    k = _device_kind()
    return 2 if (("v7" in k) or ("7x" in k)) else 1


def _auto_block_n(n: int, cap: int) -> int:
    lanes = pl.cdiv(n, 128)
    per = pl.cdiv(lanes, _num_core_splits())
    return int(min(cap, per * 128))


def _cos_rr(u, use_bf16_trig: bool):
    """cos(u). bf16 EUP path with f32 (VPU) mod-2pi range reduction when enabled."""
    if not use_bf16_trig:
        return jnp.cos(u)
    # Range-reduce in f32 to [-pi, pi) so bf16 phase quantization stays ~pi*2^-9 rad.
    k = jnp.floor(u * _INV_TWO_PI + 0.5)
    u_r = u - k * _TWO_PI
    return jnp.cos(u_r.astype(jnp.bfloat16)).astype(jnp.float32)


# ----------------------------------------------------------------------------------------
# Kernel 1: literal VelocityField.forward  (V(s) = W^T sqrt(2/m) cos(alpha s + beta))
# ----------------------------------------------------------------------------------------
def _velocity_field_kernel(alpha_b_ref, wT_ref, s_ref, v_ref, *, use_bf16_trig):
    # u = [alpha | beta] @ [s ; 1]  -> bias folded into the MXU matmul.
    u = jnp.dot(alpha_b_ref[...], s_ref[...],
                preferred_element_type=jnp.float32)                       # (m, NT)
    t = _cos_rr(u, use_bf16_trig)                                          # (m, NT)
    # sqrt(2/m) is pre-folded into W^T on the host.
    v_ref[...] = jnp.dot(wT_ref[...], t, preferred_element_type=jnp.float32)


@functools.partial(jax.jit, static_argnames=("block_n", "use_bf16_trig"))
def _velocity_field_forward_jit(s, alpha, beta, W, *, block_n, use_bf16_trig):
    d, n = s.shape
    m = alpha.shape[0]
    f32 = jnp.float32
    s = s.astype(f32)
    alpha = alpha.astype(f32)
    beta = beta.astype(f32)
    W = W.astype(f32)
    scale = math.sqrt(2.0 / m)

    # ---- host-side packing (inside the jit -> fused, no per-call dispatch overhead) -----
    alpha_b = jnp.concatenate([alpha, beta], axis=1)          # (m, d+1)   [alpha | beta]
    wT = scale * W.T                                          # (d, m)     sqrt(2/m)*W^T

    n_pad = pl.cdiv(n, block_n) * block_n
    if n_pad != n:
        s = jnp.pad(s, ((0, 0), (0, n_pad - n)))
    s_aug = jnp.concatenate([s, jnp.ones((1, n_pad), f32)], axis=0)   # (d+1, n_pad)
    grid = (n_pad // block_n,)

    cost = pl.CostEstimate(
        flops=int(n_pad * (2 * m * (d + 1) + 2 * d * m)),
        transcendentals=int(n_pad * m),
        bytes_accessed=int(4 * ((2 * d + 1) * n_pad + grid[0] * (m * (d + 1) + d * m))),
    )

    out = pl.pallas_call(
        functools.partial(_velocity_field_kernel, use_bf16_trig=use_bf16_trig),
        out_shape=jax.ShapeDtypeStruct((d, n_pad), f32),
        grid_spec=pltpu.PrefetchScalarGridSpec(
            num_scalar_prefetch=0,
            grid=grid,
            in_specs=[
                pl.BlockSpec((m, d + 1), lambda i: (0, 0)),        # [alpha|beta]  (resident)
                pl.BlockSpec((d, m), lambda i: (0, 0)),            # sqrt(2/m)*W^T (resident)
                pl.BlockSpec((d + 1, block_n), lambda i: (0, i)),  # s tile (+ ones row)
            ],
            out_specs=pl.BlockSpec((d, block_n), lambda i: (0, i)),
        ),
        compiler_params=pltpu.CompilerParams(dimension_semantics=("parallel",)),
        cost_estimate=cost,
    )(alpha_b, wT, s_aug)
    return out[:, :n]


def velocity_field_forward(s, alpha, beta, W, *, block_n=None, use_bf16_trig=None):
    """VelocityField.forward (rff=True) for a batch of points s: (d, N) -> V: (d, N)."""
    if use_bf16_trig is None:
        use_bf16_trig = _default_bf16_trig()
    if block_n is None:
        block_n = _auto_block_n(s.shape[1], cap=2048)
    return _velocity_field_forward_jit(
        s, alpha, beta, W, block_n=int(block_n), use_bf16_trig=bool(use_bf16_trig))


# ----------------------------------------------------------------------------------------
# Kernel 2: Euler-flow controller x_dot = -J^{-1}(psi(x) - psi(0)) built on VelocityField
# ----------------------------------------------------------------------------------------
def _flow_control_kernel(alpha_aug_ref, L_ref, psi_goal_ref, x_ref, out_ref, *,
                         use_bf16_trig, unroll):
    alpha_aug = alpha_aug_ref[...]   # (2m, 3)  [alpha|alpha ; beta|beta+pi/2] columns
    L = L_ref[...]                   # (24, 2m) fused DT*[V-rows ; dV/dx diag ; dV/dx off-diag]
    x0 = x_ref[...]                  # (3, NT)  rows [x_0, x_1, 1]  (ones-row = bias lane)
    nt = x0.shape[1]

    # Jacobian carried packed on full sublanes: rows [J00,J01,J10,J11, J10,J11,J00,J01].
    rid = lax.broadcasted_iota(jnp.int32, (8, nt), 0)
    j0 = jnp.where((rid == 0) | (rid == 3) | (rid == 5) | (rid == 6),
                   1.0, 0.0).astype(jnp.float32)                 # J = I (duplicated order)

    def step(_, carry):
        x, J = carry
        # u = [alpha@x + beta ; alpha@x + beta + pi/2]  (bias folded into the MXU matmul)
        u = jnp.dot(alpha_aug, x, preferred_element_type=jnp.float32)     # (2m, NT)
        # one EUP call gives both cos(u) (rows 0:m) and -sin(u) (rows m:2m)
        t = _cos_rr(u, use_bf16_trig)
        # single fused output matmul: rows 0..2 = DT*V (row 2 = 0 keeps the ones-row fixed),
        # rows 8..15 = DT*dV/dx diag block, rows 16..23 = DT*dV/dx off-diag block.
        Z = jnp.dot(L, t, preferred_element_type=jnp.float32)             # (24, NT)
        x_new = x + Z[0:3, :]
        # J_{k+1} = (I + DT*A) J_k, computed sublane-parallel on the packed (8, NT) carry.
        J_swap = pltpu.roll(J, 4, axis=0)    # rows [J10,J11,J00,J01, J00,J01,J10,J11]
        J_new = J + Z[8:16, :] * J + Z[16:24, :] * J_swap
        return x_new, J_new

    x, J = lax.fori_loop(0, N_STEPS, step, (x0, j0), unroll=unroll)

    # x_dot = -J^{-1} (psi - psi_goal)   (per-point 2x2 solve, epilogue only)
    pg = psi_goal_ref[...]                                   # (2, 1)
    pe0 = x[0:1, :] - pg[0:1, :]
    pe1 = x[1:2, :] - pg[1:2, :]
    J00, J01, J10, J11 = J[0:1, :], J[1:2, :], J[2:3, :], J[3:4, :]
    inv_det = 1.0 / (J00 * J11 - J01 * J10)
    out_ref[0:1, :] = -(J11 * pe0 - J01 * pe1) * inv_det
    out_ref[1:2, :] = (J10 * pe0 - J00 * pe1) * inv_det


@functools.partial(jax.jit, static_argnames=("block_n", "use_bf16_trig", "unroll"))
def _velocity_flow_control_jit(x, alpha, beta, W, *, block_n, use_bf16_trig, unroll):
    d, n = x.shape
    f32 = jnp.float32
    alpha = alpha.astype(f32)
    beta = beta.astype(f32)
    W = W.astype(f32)
    x = x.astype(f32)
    m = alpha.shape[0]
    two_m = 2 * m
    scale = math.sqrt(2.0 / m)

    # ---- host-side parameter packing (inside the jit; DT and sqrt(2/m) folded in) -------
    # cos(u + pi/2) == -sin(u): duplicate the projection so a single cos yields both.
    alpha_aug = jnp.concatenate(
        [jnp.concatenate([alpha, alpha], axis=0),                                   # (2m, 2)
         jnp.concatenate([beta, beta + jnp.float32(math.pi / 2.0)], axis=0)],       # (2m, 1)
        axis=1)                                                                     # (2m, 3)

    c = DT * scale
    w0, w1 = c * W[:, 0], c * W[:, 1]
    c00, c01 = w0 * alpha[:, 0], w0 * alpha[:, 1]
    c10, c11 = w1 * alpha[:, 0], w1 * alpha[:, 1]
    zm = jnp.zeros((m,), f32)
    z8m = jnp.zeros((8, m), f32)
    top = jnp.stack([w0, w1, zm, zm, zm, zm, zm, zm], axis=0)            # DT*V rows (acts on cos)
    dblk = jnp.stack([c00, c00, c11, c11, c11, c11, c00, c00], axis=0)   # DT*A diag (acts on -sin)
    eblk = jnp.stack([c01, c01, c10, c10, c10, c10, c01, c01], axis=0)   # DT*A off-diag
    L = jnp.concatenate([jnp.concatenate([top, z8m], axis=1),
                         jnp.concatenate([z8m, dblk], axis=1),
                         jnp.concatenate([z8m, eblk], axis=1)], axis=0)  # (24, 2m)

    # psi_goal = Euler flow of the origin: parameter-only (2,1) constant (fused in the jit).
    g = jnp.zeros((DIM, 1), f32)
    for _ in range(N_STEPS):
        g = g + DT * (W.T @ (scale * jnp.cos(alpha @ g + beta)))
    psi_goal = g

    # ---- tile the points; append the constant ones-row (bias lane) ----------------------
    n_pad = pl.cdiv(n, block_n) * block_n
    if n_pad != n:
        x = jnp.pad(x, ((0, 0), (0, n_pad - n)))   # padded lanes flow from the origin; harmless
    x_aug = jnp.concatenate([x, jnp.ones((1, n_pad), f32)], axis=0)      # (3, n_pad)
    grid = (n_pad // block_n,)

    cost = pl.CostEstimate(
        flops=int(N_STEPS * n_pad * (2 * two_m * 3 + 2 * 24 * two_m + 8 * 8)),
        transcendentals=int(N_STEPS * n_pad * two_m),
        bytes_accessed=int(4 * (5 * n_pad + grid[0] * (3 * two_m + 24 * two_m + 2))),
    )

    out = pl.pallas_call(
        functools.partial(_flow_control_kernel,
                          use_bf16_trig=use_bf16_trig, unroll=unroll),
        out_shape=jax.ShapeDtypeStruct((DIM, n_pad), f32),
        grid_spec=pltpu.PrefetchScalarGridSpec(
            num_scalar_prefetch=0,
            grid=grid,
            in_specs=[
                pl.BlockSpec((two_m, 3), lambda i: (0, 0)),      # alpha_aug (resident)
                pl.BlockSpec((24, two_m), lambda i: (0, 0)),     # L         (resident)
                pl.BlockSpec((DIM, 1), lambda i: (0, 0)),        # psi_goal
                pl.BlockSpec((3, block_n), lambda i: (0, i)),    # x tile (+ ones row)
            ],
            out_specs=pl.BlockSpec((DIM, block_n), lambda i: (0, i)),
        ),
        compiler_params=pltpu.CompilerParams(dimension_semantics=("parallel",)),
        cost_estimate=cost,
    )(alpha_aug, L, psi_goal, x_aug)
    return out[:, :n]


def velocity_flow_control(x, alpha, beta, W, *, block_n=None, use_bf16_trig=None):
    """x: (2, N) points.  alpha: (m, 2), beta: (m, 1), W: (m, 2).  Returns x_dot: (2, N).

    use_bf16_trig defaults to True on v6e/v7x (bf16 EUP cos with f32 range reduction),
    False on v5e.  block_n defaults to a per-device policy: grid multiple of 2 on v7x
    (2 TensorCores), one big capped tile otherwise (grid-overhead amortization).
    """
    assert x.shape[0] == DIM
    if use_bf16_trig is None:
        use_bf16_trig = _default_bf16_trig()
    if block_n is None:
        block_n = _auto_block_n(x.shape[1], cap=1024)
    block_n = int(block_n)
    # Full unroll for scheduler visibility at moderate tiles; partial unroll at wide tiles
    # so the 20-step carry doesn't push live ranges into vld/vst spills.
    unroll = True if block_n <= 512 else 4
    return _velocity_flow_control_jit(
        x, alpha, beta, W, block_n=block_n,
        use_bf16_trig=bool(use_bf16_trig), unroll=unroll)


if __name__ == "__main__":
    key = jax.random.PRNGKey(0)
    k1, k2, k3, k4 = jax.random.split(key, 4)

    num_features = 8
    m = num_features ** 2            # VelocityField: self.m = num_features ** 2
    l = 30.0
    n_points = 512

    # Deterministic parameter init matching the module's distributions.
    alpha = (math.sqrt(l) * jax.random.normal(k1, (m, DIM))).astype(jnp.float32)
    beta = jax.random.uniform(k2, (m, 1), minval=0.0,
                              maxval=2.0 * math.pi).astype(jnp.float32)
    W = jax.random.uniform(k3, (m, DIM), minval=-1.0 / math.sqrt(m),
                           maxval=1.0 / math.sqrt(m)).astype(jnp.float32)
    x = jax.random.uniform(k4, (DIM, n_points), minval=-0.5,
                           maxval=0.5).astype(jnp.float32)

    scale = math.sqrt(2.0 / m)
    auto_bf16 = _default_bf16_trig()

    # --- 1) literal VelocityField.forward -------------------------------------------------
    v_ref = W.T @ (scale * jnp.cos(alpha @ x + beta))

    # baseline f32 trig path: tight tolerance
    v_f32 = jax.block_until_ready(
        velocity_field_forward(x, alpha, beta, W, use_bf16_trig=False))
    assert np.allclose(np.asarray(v_f32), np.asarray(v_ref), rtol=1e-3, atol=1e-4), (
        "V (f32) max abs err = "
        f"{float(np.max(np.abs(np.asarray(v_f32) - np.asarray(v_ref))))}")

    # device-default path (bf16 EUP cos on v6e/v7x): relaxed tolerance when bf16 is active
    v_auto = jax.block_until_ready(velocity_field_forward(x, alpha, beta, W))
    tol1 = dict(rtol=2e-2, atol=5e-3) if auto_bf16 else dict(rtol=1e-3, atol=1e-4)
    assert np.allclose(np.asarray(v_auto), np.asarray(v_ref), **tol1), (
        "V (auto) max abs err = "
        f"{float(np.max(np.abs(np.asarray(v_auto) - np.asarray(v_ref))))}")

    # --- 2) flow controller built on the velocity field -----------------------------------
    # Pure-JAX reference: same discrete Euler flow; Jacobian via forward-mode autodiff.
    def flow_single(x0):             # x0: (2,)
        for _ in range(N_STEPS):
            x0 = x0 + DT * (W.T @ (scale * jnp.cos(alpha @ x0 + beta[:, 0])))
        return x0

    psi_ref = jax.vmap(flow_single, in_axes=1, out_axes=1)(x)              # (2, N)
    J_ref = jax.vmap(jax.jacfwd(flow_single), in_axes=1, out_axes=0)(x)    # (N, 2, 2)
    psi_goal_ref = flow_single(jnp.zeros((DIM,), jnp.float32))             # (2,)
    pe = (psi_ref - psi_goal_ref[:, None]).T[:, :, None]                   # (N, 2, 1)
    xdot_ref = -jnp.linalg.solve(J_ref, pe)[..., 0].T                      # (2, N)

    # baseline f32 trig path: tight tolerance
    out_f32 = jax.block_until_ready(
        velocity_flow_control(x, alpha, beta, W, use_bf16_trig=False))
    assert np.allclose(np.asarray(out_f32), np.asarray(xdot_ref),
                       rtol=2e-3, atol=2e-4), (
        "x_dot (f32) max abs err = "
        f"{float(np.max(np.abs(np.asarray(out_f32) - np.asarray(xdot_ref))))}")

    # device-default path: relaxed tolerance when bf16 trig is active (error compounds
    # over 20 Euler steps even with f32 range reduction).
    out_auto = jax.block_until_ready(velocity_flow_control(x, alpha, beta, W))
    tol2 = dict(rtol=5e-2, atol=2e-2) if auto_bf16 else dict(rtol=2e-3, atol=2e-4)
    assert np.allclose(np.asarray(out_auto), np.asarray(xdot_ref), **tol2), (
        "x_dot (auto) max abs err = "
        f"{float(np.max(np.abs(np.asarray(out_auto) - np.asarray(xdot_ref))))}")

    print("KERNEL_OK")
</pallas_src>

<mosaic_0001>
module attributes {stable_mosaic.version = 11 : i64} {
  func.func @_velocity_field_kernel(%arg0: i32, %arg1: memref<64x3xf32, #tpu.memory_space<vmem>>, %arg2: memref<2x64xf32, #tpu.memory_space<vmem>>, %arg3: memref<3x512xf32, #tpu.memory_space<vmem>>, %arg4: memref<2x512xf32, #tpu.memory_space<vmem>>) attributes {dimension_semantics = [#tpu.dimension_semantics<parallel>], iteration_bounds = array<i64: 1>, scalar_prefetch = 0 : i64, scratch_operands = 0 : i64, tpu.core_type = #tpu.core_type<tc>, window_params = [{pipeline_mode = #tpu.pipeline_mode<synchronous>, transform_indices = @transform_0, window_bounds = array<i64: 64, 3>}, {pipeline_mode = #tpu.pipeline_mode<synchronous>, transform_indices = @transform_1, window_bounds = array<i64: 2, 64>}, {transform_indices = @transform_2, window_bounds = array<i64: 3, 512>}, {transform_indices = @transform_3, window_bounds = array<i64: 2, 512>}]} {
    %c0 = arith.constant 0 : index
    %c0_0 = arith.constant 0 : index
    %0 = vector.load %arg1[%c0, %c0_0] : memref<64x3xf32, #tpu.memory_space<vmem>>, vector<64x3xf32>
    %c0_1 = arith.constant 0 : index
    %c0_2 = arith.constant 0 : index
    %1 = vector.load %arg3[%c0_1, %c0_2] : memref<3x512xf32, #tpu.memory_space<vmem>>, vector<3x512xf32>
    %cst = arith.constant dense<0.000000e+00> : vector<64x512xf32>
    %2 = tpu.matmul %0, %1, %cst {dimension_numbers = #tpu.dot_dimension_numbers<[1], [0], [0], [1], [0, 0, 1, 1], [], []>} : vector<64x3xf32>, vector<3x512xf32>, vector<64x512xf32> -> vector<64x512xf32>
    %3 = math.cos %2 : vector<64x512xf32>
    %c0_3 = arith.constant 0 : index
    %c0_4 = arith.constant 0 : index
    %4 = vector.load %arg2[%c0_3, %c0_4] : memref<2x64xf32, #tpu.memory_space<vmem>>, vector<2x64xf32>
    %cst_5 = arith.constant dense<0.000000e+00> : vector<2x512xf32>
    %5 = tpu.matmul %4, %3, %cst_5 {dimension_numbers = #tpu.dot_dimension_numbers<[1], [0], [0], [1], [0, 0, 1, 1], [], []>} : vector<2x64xf32>, vector<64x512xf32>, vector<2x512xf32> -> vector<2x512xf32>
    %c0_6 = arith.constant 0 : index
    %c0_7 = arith.constant 0 : index
    %6 = vector.load %arg4[%c0_6, %c0_7] : memref<2x512xf32, #tpu.memory_space<vmem>>, vector<2x512xf32>
    tpu.vector_store %arg4[%c0_6, %c0_7], %5 {strides = array<i32>} : memref<2x512xf32, #tpu.memory_space<vmem>>, vector<2x512xf32>,
    return
  }
  func.func @transform_0(%arg0: i32) -> (i32, i32) {
    %c0_i32 = arith.constant 0 : i32
    %c0_i32_0 = arith.constant 0 : i32
    %c0_i32_1 = arith.constant 0 : i32
    return %c0_i32, %c0_i32_0 : i32, i32
  }
  func.func @transform_1(%arg0: i32) -> (i32, i32) {
    %c0_i32 = arith.constant 0 : i32
    %c0_i32_0 = arith.constant 0 : i32
    %c0_i32_1 = arith.constant 0 : i32
    return %c0_i32, %c0_i32_0 : i32, i32
  }
  func.func @transform_2(%arg0: i32) -> (i32, i32) {
    %c0_i32 = arith.constant 0 : i32
    %c0_i32_0 = arith.constant 0 : i32
    return %c0_i32, %arg0 : i32, i32
  }
  func.func @transform_3(%arg0: i32) -> (i32, i32) {
    %c0_i32 = arith.constant 0 : i32
    %c0_i32_0 = arith.constant 0 : i32
    return %c0_i32, %arg0 : i32, i32
  }
}

</mosaic_0001>

<bundles_post_ra>
// kernel: _velocity_field_forward_jit.1
= control target key start
LH: loop header
LB: loop body
LE: loop exit
PB: predicated region body
PF: predicated region fallthrough
CT: control target
= control target key end

     0   :  { %vm54_vm0 = vcmask 1042432   ;;  %v4208_v4 = vmov 0.0   ;;  %vm29_vm1 = vcmask 23552   ;;  %s7262_s0 = inlined_call_operand.vmem [shape: f32[64,3], index: 0, kind: input, shape index: {}]   ;;  %s7263_s1 = inlined_call_operand.vmem [shape: f32[2,64], index: 1, kind: input, shape index: {}]   ;;  %s7264_s2 = inlined_call_operand.vmem [shape: f32[3,512], index: 2, kind: input, shape index: {}]   ;;  %s7265_s3 = inlined_call_operand.hbm [shape: f32[2,512], index: 3, kind: output, shape index: {}]  }
   0x1   :  { %v23_v0 = vld [vmem:[%s7264_s2] sm:$0x77]  ;;  %v24_v1 = vld [vmem:[%s7264_s2 + $0x8] sm:$0x77]  ;;  %127 = vmatprep.mubr.f32.mxu0 %v4208_v4  ;;  %240 = vmatprep.mubr.f32.mxu1 %v4208_v4 }
   0x2   :  { %v27_v2 = vcombine.high %v23_v0, %v23_v0  ;;  %v28_v3 = vcombine.high %v24_v1, %v24_v1  ;;  %v15_v5 = vld [vmem:[%s7262_s0] sm:$0xff] }
   0x4   :  { %3769 = vmatprep.subr.msk.mxu0 %vm54_vm0, %v27_v2  ;;  %3779 = vmatprep.subr.msk.mxu1 %vm54_vm0, %v28_v3 }
   0x5   :  { %8 = vsyncpa [#allocation3], 0  ;;  %3770 = vmatpush1.msk.msra.mxu0 %vm54_vm0, %v23_v0  ;;  %3780 = vmatpush1.msk.msra.mxu1 %vm54_vm0, %v24_v1  ;;  %v16_v6 = vld [vmem:[%s7262_s0 + $0x8] sm:$0xff]  ;;  %v17_v7 = vld [vmem:[%s7262_s0 + $0x10] sm:$0xff]  ;;  %v7281_v44 = vmov 683565275  }
   0x6   :  { %3771 = vmatmul.mubr.msk.f32.vlgmr.msra.gmra.mxu0 %vm29_vm1, %v15_v5  ;;  %3781 = vmatmul.mubr.msk.f32.vlgmr.msra.gmra.mxu1 %vm29_vm1, %v15_v5  ;;  %v18_v8 = vld [vmem:[%s7262_s0 + $0x18] sm:$0xff]  ;;  %v19_v9 = vld [vmem:[%s7262_s0 + $0x20] sm:$0xff]  ;;  %v20_v10 = vld [vmem:[%s7262_s0 + $0x28] sm:$0xff]  ;;  %v7276_v48 = vmov 2475754826  }
   0x7   :  { %133 = vmatprep.mubr.f32.mxu0 %v4208_v4  ;;  %246 = vmatprep.mubr.f32.mxu1 %v4208_v4  ;;  %v21_v11 = vld [vmem:[%s7262_s0 + $0x30] sm:$0xff]  ;;  %v22_v12 = vld [vmem:[%s7262_s0 + $0x38] sm:$0xff]  ;;  %v7274_v50 = vmov 2131351028   ;;  %v7278_v52 = vmov 2102212464  }
   0x8   :  { %v7296_v54 = vmov 920167782   ;;  %v7271_v61 = vmov 1326507024  }
   0xa   :  { %3772 = vmatmul.mubr.msk.f32.gmra.mxu0 %vm29_vm1, %v16_v6  ;;  %3782 = vmatmul.mubr.msk.f32.gmra.mxu1 %vm29_vm1, %v16_v6 }
   0xb   :  { %139 = vmatprep.mubr.f32.mxu0 %v4208_v4  ;;  %252 = vmatprep.mubr.f32.mxu1 %v4208_v4 }
   0xe   :  { %3773 = vmatmul.mubr.msk.f32.gmra.mxu0 %vm29_vm1, %v17_v7  ;;  %3783 = vmatmul.mubr.msk.f32.gmra.mxu1 %vm29_vm1, %v17_v7 }
   0xf   :  { %145 = vmatprep.mubr.f32.mxu0 %v4208_v4  ;;  %258 = vmatprep.mubr.f32.mxu1 %v4208_v4 }
  0x12   :  { %3774 = vmatmul.mubr.msk.f32.gmra.mxu0 %vm29_vm1, %v18_v8  ;;  %3784 = vmatmul.mubr.msk.f32.gmra.mxu1 %vm29_vm1, %v18_v8 }
  0x13   :  { %151 = vmatprep.mubr.f32.mxu0 %v4208_v4  ;;  %264 = vmatprep.mubr.f32.mxu1 %v4208_v4 }
  0x16   :  { %3775 = vmatmul.mubr.msk.f32.gmra.mxu0 %vm29_vm1, %v19_v9  ;;  %3785 = vmatmul.mubr.msk.f32.gmra.mxu1 %vm29_vm1, %v19_v9 }
  0x17   :  { %157 = vmatprep.mubr.f32.mxu0 %v4208_v4  ;;  %270 = vmatprep.mubr.f32.mxu1 %v4208_v4 }
  0x1a   :  { %3776 = vmatmul.mubr.msk.f32.gmra.mxu0 %vm29_vm1, %v20_v10  ;;  %3786 = vmatmul.mubr.msk.f32.gmra.mxu1 %vm29_vm1, %v20_v10 }
  0x1b   :  { %163 = vmatprep.mubr.f32.mxu0 %v4208_v4  ;;  %276 = vmatprep.mubr.f32.mxu1 %v4208_v4 }
  0x1e   :  { %3777 = vmatmul.mubr.msk.f32.gmra.mxu0 %vm29_vm1, %v21_v11  ;;  %3787 = vmatmul.mubr.msk.f32.gmra.mxu1 %vm29_vm1, %v21_v11 }
  0x1f   :  { %169 = vmatprep.mubr.f32.mxu0 %v4208_v4  ;;  %282 = vmatprep.mubr.f32.mxu1 %v4208_v4 }
  0x22   :  { %3778 = vmatmul.mubr.msk.f32.gmra.mxu0 %vm29_vm1, %v22_v12  ;;  %3788 = vmatmul.mubr.msk.f32.gmra.mxu1 %vm29_vm1, %v22_v12 }
  0x23   :  { %3654 = vmatprep.mubr.f32.mxu0 %v4208_v4  ;;  %3725 = vmatprep.mubr.f32.mxu1 %v4208_v4 }
  0xc6   :  { %v4283_v13 = vpop.f32.mrf.mxu0  ;;  %v4285_v14 = vpop.f32.mrf.mxu1 }
  0xc7   :  { %7473 = vst [vmem:[#allocation5_spill] sm:$0xff] %v4283_v13  ;;  %7474 = vst [vmem:[#allocation6_spill] sm:$0xff] %v4285_v14  ;;  %v289_v15 = vand.u32 2147483647, %v4283_v13  ;;  %v292_v16 = vand.u32 2139095040, %v4283_v13  ;;  %v498_v18 = vand.u32 2139095040, %v4285_v14 }
  0xc8   :  { %v495_v17 = vand.u32 2147483647, %v4285_v14  ;;  %v4291_v19 = vpop.f32.mrf.mxu0  ;;  %v4298_v33 = vpop.f32.mrf.mxu1 }
  0xc9   :  { %7475 = vst [vmem:[#allocation7_spill] sm:$0xff] %v4291_v19  ;;  %v293_v20 = vshrl.u32 %v292_v16, 23  ;;  %v296_v21 = vand.u32 8388607, %v289_v15  ;;  %v499_v22 = vshrl.u32 %v498_v18, 23  ;;  %v395_v24 = vand.u32 2139095040, %v4291_v19 }
  0xca   :  { %v502_v23 = vand.u32 8388607, %v495_v17  ;;  %7476 = vst [vmem:[#allocation8_spill] sm:$0xff] %v4298_v33  ;;  %v7270_v38 = vand.u32 2147483647, %v4291_v19  ;;  %v601_v42 = vand.u32 2139095040, %v4298_v33 }
  0xcb   :  { %v3789_v25 = vadd.s32 4294967169, %v293_v20  ;;  %v3797_v26 = vadd.s32 4294967169, %v499_v22  ;;  %v396_v27 = vshrl.u32 %v395_v24, 23  ;;  %v297_v29 = vor.u32 8388608, %v296_v21 }
  0xcc   :  { %v503_v30 = vor.u32 8388608, %v502_v23 }
  0xcd   :  { %v299_v28 = vadd.s32 1, %v3789_v25  ;;  %v505_v31 = vadd.s32 1, %v3797_v26  ;;  %v3793_v32 = vadd.s32 4294967169, %v396_v27  ;;  %v4301_v39 = vshll.u32 %v297_v29, 8 }
  0xce   :  { %v4303_v40 = vshll.u32 %v503_v30, 8 }
  0xcf   :  { %vm300_vm2 = vcmp.gt.s32.totalorder %v299_v28, 0  ;;  %vm506_vm3 = vcmp.gt.s32.totalorder %v505_v31, 0  ;;  %v4305_v41 = vadd.s32 1, %v3793_v32 }
  0xd0   :  { %v301_v34 = vsel %vm300_vm2, %v299_v28, 0  ;;  %v507_v37 = vsel %vm506_vm3, %v505_v31, 0 }
  0xd1   :  { %v302_v35 = vshrl.u32 %v301_v34, 5  ;;  %v303_v36 = vand.u32 31, %v301_v34  ;;  %v4309_v46 = vshrl.u32 %v507_v37, 5  ;;  %v509_v47 = vand.u32 31, %v507_v37 }
  0xd2   :  { %vm403_vm8 = vcmp.gt.s32.totalorder %v4305_v41, 0 }
  0xd3   :  { %v304_v43 = vsub.s32 32, %v303_v36  ;;  %v306_v45 = vshll.u32 %v7281_v44, %v303_v36  ;;  %v309_v49 = vshll.u32 %v7276_v48, %v303_v36  ;;  %v312_v51 = vshll.u32 %v7274_v50, %v303_v36 }
  0xd4   :  { %v315_v53 = vshll.u32 %v7278_v52, %v303_v36  ;;  %v318_v55 = vshll.u32 %v7296_v54, %v303_v36  ;;  %vm321_vm4 = vcmp.lt.s32.totalorder %v302_v35, 1  ;;  %vm322_vm5 = vcmp.lt.s32.totalorder %v302_v35, 2 }
  0xd5   :  { %v307_v56 = vshrl.u32 %v7276_v48, %v304_v43  ;;  %v310_v57 = vshrl.u32 %v7274_v50, %v304_v43  ;;  %v313_v58 = vshrl.u32 %v7278_v52, %v304_v43  ;;  %v305_v59 = vshrl.u32 %v7281_v44, %v304_v43 }
  0xd6   :  { %v316_v60 = vshrl.u32 %v7296_v54, %v304_v43  ;;  %v319_v62 = vshrl.u32 %v7271_v61, %v304_v43  ;;  %v510_v2 = vsub.s32 32, %v509_v47  ;;  %vm323_vm6 = vcmp.lt.s32.totalorder %v302_v35, 3 }
  0xd7   :  { %v308_v63 = vor.u32 %v307_v56, %v306_v45  ;;  %v311_v0 = vor.u32 %v310_v57, %v309_v49  ;;  %v314_v1 = vor.u32 %v313_v58, %v312_v51  ;;  %vm324_vm7 = vcmp.lt.s32.totalorder %v302_v35, 4 }
  0xd8   :  { %v317_v3 = vor.u32 %v316_v60, %v315_v53  ;;  %v320_v4 = vor.u32 %v319_v62, %v318_v55  ;;  %v512_v12 = vshll.u32 %v7281_v44, %v509_v47  ;;  %v513_v20 = vshrl.u32 %v7276_v48, %v510_v2 }
  0xd9   :  { %v325_v5 = vsel %vm321_vm4, %v305_v59, %v308_v63  ;;  %v326_v6 = vsel %vm324_vm7, %v314_v1, 2102212464  ;;  %v329_v7 = vsel %vm321_vm4, %v308_v63, %v311_v0  ;;  %v333_v8 = vsel %vm321_vm4, %v311_v0, %v314_v1 }
  0xda   :  { %v327_v9 = vsel %vm323_vm6, %v311_v0, %v326_v6  ;;  %v330_v10 = vsel %vm324_vm7, %v317_v3, 920167782  ;;  %v334_v11 = vsel %vm324_vm7, %v320_v4, 1326507024  ;;  %v515_v21 = vshll.u32 %v7276_v48, %v509_v47 }
  0xdb   :  { %v331_v16 = vsel %vm323_vm6, %v314_v1, %v330_v10  ;;  %v335_v18 = vsel %vm323_vm6, %v317_v3, %v334_v11  ;;  %v328_v22 = vsel %vm322_vm5, %v325_v5, %v327_v9  ;;  %v516_v25 = vshrl.u32 %v7274_v50, %v510_v2 }
  0xdc   :  { %v332_v23 = vsel %vm322_vm5, %v329_v7, %v331_v16  ;;  %v336_v24 = vsel %vm322_vm5, %v333_v8, %v335_v18  ;;  %v514_v30 = vor.u32 %v513_v20, %v512_v12  ;;  %v518_v32 = vshll.u32 %v7274_v50, %v509_v47 }
  0xdd   :  { %v4332_v26 = vmul.u32.u64.low %v4301_v39, %v336_v24  ;;  %v4333_v27 = vmul.u32.u64.high %v4301_v39, %v336_v24, %v4332_v26  ;;  %v4336_v28 = vmul.u32.u64.low %v4301_v39, %v332_v23  ;;  %v4337_v29 = vmul.u32.u64.high %v4301_v39, %v332_v23, %v4336_v28 }
  0xde   :  { %v517_v31 = vor.u32 %v516_v25, %v515_v21  ;;  %v519_v34 = vshrl.u32 %v7278_v52, %v510_v2  ;;  %v521_v35 = vshll.u32 %v7278_v52, %v509_v47  ;;  %v522_v36 = vshrl.u32 %v7296_v54, %v510_v2 }
  0xdf   :  { %v525_v37 = vshrl.u32 %v7271_v61, %v510_v2  ;;  %v344_v43 = vmul.u32 %v4301_v39, %v328_v22  ;;  %v511_v45 = vshrl.u32 %v7281_v44, %v510_v2  ;;  %v524_v51 = vshll.u32 %v7296_v54, %v509_v47 }
  0xe0   :  { %v520_v49 = vor.u32 %v519_v34, %v518_v32  ;;  %vm346_vm9 = vc.u32 %v4333_v27, %v4336_v28  ;;  %v347_v53 = vadd.s32 1, %v4337_v29  ;;  %v523_v55 = vor.u32 %v522_v36, %v521_v35 }
  0xe1   :  { %vm527_vm10 = vcmp.lt.s32.totalorder %v4309_v46, 1  ;;  %v526_v56 = vor.u32 %v525_v37, %v524_v51  ;;  %vm529_vm11 = vcmp.lt.s32.totalorder %v4309_v46, 3  ;;  %vm530_vm12 = vcmp.lt.s32.totalorder %v4309_v46, 4 }
  0xe2   :  { %v535_v57 = vsel %vm527_vm10, %v514_v30, %v517_v31  ;;  %v348_v39 = vsel %vm346_vm9, %v347_v53, %v4337_v29  ;;  %v532_v58 = vsel %vm530_vm12, %v520_v49, 2102212464  ;;  %v536_v59 = vsel %vm530_vm12, %v523_v55, 920167782 }
  0xe3   :  { %v539_v60 = vsel %vm527_vm10, %v517_v31, %v520_v49  ;;  %v349_v47 = vadd.s32 %v348_v39, %v344_v43  ;;  %vm528_vm13 = vcmp.lt.s32.totalorder %v4309_v46, 2  ;;  %v537_v62 = vsel %vm529_vm11, %v520_v49, %v536_v59 }
  0xe4   :  { %v540_v63 = vsel %vm530_vm12, %v526_v56, 1326507024  ;;  %v531_v0 = vsel %vm527_vm10, %v511_v45, %v514_v30  ;;  %v538_v1 = vsel %vm528_vm13, %v535_v57, %v537_v62  ;;  %v404_v3 = vsel %vm403_vm8, %v4305_v41, 0 }
  0xe5   :  { %v541_v2 = vsel %vm529_vm11, %v523_v55, %v540_v63  ;;  %v533_v4 = vsel %vm529_vm11, %v517_v31, %v532_v58  ;;  %v4365_v6 = vmul.u32.u64.low %v4303_v40, %v538_v1  ;;  %v4366_v7 = vmul.u32.u64.high %v4303_v40, %v538_v1, %v4365_v6 }
  0xe6   :  { %v542_v5 = vsel %vm528_vm13, %v539_v60, %v541_v2  ;;  %v399_v10 = vand.u32 8388607, %v7270_v38  ;;  %v350_v11 = vadd.s32 536870912, %v349_v47  ;;  %v406_v12 = vand.u32 31, %v404_v3 }
  0xe7   :  { %v4370_v8 = vmul.u32.u64.low %v4303_v40, %v542_v5  ;;  %v4371_v9 = vmul.u32.u64.high %v4303_v40, %v542_v5, %v4370_v8  ;;  %v602_v41 = vshrl.u32 %v601_v42, 23  ;;  %v534_v16 = vsel %vm528_vm13, %v531_v0, %v533_v4 }
  0xe8   :  { %v407_v18 = vsub.s32 32, %v406_v12  ;;  %v553_v20 = vadd.s32 1, %v4366_v7  ;;  %v400_v21 = vor.u32 8388608, %v399_v10  ;;  %v405_v22 = vshrl.u32 %v404_v3, 5 }
  0xe9   :  { %v4380_v23 = vshrl.u32 %v350_v11, 30  ;;  %v550_v24 = vmul.u32 %v4303_v40, %v534_v16  ;;  %vm552_vm14 = vc.u32 %v4371_v9, %v4365_v6  ;;  %v3801_v25 = vadd.s32 4294967169, %v602_v41 }
  0xea   :  { %v409_v26 = vshll.u32 %v7281_v44, %v406_v12  ;;  %v410_v42 = vshrl.u32 %v7276_v48, %v407_v18  ;;  %v412_v46 = vshll.u32 %v7276_v48, %v406_v12  ;;  %v413_v29 = vshrl.u32 %v7274_v50, %v407_v18 }
  0xeb   :  { %v415_v30 = vshll.u32 %v7274_v50, %v406_v12  ;;  %v416_v31 = vshrl.u32 %v7278_v52, %v407_v18  ;;  %v418_v32 = vshll.u32 %v7278_v52, %v406_v12  ;;  %v419_v40 = vshrl.u32 %v7296_v54, %v407_v18 }
  0xec   :  { %v554_v34 = vsel %vm552_vm14, %v553_v20, %v4366_v7  ;;  %v411_v35 = vor.u32 %v410_v42, %v409_v26  ;;  %v414_v36 = vor.u32 %v413_v29, %v412_v46  ;;  %vm424_vm15 = vcmp.lt.s32.totalorder %v405_v22, 1 }
  0xed   :  { %v417_v37 = vor.u32 %v416_v31, %v415_v30  ;;  %v420_v43 = vor.u32 %v419_v40, %v418_v32  ;;  %v421_v45 = vshll.u32 %v7296_v54, %v406_v12  ;;  %v422_v49 = vshrl.u32 %v7271_v61, %v407_v18 }
  0xee   :  { %v352_v51 = vshll.u32 %v4380_v23, 30  ;;  %vm427_vm0 = vcmp.lt.s32.totalorder %v405_v22, 4  ;;  %v432_v53 = vsel %vm424_vm15, %v411_v35, %v414_v36  ;;  %v555_v55 = vadd.s32 %v554_v34, %v550_v24 }
  0xef   :  { %v423_v56 = vor.u32 %v422_v49, %v421_v45  ;;  %vm426_vm1 = vcmp.lt.s32.totalorder %v405_v22, 3  ;;  %v433_v57 = vsel %vm427_vm0, %v420_v43, 920167782  ;;  %vm425_vm2 = vcmp.lt.s32.totalorder %v405_v22, 2 }
  0xf0   :  { %v434_v39 = vsel %vm426_vm1, %v417_v37, %v433_v57  ;;  %v608_v58 = vadd.s32 1, %v3801_v25  ;;  %v429_v59 = vsel %vm427_vm0, %v417_v37, 2102212464  ;;  %v436_v62 = vsel %vm424_vm15, %v414_v36, %v417_v37 }
  0xf1   :  { %v435_v60 = vsel %vm425_vm2, %v432_v53, %v434_v39  ;;  %v440_v63 = vshll.u32 %v400_v21, 8  ;;  %v4401_v0 = vsub.s32 %v349_v47, %v352_v51  ;;  %v408_v1 = vshrl.u32 %v7281_v44, %v407_v18 }
  0xf2   :  { %v437_v2 = vsel %vm427_vm0, %v423_v56, 1326507024  ;;  %v556_v3 = vadd.s32 536870912, %v555_v55  ;;  %v430_v10 = vsel %vm426_vm1, %v414_v36, %v429_v59  ;;  %vm609_vm3 = vcmp.gt.s32.totalorder %v608_v58, 0 }
  0xf3   :  { %v438_v4 = vsel %vm426_vm1, %v420_v43, %v437_v2  ;;  %v4405_v5 = vmul.u32.u64.low %v440_v63, %v435_v60  ;;  %v4406_v7 = vmul.u32.u64.high %v440_v63, %v435_v60, %v4405_v5  ;;  %v428_v8 = vsel %vm424_vm15, %v408_v1, %v411_v35 }
  0xf4   :  { %v439_v11 = vsel %vm425_vm2, %v436_v62, %v438_v4  ;;  %v610_v12 = vsel %vm609_vm3, %v608_v58, 0  ;;  %v355_v47 = vsub.s32 0, %v4401_v0  ;;  %v4416_v18 = vshrl.u32 %v556_v3, 30 }
  0xf5   :  { %v4413_v41 = vmul.u32.u64.low %v440_v63, %v439_v11  ;;  %v4414_v16 = vmul.u32.u64.high %v440_v63, %v439_v11, %v4413_v41  ;;  %v431_v20 = vsel %vm425_vm2, %v428_v8, %v430_v10  ;;  %v450_v21 = vadd.s32 1, %v4406_v7 }
  0xf6   :  { %7477 = vst [vmem:[#allocation9_spill] sm:$0xff] %v4416_v18  ;;  %v612_v24 = vand.u32 31, %v610_v12  ;;  %v3790_v26 = vmin.u32 %v355_v47, %v4401_v0  ;;  %v447_v42 = vmul.u32 %v440_v63, %v431_v20  ;;  %v558_v46 = vshll.u32 %v4416_v18, 30  ;;  %v4447_v47 = vpop.f32.mrf.mxu0 }
  0xf7   :  { %vm449_vm4 = vc.u32 %v4414_v16, %v4405_v5  ;;  %v7269_v30 = vand.u32 2147483647, %v4298_v33  ;;  %v611_v49 = vshrl.u32 %v610_v12, 5  ;;  %7479 = vst [vmem:[#allocation11_spill] sm:$0xff] %v4447_v47 }
  0xf8   :  { %v613_v25 = vsub.s32 32, %v612_v24  ;;  %v451_v29 = vsel %vm449_vm4, %v450_v21, %v4406_v7  ;;  %v357_v40 = vclz %v3790_v26  ;;  %v615_v35 = vshll.u32 %v7281_v44, %v612_v24 }
  0xf9   :  { %v452_v31 = vadd.s32 %v451_v29, %v447_v42  ;;  %v618_v36 = vshll.u32 %v7276_v48, %v612_v24  ;;  %v4430_v37 = vsub.s32 %v555_v55, %v558_v46  ;;  %v605_v43 = vand.u32 8388607, %v7269_v30 }
  0xfa   :  { %v616_v22 = vshrl.u32 %v7276_v48, %v613_v25  ;;  %v619_v32 = vshrl.u32 %v7274_v50, %v613_v25  ;;  %v622_v45 = vshrl.u32 %v7278_v52, %v613_v25  ;;  %v621_v56 = vshll.u32 %v7274_v50, %v612_v24 }
  0xfb   :  { %v453_v34 = vadd.s32 536870912, %v452_v31  ;;  %v624_v57 = vshll.u32 %v7278_v52, %v612_v24  ;;  %v625_v39 = vshrl.u32 %v7296_v54, %v613_v25  ;;  %v627_v58 = vshll.u32 %v7296_v54, %v612_v24 }
  0xfc   :  { %v617_v51 = vor.u32 %v616_v22, %v615_v35  ;;  %v620_v53 = vor.u32 %v619_v32, %v618_v36  ;;  %v628_v59 = vshrl.u32 %v7271_v61, %v613_v25  ;;  %v3791_v55 = vadd.s32 4294967294, %v357_v40 }
  0xfd   :  { %v4440_v60 = vshrl.u32 %v453_v34, 30  ;;  %v623_v62 = vor.u32 %v622_v45, %v621_v56  ;;  %v626_v63 = vor.u32 %v625_v39, %v624_v57  ;;  %v561_v2 = vsub.s32 0, %v4430_v37  ;;  %v4466_v39 = vpop.f32.mrf.mxu1 }
  0xfe   :  { %v629_v1 = vor.u32 %v628_v59, %v627_v58  ;;  %vm630_vm5 = vcmp.lt.s32.totalorder %v611_v49, 1  ;;  %vm633_vm6 = vcmp.lt.s32.totalorder %v611_v49, 4  ;;  %v606_v3 = vor.u32 8388608, %v605_v43  ;;  %7480 = vst [vmem:[#allocation12_spill] sm:$0xff] %v4466_v39 }
  0xff   :  { %7478 = vst [vmem:[#allocation10_spill] sm:$0xff] %v4440_v60  ;;  %v638_v4 = vsel %vm630_vm5, %v617_v51, %v620_v53  ;;  %v639_v7 = vsel %vm633_vm6, %v626_v63, 920167782  ;;  %vm3792_vm7 = vcmp.lt.s32.totalorder %v3791_v55, 0  ;;  %v455_v8 = vshll.u32 %v4440_v60, 30 }
 0x100   :  { %vm632_vm8 = vcmp.lt.s32.totalorder %v611_v49, 3  ;;  %vm631_vm9 = vcmp.lt.s32.totalorder %v611_v49, 2  ;;  %v642_v11 = vsel %vm630_vm5, %v620_v53, %v623_v62  ;;  %v643_v12 = vsel %vm633_vm6, %v629_v1, 1326507024 }
 0x101   :  { %v640_v10 = vsel %vm632_vm8, %v623_v62, %v639_v7  ;;  %v3798_v41 = vmin.u32 %v561_v2, %v4430_v37  ;;  %v644_v21 = vsel %vm632_vm8, %v626_v63, %v643_v12  ;;  %v635_v24 = vsel %vm633_vm6, %v623_v62, 2102212464 }
 0x102   :  { %v641_v20 = vsel %vm631_vm9, %v638_v4, %v640_v10  ;;  %v645_v26 = vsel %vm631_vm9, %v642_v11, %v644_v21  ;;  %v646_v42 = vshll.u32 %v606_v3, 8  ;;  %v360_v46 = vsel %vm3792_vm7, 0, %v3791_v55 }
 0x103   :  { %v4453_v29 = vsub.s32 %v452_v31, %v455_v8  ;;  %v614_v22 = vshrl.u32 %v7281_v44, %v613_v25  ;;  %v704_v32 = vand.u32 2139095040, %v4447_v47  ;;  %v563_v43 = vclz %v3798_v41 }
 0x104   :  { %v4457_v40 = vmul.u32.u64.low %v646_v42, %v645_v26  ;;  %v4458_v34 = vmul.u32.u64.high %v646_v42, %v645_v26, %v4457_v40  ;;  %v4460_v35 = vmul.u32.u64.low %v646_v42, %v641_v20  ;;  %v4461_v36 = vmul.u32.u64.high %v646_v42, %v641_v20, %v4460_v35 }
 0x105   :  { %v634_v45 = vsel %vm630_vm5, %v614_v22, %v617_v51  ;;  %v636_v56 = vsel %vm632_vm8, %v620_v53, %v635_v24  ;;  %v705_v57 = vshrl.u32 %v704_v32, 23  ;;  %v361_v31 = vsub.s32 32, %v360_v46 }
 0x106   :  { %v365_v58 = vsub.s32 4294967266, %v360_v46  ;;  %v458_v59 = vsub.s32 0, %v4453_v29  ;;  %v637_v55 = vsel %vm631_vm9, %v634_v45, %v636_v56  ;;  %vm655_vm10 = vc.u32 %v4458_v34, %v4460_v35 }
 0x107   :  { %v3805_v25 = vadd.s32 4294967169, %v705_v57  ;;  %v345_v62 = vadd.s32 %v4336_v28, %v4333_v27  ;;  %v3799_v63 = vadd.s32 4294967294, %v563_v43  ;;  %v656_v51 = vadd.s32 1, %v4461_v36 }
 0x108   :  { %v910_v53 = vand.u32 2139095040, %v4466_v39  ;;  %v366_v3 = vadd.s32 127, %v365_v58  ;;  %v653_v4 = vmul.u32 %v646_v42, %v637_v55  ;;  %v362_v49 = vshll.u32 %v4401_v0, %v360_v46 }
 0x109   :  { %v711_v1 = vadd.s32 1, %v3805_v25  ;;  %v363_v2 = vshrl.u32 %v345_v62, %v361_v31  ;;  %v657_v7 = vsel %vm655_vm10, %v656_v51, %v4461_v36  ;;  %v3794_v8 = vmin.u32 %v458_v59, %v4453_v29 }
 0x10a   :  { %v7268_v10 = vand.u32 2147483647, %v4447_v47  ;;  %vm3800_vm12 = vcmp.lt.s32.totalorder %v3799_v63, 0  ;;  %v4480_v27 = vadd.s32 %v657_v7, %v653_v4  ;;  %v911_v11 = vshrl.u32 %v910_v53, 23 }
 0x10b   :  { %vm712_vm11 = vcmp.gt.s32.totalorder %v711_v1, 0  ;;  %v4482_v41 = vor.u32 %v363_v2, %v362_v49  ;;  %v367_v20 = vshll.u32 %v366_v3, 23  ;;  %v4484_v21 = vsel %vm3800_vm12, 0, %v3799_v63 }
 0x10c   :  { %v713_v28 = vsel %vm712_vm11, %v711_v1, 0  ;;  %v460_v24 = vclz %v3794_v8  ;;  %v708_v0 = vand.u32 8388607, %v7268_v10  ;;  %v659_v42 = vadd.s32 536870912, %v4480_v27 }
 0x10d   :  { %v715_v12 = vand.u32 31, %v713_v28  ;;  %v714_v46 = vshrl.u32 %v713_v28, 5  ;;  %v3813_v32 = vadd.s32 4294967169, %v911_v11  ;;  %v368_v25 = vor.u32 4788187, %v367_v20 }
 0x10e   :  { %v571_v63 = vsub.s32 4294967266, %v4484_v21  ;;  %v709_v51 = vor.u32 8388608, %v708_v0  ;;  %v3795_v2 = vadd.s32 4294967294, %v460_v24  ;;  %v4500_v3 = vshrl.u32 %v659_v42, 30 }
 0x10f   :  { %v716_v26 = vsub.s32 32, %v715_v12  ;;  %v718_v22 = vshll.u32 %v7281_v44, %v715_v12  ;;  %v721_v36 = vshll.u32 %v7276_v48, %v715_v12  ;;  %v724_v45 = vshll.u32 %v7274_v50, %v715_v12 }
 0x110   :  { %v727_v57 = vshll.u32 %v7278_v52, %v715_v12  ;;  %v730_v62 = vshll.u32 %v7296_v54, %v715_v12  ;;  %7481 = vst [vmem:[#allocation13_spill] sm:$0xff] %v4500_v3  ;;  %vm733_vm13 = vcmp.lt.s32.totalorder %v714_v46, 1  ;;  %vm736_vm14 = vcmp.lt.s32.totalorder %v714_v46, 4 }
 0x111   :  { %v719_v40 = vshrl.u32 %v7276_v48, %v716_v26  ;;  %v722_v43 = vshrl.u32 %v7274_v50, %v716_v26  ;;  %v725_v56 = vshrl.u32 %v7278_v52, %v716_v26  ;;  %v728_v31 = vshrl.u32 %v7296_v54, %v716_v26 }
 0x112   :  { %v731_v58 = vshrl.u32 %v7271_v61, %v716_v26  ;;  %v7266_v49 = vand.u32 2147483647, %v4466_v39  ;;  %v917_v8 = vadd.s32 1, %v3813_v32  ;;  %v717_v28 = vshrl.u32 %v7281_v44, %v716_v26 }
 0x113   :  { %v720_v59 = vor.u32 %v719_v40, %v718_v22  ;;  %v723_v55 = vor.u32 %v722_v43, %v721_v36  ;;  %v726_v53 = vor.u32 %v725_v56, %v724_v45  ;;  %v729_v1 = vor.u32 %v728_v31, %v727_v57 }
 0x114   :  { %v732_v4 = vor.u32 %v731_v58, %v730_v62  ;;  %vm735_vm15 = vcmp.lt.s32.totalorder %v714_v46, 3  ;;  %vm734_vm0 = vcmp.lt.s32.totalorder %v714_v46, 2  ;;  %v749_v22 = vshll.u32 %v709_v51, 8 }
 0x115   :  { %v741_v7 = vsel %vm733_vm13, %v720_v59, %v723_v55  ;;  %v738_v11 = vsel %vm736_vm14, %v726_v53, 2102212464  ;;  %v742_v12 = vsel %vm736_vm14, %v729_v1, 920167782  ;;  %v745_v0 = vsel %vm733_vm13, %v723_v55, %v726_v53 }
 0x116   :  { %v743_v20 = vsel %vm735_vm15, %v726_v53, %v742_v12  ;;  %v661_v24 = vshll.u32 %v4500_v3, 30  ;;  %v737_v42 = vsel %vm733_vm13, %v717_v28, %v720_v59  ;;  %v746_v36 = vsel %vm736_vm14, %v732_v4, 1326507024 }
 0x117   :  { %v744_v40 = vsel %vm734_vm0, %v741_v7, %v743_v20  ;;  %v739_v43 = vsel %vm735_vm15, %v723_v55, %v738_v11  ;;  %v747_v45 = vsel %vm735_vm15, %v729_v1, %v746_v36  ;;  %v369_v26 = vand.u32 2147483647, %v368_v25 }
 0x118   :  { %v4506_v56 = vmul.u32.u64.low %v749_v22, %v744_v40  ;;  %v4507_v57 = vmul.u32.u64.high %v749_v22, %v744_v40, %v4506_v56  ;;  %v551_v32 = vadd.s32 %v4365_v6, %v4371_v9  ;;  %v748_v31 = vsel %vm734_vm0, %v745_v0, %v747_v45 }
 0x119   :  { %vm918_vm1 = vcmp.gt.s32.totalorder %v917_v8, 0  ;;  %v567_v58 = vsub.s32 32, %v4484_v21  ;;  %v4514_v62 = vmul.u32.u64.low %v749_v22, %v748_v31  ;;  %v4515_v59 = vmul.u32.u64.high %v749_v22, %v748_v31, %v4514_v62 }
 0x11a   :  { %v919_v51 = vsel %vm918_vm1, %v917_v8, 0  ;;  %v572_v53 = vadd.s32 127, %v571_v63  ;;  %v740_v55 = vsel %vm734_vm0, %v737_v42, %v739_v43  ;;  %v914_v1 = vand.u32 8388607, %v7266_v49 }
 0x11b   :  { %v921_v4 = vand.u32 31, %v919_v51  ;;  %v371_v25 = vcvt.s32.f32 %v4482_v41  ;;  %vm3796_vm2 = vcmp.lt.s32.totalorder %v3795_v2, 0  ;;  %v4522_v6 = vsub.s32 %v4480_v27, %v661_v24 }
 0x11c   :  { %v759_v9 = vadd.s32 1, %v4507_v57  ;;  %v375_v7 = vsub.s32 4, %v4380_v23  ;;  %v568_v8 = vshll.u32 %v4430_v37, %v4484_v21  ;;  %v569_v28 = vshrl.u32 %v551_v32, %v567_v58  ;;  %v4538_v21 = vpop.f32.mrf.mxu0 }
 0x11d   :  { %v922_v63 = vsub.s32 32, %v921_v4  ;;  %v4528_v46 = vmul.f32 %v371_v25, %v369_v26  ;;  %v756_v11 = vmul.u32 %v749_v22, %v740_v55  ;;  %vm758_vm3 = vc.u32 %v4515_v59, %v4506_v56  ;;  %7482 = vst [vmem:[#allocation14_spill] sm:$0xff] %v4538_v21 }
 0x11e   :  { %v573_v41 = vshll.u32 %v572_v53, 23  ;;  %v4532_v12 = vsel %vm3796_vm2, 0, %v3795_v2  ;;  %v760_v27 = vsel %vm758_vm3, %v759_v9, %v4507_v57  ;;  %v915_v20 = vor.u32 8388608, %v914_v1 }
 0x11f   :  { %v664_v0 = vsub.s32 0, %v4522_v6  ;;  %v761_v24 = vadd.s32 %v760_v27, %v756_v11  ;;  %v925_v42 = vshrl.u32 %v7276_v48, %v922_v63  ;;  %v928_v37 = vshrl.u32 %v7274_v50, %v922_v63 }
 0x120   :  { %v924_v22 = vshll.u32 %v7281_v44, %v921_v4  ;;  %v927_v40 = vshll.u32 %v7276_v48, %v921_v4  ;;  %v930_v36 = vshll.u32 %v7274_v50, %v921_v4  ;;  %v931_v2 = vshrl.u32 %v7278_v52, %v922_v63 }
 0x121   :  { %v762_v43 = vadd.s32 536870912, %v761_v24  ;;  %v920_v45 = vshrl.u32 %v919_v51, 5  ;;  %v933_v57 = vshll.u32 %v7278_v52, %v921_v4  ;;  %v934_v26 = vshrl.u32 %v7296_v54, %v922_v63 }
 0x122   :  { %v926_v32 = vor.u32 %v925_v42, %v924_v22  ;;  %v929_v31 = vor.u32 %v928_v37, %v927_v40  ;;  %v932_v58 = vor.u32 %v931_v2, %v930_v36  ;;  %v807_v62 = vand.u32 2139095040, %v4538_v21 }
 0x123   :  { %v4547_v53 = vshrl.u32 %v762_v43, 30  ;;  %v935_v55 = vor.u32 %v934_v26, %v933_v57  ;;  %v936_v1 = vshll.u32 %v7296_v54, %v921_v4  ;;  %v937_v25 = vshrl.u32 %v7271_v61, %v922_v63 }
 0x124   :  { %v570_v9 = vor.u32 %v569_v28, %v568_v8  ;;  %v574_v11 = vor.u32 4788187, %v573_v41  ;;  %v468_v51 = vsub.s32 4294967266, %v4532_v12  ;;  %v3802_v27 = vmin.u32 %v664_v0, %v4522_v6 }
 0x125   :  { %v764_v49 = vshll.u32 %v4547_v53, 30  ;;  %v938_v42 = vor.u32 %v937_v25, %v936_v1  ;;  %vm939_vm4 = vcmp.lt.s32.totalorder %v920_v45, 1  ;;  %vm942_vm5 = vcmp.lt.s32.totalorder %v920_v45, 4 }
 0x126   :  { %vm941_vm6 = vcmp.lt.s32.totalorder %v920_v45, 3  ;;  %v947_v37 = vsel %vm939_vm4, %v926_v32, %v929_v31  ;;  %v948_v22 = vsel %vm942_vm5, %v935_v55, 920167782  ;;  %v808_v40 = vshrl.u32 %v807_v62, 23 }
 0x127   :  { %vm940_vm7 = vcmp.lt.s32.totalorder %v920_v45, 2  ;;  %v944_v4 = vsel %vm942_vm5, %v932_v58, 2102212464  ;;  %v949_v36 = vsel %vm941_vm6, %v932_v58, %v948_v22  ;;  %v955_v8 = vshll.u32 %v915_v20, 8 }
 0x128   :  { %v666_v28 = vclz %v3802_v27  ;;  %v923_v41 = vshrl.u32 %v7281_v44, %v922_v63  ;;  %v950_v0 = vsel %vm940_vm7, %v947_v37, %v949_v36  ;;  %v951_v2 = vsel %vm939_vm4, %v929_v31, %v932_v58 }
 0x129   :  { %v4559_v43 = vsub.s32 %v761_v24, %v764_v49  ;;  %v952_v57 = vsel %vm942_vm5, %v938_v42, 1326507024  ;;  %v4561_v26 = vmul.u32.u64.low %v955_v8, %v950_v0  ;;  %v4562_v1 = vmul.u32.u64.high %v955_v8, %v950_v0, %v4561_v26 }
 0x12a   :  { %v943_v62 = vsel %vm939_vm4, %v923_v41, %v926_v32  ;;  %v945_v25 = vsel %vm941_vm6, %v929_v31, %v944_v4  ;;  %v953_v20 = vsel %vm941_vm6, %v935_v55, %v952_v57  ;;  %v3809_v27 = vadd.s32 4294967169, %v808_v40 }
 0x12b   :  { %v575_v22 = vand.u32 2147483647, %v574_v11  ;;  %v464_v63 = vsub.s32 32, %v4532_v12  ;;  %v469_v37 = vadd.s32 127, %v468_v51  ;;  %v954_v58 = vsel %vm940_vm7, %v951_v2, %v953_v20 }
 0x12c   :  { %v448_v49 = vadd.s32 %v4405_v5, %v4414_v16  ;;  %v4572_v24 = vmul.u32.u64.low %v955_v8, %v954_v58  ;;  %v4573_v42 = vmul.u32.u64.high %v955_v8, %v954_v58, %v4572_v24  ;;  %v814_v36 = vadd.s32 1, %v3809_v27 }
 0x12d   :  { %v577_v0 = vcvt.s32.f32 %v570_v9  ;;  %v767_v32 = vsub.s32 0, %v4559_v43  ;;  %v946_v31 = vsel %vm940_vm7, %v943_v62, %v945_v25  ;;  %v965_v55 = vadd.s32 1, %v4562_v1 }
 0x12e   :  { %vm291_vm8 = vcmp.lt.s32.totalorder %v4283_v13, 0  ;;  %v373_v11 = vxor.u32 2147483648, %v4528_v46  ;;  %v3803_v51 = vadd.s32 4294967294, %v666_v28  ;;  %vm815_vm9 = vcmp.gt.s32.totalorder %v814_v36, 0 }
 0x12f   :  { %v4580_v40 = vmul.f32 %v577_v0, %v575_v22  ;;  %v466_v5 = vshrl.u32 %v448_v49, %v464_v63  ;;  %v470_v16 = vshll.u32 %v469_v37, 23  ;;  %v816_v4 = vsel %vm815_vm9, %v814_v36, 0 }
 0x130   :  { %v962_v41 = vmul.u32 %v955_v8, %v946_v31  ;;  %vm964_vm10 = vc.u32 %v4573_v42, %v4561_v26  ;;  %v7267_v45 = vand.u32 2147483647, %v4538_v21  ;;  %v818_v9 = vand.u32 31, %v816_v4 }
 0x131   :  { %v4590_v2 = vsel %vm291_vm8, %v375_v7, %v4380_v23  ;;  %v465_v28 = vshll.u32 %v4453_v29, %v4532_v12  ;;  %v3806_v57 = vmin.u32 %v767_v32, %v4559_v43  ;;  %v966_v8 = vsel %vm964_vm10, %v965_v55, %v4562_v1  ;;  %v4607_v29 = vpop.f32.mrf.mxu1 }
 0x132   :  { %7483 = vst [vmem:[#allocation15_spill] sm:$0xff] %v4590_v2  ;;  %vm3804_vm11 = vcmp.lt.s32.totalorder %v3803_v51, 0  ;;  %v967_v25 = vadd.s32 %v966_v8, %v962_v41  ;;  %v819_v20 = vsub.s32 32, %v818_v9  ;;  %v4600_v27 = vsel %vm291_vm8, %v373_v11, %v4528_v46  ;;  %7484 = vst [vmem:[#allocation16_spill] sm:$0xff] %v4607_v29 }
 0x133   :  { %v579_v23 = vxor.u32 2147483648, %v4580_v40  ;;  %v4603_v7 = vor.u32 %v466_v5, %v465_v28  ;;  %v4605_v22 = vor.u32 4788187, %v470_v16  ;;  %v811_v1 = vand.u32 8388607, %v7267_v45 }
 0x134   :  { %v968_v12 = vadd.s32 536870912, %v967_v25  ;;  %v822_v63 = vshrl.u32 %v7276_v48, %v819_v20  ;;  %v825_v37 = vshrl.u32 %v7274_v50, %v819_v20  ;;  %v4613_v58 = vsel %vm3804_vm11, 0, %v3803_v51 }
 0x135   :  { %v769_v46 = vclz %v3806_v57  ;;  %v821_v49 = vshll.u32 %v7281_v44, %v818_v9  ;;  %v828_v24 = vshrl.u32 %v7278_v52, %v819_v20  ;;  %v824_v0 = vshll.u32 %v7276_v48, %v818_v9 }
 0x136   :  { %v4617_v36 = vshrl.u32 %v968_v12, 30  ;;  %v827_v32 = vshll.u32 %v7274_v50, %v818_v9  ;;  %v1013_v31 = vand.u32 2139095040, %v4607_v29  ;;  %v817_v55 = vshrl.u32 %v816_v4, 5 }
 0x137   :  { %v823_v11 = vor.u32 %v822_v63, %v821_v49  ;;  %v830_v5 = vshll.u32 %v7278_v52, %v818_v9  ;;  %v831_v51 = vshrl.u32 %v7296_v54, %v819_v20  ;;  %v826_v16 = vor.u32 %v825_v37, %v824_v0 }
 0x138   :  { %v829_v41 = vor.u32 %v828_v24, %v827_v32  ;;  %v833_v28 = vshll.u32 %v7296_v54, %v818_v9  ;;  %v834_v57 = vshrl.u32 %v7271_v61, %v819_v20  ;;  %v472_v8 = vand.u32 2147483647, %v4605_v22 }
 0x139   :  { %v670_v12 = vsub.s32 32, %v4613_v58  ;;  %v812_v62 = vor.u32 8388608, %v811_v1  ;;  %v832_v45 = vor.u32 %v831_v51, %v830_v5  ;;  %vm4630_vm12 = vcmp.le.f32.partialorder %v289_v15, 0.7853982 }
 0x13a   :  { %v7485_v4 = vmov 0  ;;  %vm7320_vm13 = vcmp.lt.s32.totalorder %v4285_v14, 0  ;;  %v674_v63 = vsub.s32 4294967266, %v4613_v58  ;;  %v3807_v37 = vadd.s32 4294967294, %v769_v46 }
 0x13b   :  { %v7486_v4 = vsel %vm4630_vm12, 4294967295, %v7485_v4  ;;  %v970_v9 = vshll.u32 %v4617_v36, 30  ;;  %v835_v49 = vor.u32 %v834_v57, %v833_v28  ;;  %v820_v22 = vshrl.u32 %v7281_v44, %v819_v20 }
 0x13c   :  { %7487 = vst [vmem:[#allocation17_spill] sm:$0xff] %v7486_v4  ;;  %vm836_vm14 = vcmp.lt.s32.totalorder %v817_v55, 1  ;;  %vm839_vm15 = vcmp.lt.s32.totalorder %v817_v55, 4  ;;  %v1014_v1 = vshrl.u32 %v1013_v31, 23  ;;  %vm838_vm0 = vcmp.lt.s32.totalorder %v817_v55, 3 }
 0x13d   :  { %v841_v24 = vsel %vm839_vm15, %v829_v41, 2102212464  ;;  %v844_v0 = vsel %vm836_vm14, %v823_v11, %v826_v16  ;;  %v845_v15 = vsel %vm839_vm15, %v832_v45, 920167782  ;;  %vm837_vm1 = vcmp.lt.s32.totalorder %v817_v55, 2 }
 0x13e   :  { %v846_v32 = vsel %vm838_vm0, %v829_v41, %v845_v15  ;;  %v848_v5 = vsel %vm836_vm14, %v826_v16, %v829_v41  ;;  %v852_v51 = vshll.u32 %v812_v62, 8  ;;  %vm4640_vm2 = vcmp.le.f32.partialorder %v495_v17, 0.7853982 }
 0x13f   :  { %v7488_v46 = vmov 0  ;;  %v4644_v28 = vsub.s32 %v967_v25, %v970_v9  ;;  %v840_v20 = vsel %vm836_vm14, %v820_v22, %v823_v11  ;;  %v847_v57 = vsel %vm837_vm1, %v844_v0, %v846_v32 }
 0x140   :  { %v7489_v46 = vsel %vm4640_vm2, 4294967295, %v7488_v46  ;;  %v849_v31 = vsel %vm839_vm15, %v835_v49, 1326507024  ;;  %v842_v10 = vsel %vm838_vm0, %v826_v16, %v841_v24  ;;  %v675_v41 = vadd.s32 127, %v674_v63 }
 0x141   :  { %7490 = vst [vmem:[#allocation18_spill] sm:$0xff] %v7489_v46  ;;  %v850_v30 = vsel %vm838_vm0, %v832_v45, %v849_v31  ;;  %v4647_v38 = vmul.u32.u64.low %v852_v51, %v847_v57  ;;  %v4648_v61 = vmul.u32.u64.high %v852_v51, %v847_v57, %v4647_v38  ;;  %vm3808_vm3 = vcmp.lt.s32.totalorder %v3807_v37, 0 }
 0x142   :  { %v851_v62 = vsel %vm837_vm1, %v848_v5, %v850_v30  ;;  %v3817_v17 = vadd.s32 4294967169, %v1014_v1  ;;  %v654_v15 = vadd.s32 %v4460_v35, %v4458_v34  ;;  %v7273_v11 = vand.u32 2147483647, %v4607_v29 }
 0x143   :  { %v4654_v25 = vmul.u32.u64.low %v852_v51, %v851_v62  ;;  %v4655_v9 = vmul.u32.u64.high %v852_v51, %v851_v62, %v4654_v25  ;;  %v474_v16 = vcvt.s32.f32 %v4603_v7  ;;  %v973_v45 = vsub.s32 0, %v4644_v28 }
 0x144   :  { %v843_v49 = vsel %vm837_vm1, %v840_v20, %v842_v10  ;;  %v1020_v22 = vadd.s32 1, %v3817_v17  ;;  %v4665_v30 = vsel %vm4630_vm12, %v4283_v13, %v4600_v27  ;;  %v580_v34 = vsel %vm7320_vm13, %v579_v23, %v4580_v40  ;;  %v4701_v25 = vpop.f32.mrf.mxu0 }
 0x145   :  { %v4672_v35 = vsel %vm3808_vm3, 0, %v3807_v37  ;;  %v862_v7 = vadd.s32 1, %v4648_v61  ;;  %v4675_v63 = vmul.f32 %v474_v16, %v472_v8  ;;  %v672_v10 = vshrl.u32 %v654_v15, %v670_v12  ;;  %7491 = vst [vmem:[#allocation19_spill] sm:$0xff] %v4701_v25 }
 0x146   :  { %v676_v55 = vshll.u32 %v675_v41, 23  ;;  %vm1021_vm4 = vcmp.gt.s32.totalorder %v1020_v22, 0  ;;  %v859_v1 = vmul.u32 %v852_v51, %v843_v49  ;;  %vm861_vm5 = vc.u32 %v4655_v9, %v4647_v38 }
 0x147   :  { %v1017_v27 = vand.u32 8388607, %v7273_v11  ;;  %v1022_v24 = vsel %vm1021_vm4, %v1020_v22, 0  ;;  %v671_v40 = vshll.u32 %v4522_v6, %v4613_v58  ;;  %v777_v23 = vsub.s32 4294967266, %v4672_v35 }
 0x148   :  { %v3814_v37 = vmin.u32 %v973_v45, %v4644_v28  ;;  %v863_v8 = vsel %vm861_vm5, %v862_v7, %v4648_v61  ;;  %4058 = vcosq.f32 %v4665_v30  ;;  %v4690_v12 = vsel %vm4640_vm2, %v4285_v14, %v580_v34 }
 0x149   :  { %v864_v0 = vadd.s32 %v863_v8, %v859_v1  ;;  %v1024_v32 = vand.u32 31, %v1022_v24  ;;  %v476_v5 = vxor.u32 2147483648, %v4675_v63  ;;  %v4693_v51 = vor.u32 %v672_v10, %v671_v40 }
 0x14a   :  { %v4695_v6 = vor.u32 4788187, %v676_v55  ;;  %v757_v58 = vadd.s32 %v4506_v56, %v4515_v59  ;;  %v773_v61 = vsub.s32 32, %v4672_v35  ;;  %v1018_v57 = vor.u32 8388608, %v1017_v27 }
 0x14b   :  { %v865_v20 = vadd.s32 536870912, %v864_v0  ;;  %v1025_v31 = vsub.s32 32, %v1024_v32  ;;  %v778_v41 = vadd.s32 127, %v777_v23  ;;  %v975_v62 = vclz %v3814_v37 }
 0x14c   :  { %v1023_v17 = vshrl.u32 %v1022_v24, 5  ;;  %v1027_v15 = vshll.u32 %v7281_v44, %v1024_v32  ;;  %v1030_v49 = vshll.u32 %v7276_v48, %v1024_v32  ;;  %v1033_v59 = vshll.u32 %v7274_v50, %v1024_v32 }
 0x14d   :  { %v4703_v16 = vshrl.u32 %v865_v20, 30  ;;  %v1028_v45 = vshrl.u32 %v7276_v48, %v1025_v31  ;;  %v1031_v56 = vshrl.u32 %v7274_v50, %v1025_v31  ;;  %v1034_v22 = vshrl.u32 %v7278_v52, %v1025_v31 }
 0x14e   :  { %v1036_v34 = vshll.u32 %v7278_v52, %v1024_v32  ;;  %v1037_v7 = vshrl.u32 %v7296_v54, %v1025_v31  ;;  %v775_v10 = vshrl.u32 %v757_v58, %v773_v61  ;;  %v1116_v27 = vand.u32 2139095040, %v4701_v25 }
 0x14f   :  { %7492 = vst [vmem:[#allocation20_spill] sm:$0xff] %v4703_v16  ;;  %v1029_v55 = vor.u32 %v1028_v45, %v1027_v15  ;;  %v1032_v1 = vor.u32 %v1031_v56, %v1030_v49  ;;  %v1035_v24 = vor.u32 %v1034_v22, %v1033_v59  ;;  %v1039_v23 = vshll.u32 %v7296_v54, %v1024_v32 }
 0x150   :  { %v1038_v40 = vor.u32 %v1037_v7, %v1036_v34  ;;  %v7493_v37 = vmov 1326507024   ;;  %v779_v20 = vshll.u32 %v778_v41, 23  ;;  %v3815_v11 = vadd.s32 4294967294, %v975_v62 }
 0x151   :  { %v1040_v8 = vshrl.u32 %v7493_v37, %v1025_v31  ;;  %v867_v50 = vshll.u32 %v4703_v16, 30  ;;  %v1058_v48 = vshll.u32 %v1018_v57, 8  ;;  %vm7322_vm6 = vcmp.lt.s32.totalorder %v4291_v19, 0 }
 0x152   :  { %v1026_v52 = vshrl.u32 %v7281_v44, %v1025_v31  ;;  %vm1042_vm7 = vcmp.lt.s32.totalorder %v1023_v17, 1  ;;  %vm1045_vm8 = vcmp.lt.s32.totalorder %v1023_v17, 4  ;;  %vm1044_vm9 = vcmp.lt.s32.totalorder %v1023_v17, 3 }
 0x153   :  { %v1041_v58 = vor.u32 %v1040_v8, %v1039_v23  ;;  %v1047_v61 = vsel %vm1045_vm8, %v1035_v24, 2102212464  ;;  %v1050_v15 = vsel %vm1042_vm7, %v1029_v55, %v1032_v1  ;;  %v1051_v45 = vsel %vm1045_vm8, %v1038_v40, 920167782 }
 0x154   :  { %vm1043_vm10 = vcmp.lt.s32.totalorder %v1023_v17, 2  ;;  %v1052_v32 = vsel %vm1044_vm9, %v1035_v24, %v1051_v45  ;;  %v1054_v49 = vsel %vm1042_vm7, %v1032_v1, %v1035_v24  ;;  %v1117_v56 = vshrl.u32 %v1116_v27, 23 }
 0x155   :  { %v7494_v41 = vand.u32 2147483647, %v4291_v19  ;;  %v7495_v62 = vmov 0  ;;  %v4724_v57 = vsub.s32 %v864_v0, %v867_v50  ;;  %v1046_v31 = vsel %vm1042_vm7, %v1026_v52, %v1029_v55  ;;  %v4727_v34 = vpop.eup %4058 }
 0x156   :  { %v1053_v59 = vsel %vm1043_vm10, %v1050_v15, %v1052_v32  ;;  %v1055_v22 = vsel %vm1045_vm8, %v1041_v58, 1326507024  ;;  %7498 = vst [vmem:[#allocation22_spill] sm:$0xff] %v4727_v34  ;;  %v1048_v7 = vsel %vm1044_vm9, %v1032_v1, %v1047_v61  ;;  %v678_v27 = vand.u32 2147483647, %v4695_v6 }
 0x157   :  { %vm4720_vm11 = vcmp.le.f32.partialorder %v7494_v41, 0.7853982  ;;  %v1056_v23 = vsel %vm1044_vm9, %v1038_v40, %v1055_v22  ;;  %v4729_v8 = vmul.u32.u64.low %v1058_v48, %v1053_v59  ;;  %v4730_v45 = vmul.u32.u64.high %v1058_v48, %v1053_v59, %v4729_v8  ;;  %v4771_v22 = vpop.f32.mrf.mxu1 }
 0x158   :  { %v7496_v62 = vsel %vm4720_vm11, 4294967295, %v7495_v62  ;;  %v774_v24 = vshll.u32 %v4559_v43, %v4672_v35  ;;  %vm3816_vm14 = vcmp.lt.s32.totalorder %v3815_v11, 0  ;;  %v1057_v50 = vsel %vm1043_vm10, %v1054_v49, %v1056_v23  ;;  %7499 = vst [vmem:[#allocation23_spill] sm:$0xff] %v4771_v22 }
 0x159   :  { %7497 = vst [vmem:[#allocation21_spill] sm:$0xff] %v7496_v62  ;;  %v780_v52 = vor.u32 4788187, %v779_v20  ;;  %v4737_v0 = vmul.u32.u64.low %v1058_v48, %v1057_v50  ;;  %v4738_v55 = vmul.u32.u64.high %v1058_v48, %v1057_v50, %v4737_v0  ;;  %v3821_v58 = vadd.s32 4294967169, %v1117_v56 }
 0x15a   :  { %4060 = vsinq.f32 %v4665_v30  ;;  %v680_v1 = vcvt.s32.f32 %v4693_v51  ;;  %v870_v40 = vsub.s32 0, %v4724_v57  ;;  %v1049_v61 = vsel %vm1043_vm10, %v1046_v31, %v1048_v7 }
 0x15b   :  { %v776_v6 = vor.u32 %v775_v10, %v774_v24  ;;  %v4744_v15 = vsel %vm3816_vm14, 0, %v3815_v11  ;;  %v1068_v43 = vadd.s32 1, %v4730_v45  ;;  %v1123_v35 = vadd.s32 1, %v3821_v58 }
 0x15c   :  { %4062 = vcosq.f32 %v4690_v12  ;;  %v477_v30 = vsel %vm7322_vm6, %v476_v5, %v4675_v63  ;;  %v4753_v20 = vmul.f32 %v680_v1, %v678_v27  ;;  %v7280_v51 = vand.u32 2147483647, %v4701_v25 }
 0x15d   :  { %v781_v17 = vand.u32 2147483647, %v780_v52  ;;  %v1065_v32 = vmul.u32 %v1058_v48, %v1049_v61  ;;  %vm1067_vm15 = vc.u32 %v4738_v55, %v4729_v8  ;;  %vm1124_vm0 = vcmp.gt.s32.totalorder %v1123_v35, 0 }
 0x15e   :  { %4064 = vsinq.f32 %v4690_v12  ;;  %v983_v11 = vsub.s32 4294967266, %v4744_v15  ;;  %v3810_v10 = vmin.u32 %v870_v40, %v4724_v57  ;;  %v1069_v49 = vsel %vm1067_vm15, %v1068_v43, %v4730_v45 }
 0x15f   :  { %v4765_v63 = vsel %vm4720_vm11, %v4291_v19, %v477_v30  ;;  %v783_v5 = vcvt.s32.f32 %v776_v6  ;;  %v1070_v56 = vadd.s32 %v1069_v49, %v1065_v32  ;;  %v1125_v48 = vsel %vm1124_vm0, %v1123_v35, 0 }
 0x160   :  { %v963_v12 = vadd.s32 %v4561_v26, %v4573_v42  ;;  %v1127_v59 = vand.u32 31, %v1125_v48  ;;  %v979_v23 = vsub.s32 32, %v4744_v15  ;;  %v1120_v27 = vand.u32 8388607, %v7280_v51 }
 0x161   :  { %v4773_v7 = vmul.f32 %v783_v5, %v781_v17  ;;  %v1071_v45 = vadd.s32 536870912, %v1070_v56  ;;  %v984_v50 = vadd.s32 127, %v983_v11  ;;  %v872_v52 = vclz %v3810_v10 }
 0x162   :  { %v1128_v0 = vsub.s32 32, %v1127_v59  ;;  %v4782_v26 = vshrl.u32 %v1125_v48, 5  ;;  %v1130_v42 = vshll.u32 %v7281_v44, %v1127_v59  ;;  %v1322_v1 = vand.u32 2139095040, %v4771_v22 }
 0x163   :  { %v4780_v58 = vshrl.u32 %v1071_v45, 30  ;;  %v7501_v40 = vmov 2475754826   ;;  %v7502_v43 = vmov 2131351028   ;;  %v981_v5 = vshrl.u32 %v963_v12, %v979_v23 }
 0x164   :  { %v1131_v61 = vshrl.u32 %v7501_v40, %v1128_v0  ;;  %v1133_v6 = vshll.u32 %v7501_v40, %v1127_v59  ;;  %v1136_v35 = vshll.u32 %v7502_v43, %v1127_v59  ;;  %v7503_v30 = vmov 2102212464  }
 0x165   :  { %7500 = vst [vmem:[#allocation24_spill] sm:$0xff] %v4780_v58  ;;  %v1139_v17 = vshll.u32 %v7503_v30, %v1127_v59  ;;  %v1073_v32 = vshll.u32 %v4780_v58, 30  ;;  %v1134_v11 = vshrl.u32 %v7502_v43, %v1128_v0  ;;  %v1137_v10 = vshrl.u32 %v7503_v30, %v1128_v0 }
 0x166   :  { %v1140_v49 = vshrl.u32 %v7296_v54, %v1128_v0  ;;  %v1132_v48 = vor.u32 %v1131_v61, %v1130_v42  ;;  %v1142_v45 = vshll.u32 %v7296_v54, %v1127_v59  ;;  %v1143_v51 = vshrl.u32 %v7493_v37, %v1128_v0 }
 0x167   :  { %v4796_v31 = vpop.eup %4060  ;;  %vm7314_vm1 = vcmp.lt.s32.totalorder %v4298_v33, 0  ;;  %v4799_v24 = vsub.s32 %v1070_v56, %v1073_v32  ;;  %v1135_v41 = vor.u32 %v1134_v11, %v1133_v6  ;;  %v1138_v44 = vor.u32 %v1137_v10, %v1136_v35 }
 0x168   :  { %7504 = vst [vmem:[#allocation25_spill] sm:$0xff] %v4796_v31  ;;  %v1141_v13 = vor.u32 %v1140_v49, %v1139_v17  ;;  %v985_v46 = vshll.u32 %v984_v50, 23  ;;  %v1121_v34 = vor.u32 8388608, %v1120_v27  ;;  %v1144_v4 = vor.u32 %v1143_v51, %v1142_v45 }
 0x169   :  { %v1323_v2 = vshrl.u32 %v1322_v1, 23  ;;  %v4801_v14 = vpop.eup %4062  ;;  %v3811_v12 = vadd.s32 4294967294, %v872_v52  ;;  %v1076_v59 = vsub.s32 0, %v4799_v24  ;;  %vm1145_vm3 = vcmp.lt.s32.totalorder %v4782_v26, 1 }
 0x16a   :  { %7505 = vst [vmem:[#allocation26_spill] sm:$0xff] %v4801_v14  ;;  %vm1148_vm4 = vcmp.lt.s32.totalorder %v4782_v26, 4  ;;  %v7506_v23 = vand.u32 2147483647, %v4298_v33  ;;  %v7507_v56 = vmov 0  ;;  %vm703_vm7 = vcmp.lt.s32.totalorder %v4447_v47, 0 }
 0x16b   :  { %v7510_v27 = vmov 683565275   ;;  %vm1147_vm8 = vcmp.lt.s32.totalorder %v4782_v26, 3  ;;  %v1153_v50 = vsel %vm1145_vm3, %v1132_v48, %v1135_v41  ;;  %v1154_v52 = vsel %vm1148_vm4, %v1141_v13, 920167782  ;;  %v4817_v42 = vpop.eup %4064 }
 0x16c   :  { %vm4808_vm5 = vcmp.le.f32.partialorder %v7506_v23, 0.7853982  ;;  %v1129_v51 = vshrl.u32 %v7510_v27, %v1128_v0  ;;  %7511 = vst [vmem:[#allocation28_spill] sm:$0xff] %v4817_v42  ;;  %vm1146_vm9 = vcmp.lt.s32.totalorder %v4782_v26, 2  ;;  %v1150_v1 = vsel %vm1148_vm4, %v1138_v44, 2102212464 }
 0x16d   :  { %v7508_v56 = vsel %vm4808_vm5, 4294967295, %v7507_v56  ;;  %v1155_v61 = vsel %vm1147_vm8, %v1138_v44, %v1154_v52  ;;  %v1157_v6 = vsel %vm1145_vm3, %v1135_v41, %v1138_v44  ;;  %v1158_v35 = vsel %vm1148_vm4, %v1144_v4, 1326507024 }
 0x16e   :  { %7509 = vst [vmem:[#allocation27_spill] sm:$0xff] %v7508_v56  ;;  %v1156_v0 = vsel %vm1146_vm9, %v1153_v50, %v1155_v61  ;;  %v1161_v17 = vshll.u32 %v1121_v34, 8  ;;  %v3829_v32 = vadd.s32 4294967169, %v1323_v2  ;;  %vm3812_vm10 = vcmp.lt.s32.totalorder %v3811_v12, 0  ;;  %v4839_v2 = vpop.f32.mrf.mxu0 }
 0x16f   :  { %v3818_v11 = vmin.u32 %v1076_v59, %v4799_v24  ;;  %v1149_v10 = vsel %vm1145_vm3, %v1129_v51, %v1132_v48  ;;  %v1159_v49 = vsel %vm1147_vm8, %v1141_v13, %v1158_v35  ;;  %v1151_v45 = vsel %vm1147_vm8, %v1135_v41, %v1150_v1  ;;  %7512 = vst [vmem:[#allocation29_spill] sm:$0xff] %v4839_v2 }
 0x170   :  { %v1160_v44 = vsel %vm1146_vm9, %v1157_v6, %v1159_v49  ;;  %v4835_v23 = vmul.u32.u64.low %v1161_v17, %v1156_v0  ;;  %v4836_v50 = vmul.u32.u64.high %v1161_v17, %v1156_v0, %v4835_v23  ;;  %v986_v4 = vor.u32 4788187, %v985_v46 }
 0x171   :  { %v4841_v34 = vmul.u32.u64.low %v1161_v17, %v1160_v44  ;;  %v4842_v59 = vmul.u32.u64.high %v1161_v17, %v1160_v44, %v4841_v34  ;;  %v7289_v48 = vand.u32 2147483647, %v4771_v22  ;;  %4066 = vcosq.f32 %v4765_v63 }
 0x172   :  { %v7513_v13 = vxor.u32 2147483648, %v4753_v20  ;;  %v7514_v51 = vshll.u32 %v4644_v28, %v4744_v15  ;;  %v1329_v1 = vadd.s32 1, %v3829_v32  ;;  %v4855_v46 = vsel %vm3812_vm10, 0, %v3811_v12 }
 0x173   :  { %v1078_v61 = vclz %v3818_v11  ;;  %v1152_v6 = vsel %vm1146_vm9, %v1149_v10, %v1151_v45  ;;  %v1219_v0 = vand.u32 2139095040, %v4839_v2  ;;  %4068 = vsinq.f32 %v4765_v63 }
 0x174   :  { %v683_v41 = vsel %vm7314_vm1, %v7513_v13, %v4753_v20  ;;  %v982_v52 = vor.u32 %v981_v5, %v7514_v51  ;;  %v785_v35 = vxor.u32 2147483648, %v4773_v7  ;;  %v1171_v20 = vadd.s32 1, %v4836_v50 }
 0x175   :  { %vm1330_vm14 = vcmp.gt.s32.totalorder %v1329_v1, 0  ;;  %v4866_v28 = vsel %vm4808_vm5, %v4298_v33, %v683_v41  ;;  %v7515_v15 = vsub.s32 4, %v4547_v53  ;;  %v987_v5 = vand.u32 2147483647, %v986_v4 }
 0x176   :  { %v1326_v63 = vand.u32 8388607, %v7289_v48  ;;  %v880_v12 = vsub.s32 4294967266, %v4855_v46  ;;  %v1168_v32 = vmul.u32 %v1161_v17, %v1152_v6  ;;  %vm1170_vm15 = vc.u32 %v4842_v59, %v4835_v23 }
 0x177   :  { %v4873_v26 = vsel %vm703_vm7, %v7515_v15, %v4547_v53  ;;  %v1331_v11 = vsel %vm1330_vm14, %v1329_v1, 0  ;;  %v989_v10 = vcvt.s32.f32 %v982_v52  ;;  %v3819_v49 = vadd.s32 4294967294, %v1078_v61 }
 0x178   :  { %7516 = vst [vmem:[#allocation30_spill] sm:$0xff] %v4873_v26  ;;  %v1172_v45 = vsel %vm1170_vm15, %v1171_v20, %v4836_v50  ;;  %v1220_v44 = vshrl.u32 %v1219_v0, 23  ;;  %4070 = vcosq.f32 %v4866_v28  ;;  %v4885_v53 = vsel %vm703_vm7, %v785_v35, %v4773_v7 }
 0x179   :  { %v1173_v4 = vadd.s32 %v1172_v45, %v1168_v32  ;;  %v1333_v34 = vand.u32 31, %v1331_v11  ;;  %v4887_v13 = vmul.f32 %v989_v10, %v987_v5  ;;  %v860_v17 = vadd.s32 %v4647_v38, %v4655_v9 }
 0x17a   :  { %v876_v41 = vsub.s32 32, %v4855_v46  ;;  %v877_v50 = vshll.u32 %v4724_v57, %v4855_v46  ;;  %v881_v51 = vadd.s32 127, %v880_v12  ;;  %v1327_v1 = vor.u32 8388608, %v1326_v63 }
 0x17b   :  { %v1174_v52 = vadd.s32 536870912, %v1173_v4  ;;  %v1334_v61 = vsub.s32 32, %v1333_v34  ;;  %vm3820_vm0 = vcmp.lt.s32.totalorder %v3819_v49, 0  ;;  %v1332_v6 = vshrl.u32 %v1331_v11, 5 }
 0x17c   :  { %v1336_v7 = vshll.u32 %v7510_v27, %v1333_v34  ;;  %v3825_v0 = vadd.s32 4294967169, %v1220_v44  ;;  %v1339_v38 = vshll.u32 %v7501_v40, %v1333_v34  ;;  %v1342_v15 = vshll.u32 %v7502_v43, %v1333_v34 }
 0x17d   :  { %v4895_v35 = vshrl.u32 %v1174_v52, 30  ;;  %v1337_v20 = vshrl.u32 %v7501_v40, %v1334_v61  ;;  %v1340_v9 = vshrl.u32 %v7502_v43, %v1334_v61  ;;  %v1343_v57 = vshrl.u32 %v7503_v30, %v1334_v61 }
 0x17e   :  { %v1345_v46 = vshll.u32 %v7503_v30, %v1333_v34  ;;  %v1346_v5 = vshrl.u32 %v7296_v54, %v1334_v61  ;;  %v878_v63 = vshrl.u32 %v860_v17, %v876_v41  ;;  %v1348_v11 = vshll.u32 %v7296_v54, %v1333_v34  ;;  %v4905_v10 = vpop.eup %4066 }
 0x17f   :  { %v1338_v12 = vor.u32 %v1337_v20, %v1336_v7  ;;  %v1341_v32 = vor.u32 %v1340_v9, %v1339_v38  ;;  %7517 = vst [vmem:[#allocation31_spill] sm:$0xff] %v4905_v10  ;;  %v1176_v45 = vshll.u32 %v4895_v35, 30  ;;  %v1344_v44 = vor.u32 %v1343_v57, %v1342_v15 }
 0x180   :  { %v1347_v52 = vor.u32 %v1346_v5, %v1345_v46  ;;  %v1349_v48 = vshrl.u32 %v7493_v37, %v1334_v61  ;;  %v882_v14 = vshll.u32 %v881_v51, 23  ;;  %v4910_v42 = vsel %vm3820_vm0, 0, %v3819_v49  ;;  %v4912_v33 = vpop.eup %4068 }
 0x181   :  { %v1367_v31 = vshll.u32 %v1327_v1, 8  ;;  %v1226_v56 = vadd.s32 1, %v3825_v0  ;;  %7518 = vst [vmem:[#allocation32_spill] sm:$0xff] %v4912_v33  ;;  %v7519_v17 = vand.u32 2147483647, %v4447_v47  ;;  %v7520_v34 = vmov 0 }
 0x182   :  { %v1335_v41 = vshrl.u32 %v7510_v27, %v1334_v61  ;;  %v1350_v7 = vor.u32 %v1349_v48, %v1348_v11  ;;  %vm1351_vm4 = vcmp.lt.s32.totalorder %v1332_v6, 1  ;;  %vm1354_vm7 = vcmp.lt.s32.totalorder %v1332_v6, 4 }
 0x183   :  { %vm4916_vm3 = vcmp.le.f32.partialorder %v7519_v17, 0.7853982  ;;  %vm1353_vm8 = vcmp.lt.s32.totalorder %v1332_v6, 3  ;;  %v1356_v51 = vsel %vm1354_vm7, %v1344_v44, 2102212464  ;;  %v1359_v20 = vsel %vm1351_vm4, %v1338_v12, %v1341_v32 }
 0x184   :  { %v7521_v34 = vsel %vm4916_vm3, 4294967295, %v7520_v34  ;;  %v1360_v49 = vsel %vm1354_vm7, %v1347_v52, 920167782  ;;  %vm7328_vm9 = vcmp.lt.s32.totalorder %v4466_v39, 0  ;;  %v4922_v1 = vsub.s32 %v1173_v4, %v1176_v45 }
 0x185   :  { %7522 = vst [vmem:[#allocation33_spill] sm:$0xff] %v7521_v34  ;;  %vm1352_vm10 = vcmp.lt.s32.totalorder %v1332_v6, 2  ;;  %v1361_v0 = vsel %vm1353_vm8, %v1344_v44, %v1360_v49  ;;  %v1363_v38 = vsel %vm1351_vm4, %v1341_v32, %v1344_v44  ;;  %v883_v9 = vor.u32 4788187, %v882_v14  ;;  %v4925_v61 = vpop.eup %4070  ;;  %v4943_v49 = vpop.f32.mrf.mxu1 }
 0x186   :  { %v1355_v15 = vsel %vm1351_vm4, %v1335_v41, %v1338_v12  ;;  %v1362_v57 = vsel %vm1352_vm10, %v1359_v20, %v1361_v0  ;;  %v1364_v46 = vsel %vm1354_vm7, %v1350_v7, 1326507024  ;;  %7523 = vst [vmem:[#allocation34_spill] sm:$0xff] %v4925_v61  ;;  %v1357_v48 = vsel %vm1353_vm8, %v1341_v32, %v1356_v51  ;;  %7524 = vst [vmem:[#allocation35_spill] sm:$0xff] %v4943_v49 }
 0x187   :  { %v1365_v5 = vsel %vm1353_vm8, %v1347_v52, %v1364_v46  ;;  %v4927_v11 = vmul.u32.u64.low %v1367_v31, %v1362_v57  ;;  %v4928_v17 = vmul.u32.u64.high %v1367_v31, %v1362_v57, %v4927_v11  ;;  %v879_v54 = vor.u32 %v878_v63, %v877_v50 }
 0x188   :  { %v1086_v4 = vsub.s32 4294967266, %v4910_v42  ;;  %v1366_v45 = vsel %vm1352_vm10, %v1363_v38, %v1365_v5  ;;  %v7298_v44 = vand.u32 2147483647, %v4839_v2  ;;  %v1179_v14 = vsub.s32 0, %v4922_v1 }
 0x189   :  { %v4935_v12 = vmul.u32.u64.low %v1367_v31, %v1366_v45  ;;  %v4936_v41 = vmul.u32.u64.high %v1367_v31, %v1366_v45, %v4935_v12  ;;  %vm1227_vm14 = vcmp.gt.s32.totalorder %v1226_v56, 0  ;;  %4072 = vsinq.f32 %v4866_v28 }
 0x18a   :  { %v991_v32 = vxor.u32 2147483648, %v4887_v13  ;;  %v1358_v52 = vsel %vm1352_vm10, %v1355_v15, %v1357_v48  ;;  %v1228_v7 = vsel %vm1227_vm14, %v1226_v56, 0  ;;  %v884_v63 = vand.u32 2147483647, %v883_v9 }
 0x18b   :  { %v1377_v51 = vadd.s32 1, %v4928_v17  ;;  %v1230_v20 = vand.u32 31, %v1228_v7  ;;  %v4949_v0 = vsel %vm4916_vm3, %v4447_v47, %v4885_v53  ;;  %v886_v28 = vcvt.s32.f32 %v879_v54 }
 0x18c   :  { %v1087_v38 = vadd.s32 127, %v1086_v4  ;;  %v1223_v6 = vand.u32 8388607, %v7298_v44  ;;  %v3822_v56 = vmin.u32 %v1179_v14, %v4922_v1  ;;  %v1374_v15 = vmul.u32 %v1367_v31, %v1358_v52 }
 0x18d   :  { %vm1376_vm15 = vc.u32 %v4936_v41, %v4927_v11  ;;  %v1231_v9 = vsub.s32 32, %v1230_v20  ;;  %v4959_v57 = vsel %vm7328_vm9, %v991_v32, %v4887_v13  ;;  %v1066_v53 = vadd.s32 %v4729_v8, %v4738_v55 }
 0x18e   :  { %v1378_v54 = vsel %vm1376_vm15, %v1377_v51, %v4928_v17  ;;  %v1425_v46 = vand.u32 2139095040, %v4943_v49  ;;  %v4965_v48 = vmul.f32 %v886_v28, %v884_v63  ;;  %v1082_v31 = vsub.s32 32, %v4910_v42 }
 0x18f   :  { %v1083_v5 = vshll.u32 %v4799_v24, %v4910_v42  ;;  %v1379_v4 = vadd.s32 %v1378_v54, %v1374_v15  ;;  %v1088_v45 = vshll.u32 %v1087_v38, 23  ;;  %v1224_v14 = vor.u32 8388608, %v1223_v6 }
 0x190   :  { %v1234_v13 = vshrl.u32 %v7501_v40, %v1231_v9  ;;  %v1237_v12 = vshrl.u32 %v7502_v43, %v1231_v9  ;;  %v1181_v32 = vclz %v3822_v56  ;;  %v1239_v55 = vshll.u32 %v7502_v43, %v1230_v20 }
 0x191   :  { %v1380_v8 = vadd.s32 536870912, %v1379_v4  ;;  %v1240_v17 = vshrl.u32 %v7503_v30, %v1231_v9  ;;  %v1229_v52 = vshrl.u32 %v1228_v7, 5  ;;  %v1233_v63 = vshll.u32 %v7510_v27, %v1230_v20 }
 0x192   :  { %v1236_v51 = vshll.u32 %v7501_v40, %v1230_v20  ;;  %v1426_v28 = vshrl.u32 %v1425_v46, 23  ;;  %v1242_v38 = vshll.u32 %v7503_v30, %v1230_v20  ;;  %v7525_v6 = vmov 920167782  }
 0x193   :  { %v4976_v24 = vshrl.u32 %v1380_v8, 30  ;;  %v1241_v42 = vor.u32 %v1240_v17, %v1239_v55  ;;  %v1243_v15 = vshrl.u32 %v7525_v6, %v1231_v9  ;;  %v1235_v54 = vor.u32 %v1234_v13, %v1233_v63 }
 0x194   :  { %v1238_v56 = vor.u32 %v1237_v12, %v1236_v51  ;;  %v1245_v44 = vshll.u32 %v7525_v6, %v1230_v20  ;;  %v1246_v50 = vshrl.u32 %v7493_v37, %v1231_v9  ;;  %v1084_v61 = vshrl.u32 %v1066_v53, %v1082_v31 }
 0x195   :  { %v1382_v7 = vshll.u32 %v4976_v24, 30  ;;  %v1244_v18 = vor.u32 %v1243_v15, %v1242_v38  ;;  %v1264_v3 = vshll.u32 %v1224_v14, 8  ;;  %v7526_v46 = vand.u32 2147483647, %v4466_v39 }
 0x196   :  { %v7527_v8 = vmov 0  ;;  %v1089_v55 = vor.u32 4788187, %v1088_v45  ;;  %v3823_v17 = vadd.s32 4294967294, %v1181_v32  ;;  %v1247_v10 = vor.u32 %v1246_v50, %v1245_v44  ;;  %v4989_v13 = vpop.eup %4072 }
 0x197   :  { %vm4985_vm0 = vcmp.le.f32.partialorder %v7526_v46, 0.7853982  ;;  %vm1251_vm4 = vcmp.lt.s32.totalorder %v1229_v52, 4  ;;  %7530 = vst [vmem:[#allocation37_spill] sm:$0xff] %v4989_v13  ;;  %vm7327_vm7 = vcmp.lt.s32.totalorder %v4538_v21, 0  ;;  %v4992_v20 = vsub.s32 %v1379_v4, %v1382_v7 }
 0x198   :  { %v7528_v8 = vsel %vm4985_vm0, 4294967295, %v7527_v8  ;;  %vm1248_vm8 = vcmp.lt.s32.totalorder %v1229_v52, 1  ;;  %v1253_v53 = vsel %vm1251_vm4, %v1241_v42, 2102212464  ;;  %v3833_v31 = vadd.s32 4294967169, %v1426_v28 }
 0x199   :  { %7529 = vst [vmem:[#allocation36_spill] sm:$0xff] %v7528_v8  ;;  %v1232_v14 = vshrl.u32 %v7510_v27, %v1231_v9  ;;  %vm1250_vm10 = vcmp.lt.s32.totalorder %v1229_v52, 3  ;;  %v1256_v12 = vsel %vm1248_vm8, %v1235_v54, %v1238_v56  ;;  %v1257_v63 = vsel %vm1251_vm4, %v1244_v18, 920167782 }
 0x19a   :  { %v1385_v45 = vsub.s32 0, %v4992_v20  ;;  %vm1249_vm14 = vcmp.lt.s32.totalorder %v1229_v52, 2  ;;  %v1258_v44 = vsel %vm1250_vm10, %v1241_v42, %v1257_v63  ;;  %v1260_v50 = vsel %vm1248_vm8, %v1238_v56, %v1241_v42 }
 0x19b   :  { %v7531_v32 = vand.u32 2147483647, %v4538_v21  ;;  %v7532_v4 = vmov 0  ;;  %v1252_v51 = vsel %vm1248_vm8, %v1232_v14, %v1235_v54  ;;  %v1254_v38 = vsel %vm1250_vm10, %v1238_v56, %v1253_v53 }
 0x19c   :  { %v1259_v28 = vsel %vm1249_vm14, %v1256_v12, %v1258_v44  ;;  %v1261_v9 = vsel %vm1251_vm4, %v1247_v10, 1326507024  ;;  %v3830_v15 = vmin.u32 %v1385_v45, %v4992_v20  ;;  %v888_v42 = vxor.u32 2147483648, %v4965_v48  ;;  %v5032_v44 = vpop.f32.mrf.mxu0 }
 0x19d   :  { %vm5000_vm15 = vcmp.le.f32.partialorder %v7531_v32, 0.7853982  ;;  %v1262_v7 = vsel %vm1250_vm10, %v1244_v18, %v1261_v9  ;;  %v5007_v46 = vmul.u32.u64.low %v1264_v3, %v1259_v28  ;;  %v5008_v13 = vmul.u32.u64.high %v1264_v3, %v1259_v28, %v5007_v46  ;;  %7535 = vst [vmem:[#allocation39_spill] sm:$0xff] %v5032_v44 }
 0x19e   :  { %v7533_v4 = vsel %vm5000_vm15, 4294967295, %v7532_v4  ;;  %v1263_v63 = vsel %vm1249_vm14, %v1260_v50, %v1262_v7  ;;  %v7307_v32 = vand.u32 2147483647, %v4943_v49  ;;  %v1432_v62 = vadd.s32 1, %v3833_v31 }
 0x19f   :  { %7534 = vst [vmem:[#allocation38_spill] sm:$0xff] %v7533_v4  ;;  %4074 = vcosq.f32 %v4949_v0  ;;  %v1085_v54 = vor.u32 %v1084_v61, %v1083_v5  ;;  %v5015_v56 = vmul.u32.u64.low %v1264_v3, %v1263_v63  ;;  %v5016_v53 = vmul.u32.u64.high %v1264_v3, %v1263_v63, %v5015_v56 }
 0x1a0   :  { %vm3824_vm4 = vcmp.lt.s32.totalorder %v3823_v17, 0  ;;  %v1387_v10 = vclz %v3830_v15  ;;  %v1255_v18 = vsel %vm1249_vm14, %v1252_v51, %v1254_v38  ;;  %vm1433_vm8 = vcmp.gt.s32.totalorder %v1432_v62, 0 }
 0x1a1   :  { %v5023_v14 = vsel %vm4985_vm0, %v4466_v39, %v4959_v57  ;;  %v1090_v12 = vand.u32 2147483647, %v1089_v55  ;;  %v1274_v31 = vadd.s32 1, %v5008_v13  ;;  %v1434_v45 = vsel %vm1433_vm8, %v1432_v62, 0 }
 0x1a2   :  { %4076 = vsinq.f32 %v4949_v0  ;;  %v889_v61 = vsel %vm7327_vm7, %v888_v42, %v4965_v48  ;;  %v1429_v5 = vand.u32 8388607, %v7307_v32  ;;  %v1436_v52 = vand.u32 31, %v1434_v45 }
 0x1a3   :  { %v1092_v50 = vcvt.s32.f32 %v1085_v54  ;;  %v5034_v51 = vsel %vm3824_vm4, 0, %v3823_v17  ;;  %v1271_v57 = vmul.u32 %v1264_v3, %v1255_v18  ;;  %vm1273_vm10 = vc.u32 %v5016_v53, %v5007_v46 }
 0x1a4   :  { %4078 = vcosq.f32 %v5023_v14  ;;  %v3831_v62 = vadd.s32 4294967294, %v1387_v10  ;;  %v1275_v0 = vsel %vm1273_vm10, %v1274_v31, %v5008_v13  ;;  %v1437_v55 = vsub.s32 32, %v1436_v52 }
 0x1a5   :  { %v5043_v48 = vsel %vm5000_vm15, %v4538_v21, %v889_v61  ;;  %v5045_v38 = vmul.f32 %v1092_v50, %v1090_v12  ;;  %v1276_v28 = vadd.s32 %v1275_v0, %v1271_v57  ;;  %v1189_v3 = vsub.s32 4294967266, %v5034_v51 }
 0x1a6   :  { %v1430_v9 = vor.u32 8388608, %v1429_v5  ;;  %v1440_v15 = vshrl.u32 %v7501_v40, %v1437_v55  ;;  %v1443_v7 = vshrl.u32 %v7502_v43, %v1437_v55  ;;  %v1435_v13 = vshrl.u32 %v1434_v45, 5 }
 0x1a7   :  { %v1277_v42 = vadd.s32 536870912, %v1276_v28  ;;  %v1439_v63 = vshll.u32 %v7510_v27, %v1436_v52  ;;  %v1528_v54 = vand.u32 2139095040, %v5032_v44  ;;  %vm3832_vm14 = vcmp.lt.s32.totalorder %v3831_v62, 0 }
 0x1a8   :  { %v1442_v56 = vshll.u32 %v7501_v40, %v1436_v52  ;;  %v1445_v10 = vshll.u32 %v7502_v43, %v1436_v52  ;;  %v1446_v18 = vshrl.u32 %v7503_v30, %v1437_v55  ;;  %v1448_v61 = vshll.u32 %v7503_v30, %v1436_v52 }
 0x1a9   :  { %v5056_v12 = vshrl.u32 %v1277_v42, 30  ;;  %v1441_v31 = vor.u32 %v1440_v15, %v1439_v63  ;;  %v1449_v5 = vshrl.u32 %v7525_v6, %v1437_v55  ;;  %v1451_v57 = vshll.u32 %v7525_v6, %v1436_v52 }
 0x1aa   :  { %v1444_v50 = vor.u32 %v1443_v7, %v1442_v56  ;;  %v1447_v45 = vor.u32 %v1446_v18, %v1445_v10  ;;  %v1452_v0 = vshrl.u32 %v7493_v37, %v1437_v55  ;;  %v1185_v32 = vsub.s32 32, %v5034_v51 }
 0x1ab   :  { %7536 = vst [vmem:[#allocation40_spill] sm:$0xff] %v5056_v12  ;;  %v1190_v17 = vadd.s32 127, %v1189_v3  ;;  %v1279_v33 = vshll.u32 %v5056_v12, 30  ;;  %v1450_v19 = vor.u32 %v1449_v5, %v1448_v61  ;;  %v5067_v15 = vsel %vm3832_vm14, 0, %v3831_v62 }
 0x1ac   :  { %v5064_v60 = vpop.eup %4074  ;;  %v1453_v42 = vor.u32 %v1452_v0, %v1451_v57  ;;  %v1470_v63 = vshll.u32 %v1430_v9, 8  ;;  %v1529_v8 = vshrl.u32 %v1528_v54, 23  ;;  %v1438_v52 = vshrl.u32 %v7510_v27, %v1437_v55 }
 0x1ad   :  { %7537 = vst [vmem:[#allocation41_spill] sm:$0xff] %v5064_v60  ;;  %v5069_v7 = vsub.s32 %v1276_v28, %v1279_v33  ;;  %vm1454_vm4 = vcmp.lt.s32.totalorder %v1435_v13, 1  ;;  %vm1457_vm8 = vcmp.lt.s32.totalorder %v1435_v13, 4  ;;  %vm7326_vm10 = vcmp.lt.s32.totalorder %v4607_v29, 0 }
 0x1ae   :  { %vm1456_vm1 = vcmp.lt.s32.totalorder %v1435_v13, 3  ;;  %v1459_v3 = vsel %vm1457_vm8, %v1447_v45, 2102212464  ;;  %v1462_v56 = vsel %vm1454_vm4, %v1441_v31, %v1444_v50  ;;  %v1463_v10 = vsel %vm1457_vm8, %v1450_v19, 920167782 }
 0x1af   :  { %v5074_v18 = vpop.eup %4076  ;;  %v1282_v62 = vsub.s32 0, %v5069_v7  ;;  %vm1455_vm14 = vcmp.lt.s32.totalorder %v1435_v13, 2  ;;  %v1464_v9 = vsel %vm1456_vm1, %v1447_v45, %v1463_v10  ;;  %v1466_v33 = vsel %vm1454_vm4, %v1444_v50, %v1447_v45 }
 0x1b0   :  { %7538 = vst [vmem:[#allocation42_spill] sm:$0xff] %v5074_v18  ;;  %v1395_v55 = vsub.s32 4294967266, %v5067_v15  ;;  %v1465_v28 = vsel %vm1455_vm14, %v1462_v56, %v1464_v9  ;;  %v1467_v54 = vsel %vm1457_vm8, %v1453_v42, 1326507024  ;;  %v3837_v61 = vadd.s32 4294967169, %v1529_v8 }
 0x1b1   :  { %v5081_v5 = vpop.eup %4078  ;;  %v3826_v57 = vmin.u32 %v1282_v62, %v5069_v7  ;;  %v1458_v0 = vsel %vm1454_vm4, %v1438_v52, %v1441_v31  ;;  %v1460_v60 = vsel %vm1456_vm1, %v1444_v50, %v1459_v3  ;;  %v1468_v18 = vsel %vm1456_vm1, %v1450_v19, %v1467_v54 }
 0x1b2   :  { %7539 = vst [vmem:[#allocation43_spill] sm:$0xff] %v5081_v5  ;;  %v1469_v10 = vsel %vm1455_vm14, %v1466_v33, %v1468_v18  ;;  %v5088_v47 = vmul.u32.u64.low %v1470_v63, %v1465_v28  ;;  %v5089_v45 = vmul.u32.u64.high %v1470_v63, %v1465_v28, %v5088_v47  ;;  %v1535_v34 = vadd.s32 1, %v3837_v61  ;;  %v5116_v28 = vpop.f32.mrf.mxu1 }
 0x1b3   :  { %v1094_v42 = vxor.u32 2147483648, %v5045_v38  ;;  %v1169_v8 = vadd.s32 %v4835_v23, %v4842_v59  ;;  %v5095_v56 = vmul.u32.u64.low %v1470_v63, %v1469_v10  ;;  %v5096_v62 = vmul.u32.u64.high %v1470_v63, %v1469_v10, %v5095_v56  ;;  %7541 = vst [vmem:[#allocation44_spill] sm:$0xff] %v5116_v28 }
 0x1b4   :  { %4080 = vsinq.f32 %v5023_v14  ;;  %v1284_v31 = vclz %v3826_v57  ;;  %v1461_v19 = vsel %vm1455_vm14, %v1458_v0, %v1460_v60  ;;  %vm1536_vm1 = vcmp.gt.s32.totalorder %v1535_v34, 0 }
 0x1b5   :  { %v1187_v50 = vshrl.u32 %v1169_v8, %v1185_v32  ;;  %v1191_v52 = vshll.u32 %v1190_v17, 23  ;;  %v7540_v3 = vand.u32 2147483647, %v5032_v44  ;;  %v1537_v9 = vsel %vm1536_vm1, %v1535_v34, 0 }
 0x1b6   :  { %4082 = vcosq.f32 %v5043_v48  ;;  %v1396_v33 = vadd.s32 127, %v1395_v55  ;;  %v1480_v23 = vadd.s32 1, %v5089_v45  ;;  %v1539_v59 = vand.u32 31, %v1537_v9 }
 0x1b7   :  { %v1532_v18 = vand.u32 8388607, %v7540_v3  ;;  %v5107_v14 = vsel %vm7326_vm10, %v1094_v42, %v5045_v38  ;;  %v1186_v60 = vshll.u32 %v4922_v1, %v5034_v51  ;;  %v1477_v32 = vmul.u32 %v1470_v63, %v1461_v19 }
 0x1b8   :  { %vm1479_vm4 = vc.u32 %v5096_v62, %v5088_v47  ;;  %v1375_v34 = vadd.s32 %v4927_v11, %v4936_v41  ;;  %v3827_v17 = vadd.s32 4294967294, %v1284_v31  ;;  %v1540_v55 = vsub.s32 32, %v1539_v59 }
 0x1b9   :  { %v1481_v13 = vsel %vm1479_vm4, %v1480_v23, %v5089_v45  ;;  %v5118_v54 = vor.u32 %v1187_v50, %v1186_v60  ;;  %v5120_v38 = vor.u32 4788187, %v1191_v52  ;;  %v1533_v57 = vor.u32 8388608, %v1532_v18 }
 0x1ba   :  { %v1482_v61 = vadd.s32 %v1481_v13, %v1477_v32  ;;  %v1391_v1 = vsub.s32 32, %v5067_v15  ;;  %v1397_v51 = vshll.u32 %v1396_v33, 23  ;;  %v1543_v63 = vshrl.u32 %v7501_v40, %v1540_v55 }
 0x1bb   :  { %v1546_v0 = vshrl.u32 %v7502_v43, %v1540_v55  ;;  %v1538_v41 = vshrl.u32 %v1537_v9, 5  ;;  %v1542_v10 = vshll.u32 %v7510_v27, %v1539_v59  ;;  %v1734_v45 = vand.u32 2139095040, %v5116_v28 }
 0x1bc   :  { %v1483_v11 = vadd.s32 536870912, %v1482_v61  ;;  %vm3828_vm8 = vcmp.lt.s32.totalorder %v3827_v17, 0  ;;  %v1545_v42 = vshll.u32 %v7501_v40, %v1539_v59  ;;  %v1548_v8 = vshll.u32 %v7502_v43, %v1539_v59 }
 0x1bd   :  { %v1549_v56 = vshrl.u32 %v7503_v30, %v1540_v55  ;;  %v1544_v19 = vor.u32 %v1543_v63, %v1542_v10  ;;  %v1551_v50 = vshll.u32 %v7503_v30, %v1539_v59  ;;  %v1552_v52 = vshrl.u32 %v7525_v6, %v1540_v55 }
 0x1be   :  { %v5130_v31 = vshrl.u32 %v1483_v11, 30  ;;  %v1547_v3 = vor.u32 %v1546_v0, %v1545_v42  ;;  %v1554_v9 = vshll.u32 %v7525_v6, %v1539_v59  ;;  %v1555_v33 = vshrl.u32 %v7493_v37, %v1540_v55 }
 0x1bf   :  { %v1550_v18 = vor.u32 %v1549_v56, %v1548_v8  ;;  %v7543_v23 = vand.u32 2147483647, %v4607_v29  ;;  %v7544_v60 = vmov 0  ;;  %v1392_v32 = vshll.u32 %v4992_v20, %v5067_v15 }
 0x1c0   :  { %7542 = vst [vmem:[#allocation45_spill] sm:$0xff] %v5130_v31  ;;  %v1393_v13 = vshrl.u32 %v1375_v34, %v1391_v1  ;;  %v1485_v63 = vshll.u32 %v5130_v31, 30  ;;  %v1553_v11 = vor.u32 %v1552_v52, %v1551_v50  ;;  %v1398_v10 = vor.u32 4788187, %v1397_v51 }
 0x1c1   :  { %vm5138_vm14 = vcmp.le.f32.partialorder %v7543_v23, 0.7853982  ;;  %v1556_v0 = vor.u32 %v1555_v33, %v1554_v9  ;;  %v1573_v42 = vshll.u32 %v1533_v57, 8  ;;  %v1735_v8 = vshrl.u32 %v1734_v45, 23  ;;  %v5145_v59 = vpop.eup %4080 }
 0x1c2   :  { %v7545_v60 = vsel %vm5138_vm14, 4294967295, %v7544_v60  ;;  %7547 = vst [vmem:[#allocation47_spill] sm:$0xff] %v5145_v59  ;;  %v5148_v56 = vsel %vm3828_vm8, 0, %v3827_v17  ;;  %v5150_v23 = vsub.s32 %v1482_v61, %v1485_v63  ;;  %vm1557_vm1 = vcmp.lt.s32.totalorder %v1538_v41, 1 }
 0x1c3   :  { %7546 = vst [vmem:[#allocation46_spill] sm:$0xff] %v7545_v60  ;;  %vm1560_vm4 = vcmp.lt.s32.totalorder %v1538_v41, 4  ;;  %vm1559_vm13 = vcmp.lt.s32.totalorder %v1538_v41, 3  ;;  %v1565_v20 = vsel %vm1557_vm1, %v1544_v19, %v1547_v3  ;;  %v5153_v34 = vpop.eup %4082  ;;  %v1541_v1 = vshrl.u32 %v7510_v27, %v1540_v55 }
 0x1c4   :  { %v1562_v5 = vsel %vm1560_vm4, %v1550_v18, 2102212464  ;;  %v1566_v15 = vsel %vm1560_vm4, %v1553_v11, 920167782  ;;  %7548 = vst [vmem:[#allocation48_spill] sm:$0xff] %v5153_v34  ;;  %vm1558_vm6 = vcmp.lt.s32.totalorder %v1538_v41, 2  ;;  %v1569_v51 = vsel %vm1557_vm1, %v1547_v3, %v1550_v18 }
 0x1c5   :  { %v1567_v57 = vsel %vm1559_vm13, %v1550_v18, %v1566_v15  ;;  %v1488_v17 = vsub.s32 0, %v5150_v23  ;;  %v1570_v45 = vsel %vm1560_vm4, %v1556_v0, 1326507024  ;;  %v3845_v50 = vadd.s32 4294967169, %v1735_v8 }
 0x1c6   :  { %v1568_v61 = vsel %vm1558_vm6, %v1565_v20, %v1567_v57  ;;  %v1292_v52 = vsub.s32 4294967266, %v5148_v56  ;;  %v1561_v9 = vsel %vm1557_vm1, %v1541_v1, %v1544_v19  ;;  %v1563_v33 = vsel %vm1559_vm13, %v1547_v3, %v1562_v5 }
 0x1c7   :  { %v1571_v63 = vsel %vm1559_vm13, %v1553_v11, %v1570_v45  ;;  %v5165_v59 = vmul.u32.u64.low %v1573_v42, %v1568_v61  ;;  %v5166_v15 = vmul.u32.u64.high %v1573_v42, %v1568_v61, %v5165_v59  ;;  %v1741_v18 = vadd.s32 1, %v3845_v50 }
 0x1c8   :  { %v1572_v55 = vsel %vm1558_vm6, %v1569_v51, %v1571_v63  ;;  %v1394_v26 = vor.u32 %v1393_v13, %v1392_v32  ;;  %v7329_v0 = vand.u32 2147483647, %v5116_v28  ;;  %v5177_v5 = vsel %vm5138_vm14, %v4607_v29, %v5107_v14 }
 0x1c9   :  { %v5169_v58 = vmul.u32.u64.low %v1573_v42, %v1572_v55  ;;  %v5170_v20 = vmul.u32.u64.high %v1573_v42, %v1572_v55, %v5169_v58  ;;  %v3834_v19 = vmin.u32 %v1488_v17, %v5150_v23  ;;  %v1564_v3 = vsel %vm1558_vm6, %v1561_v9, %v1563_v33 }
 0x1ca   :  { %vm1742_vm13 = vcmp.gt.s32.totalorder %v1741_v18, 0  ;;  %v1193_v11 = vand.u32 2147483647, %v5120_v38  ;;  %v1195_v32 = vcvt.s32.f32 %v5118_v54  ;;  %v1399_v13 = vand.u32 2147483647, %v1398_v10 }
 0x1cb   :  { %v1743_v8 = vsel %vm1742_vm13, %v1741_v18, 0  ;;  %v1288_v58 = vsub.s32 32, %v5148_v56  ;;  %v1293_v1 = vadd.s32 127, %v1292_v52  ;;  %v1583_v57 = vadd.s32 1, %v5166_v15 }
 0x1cc   :  { %v1745_v51 = vand.u32 31, %v1743_v8  ;;  %v1401_v61 = vcvt.s32.f32 %v1394_v26  ;;  %v1580_v14 = vmul.u32 %v1573_v42, %v1564_v3  ;;  %vm1582_vm8 = vc.u32 %v5170_v20, %v5165_v59 }
 0x1cd   :  { %v1738_v41 = vand.u32 8388607, %v7329_v0  ;;  %v1272_v38 = vadd.s32 %v5007_v46, %v5016_v53  ;;  %v1490_v54 = vclz %v3834_v19  ;;  %v1584_v10 = vsel %vm1582_vm8, %v1583_v57, %v5166_v15 }
 0x1ce   :  { %v1746_v17 = vsub.s32 32, %v1745_v51  ;;  %v5192_v45 = vmul.f32 %v1195_v32, %v1193_v11  ;;  %v5194_v50 = vmul.f32 %v1401_v61, %v1399_v13  ;;  %v1289_v26 = vshll.u32 %v5069_v7, %v5148_v56 }
 0x1cf   :  { %v1585_v42 = vadd.s32 %v1584_v10, %v1580_v14  ;;  %v1290_v52 = vshrl.u32 %v1272_v38, %v1288_v58  ;;  %v1294_v9 = vshll.u32 %v1293_v1, 23  ;;  %v1739_v46 = vor.u32 8388608, %v1738_v41 }
 0x1d0   :  { %v1749_v33 = vshrl.u32 %v7501_v40, %v1746_v17  ;;  %v1752_v63 = vshrl.u32 %v7502_v43, %v1746_v17  ;;  %v1748_v53 = vshll.u32 %v7510_v27, %v1745_v51  ;;  %v1751_v15 = vshll.u32 %v7501_v40, %v1745_v51 }
 0x1d1   :  { %v1586_v55 = vadd.s32 536870912, %v1585_v42  ;;  %v3835_v18 = vadd.s32 4294967294, %v1490_v54  ;;  %v1744_v19 = vshrl.u32 %v1743_v8, 5  ;;  %v1754_v3 = vshll.u32 %v7502_v43, %v1745_v51 }
 0x1d2   :  { %v1755_v11 = vshrl.u32 %v7503_v30, %v1746_v17  ;;  %v1750_v56 = vor.u32 %v1749_v33, %v1748_v53  ;;  %v1753_v32 = vor.u32 %v1752_v63, %v1751_v15  ;;  %v1758_v13 = vshrl.u32 %v7525_v6, %v1746_v17 }
 0x1d3   :  { %v5204_v7 = vshrl.u32 %v1586_v55, 30  ;;  %v1757_v1 = vshll.u32 %v7503_v30, %v1745_v51  ;;  %v1760_v57 = vshll.u32 %v7525_v6, %v1745_v51  ;;  %v1761_v61 = vshrl.u32 %v7493_v37, %v1746_v17 }
 0x1d4   :  { %v1756_v58 = vor.u32 %v1755_v11, %v1754_v3  ;;  %v1197_v14 = vxor.u32 2147483648, %v5192_v45  ;;  %v1403_v8 = vxor.u32 2147483648, %v5194_v50  ;;  %v1291_v41 = vor.u32 %v1290_v52, %v1289_v26 }
 0x1d5   :  { %v1588_v38 = vshll.u32 %v5204_v7, 30  ;;  %vm7344_vm6 = vcmp.lt.s32.totalorder %v4701_v25, 0  ;;  %v1295_v54 = vor.u32 4788187, %v1294_v9  ;;  %vm3836_vm1 = vcmp.lt.s32.totalorder %v3835_v18, 0 }
 0x1d6   :  { %v1759_v10 = vor.u32 %v1758_v13, %v1757_v1  ;;  %v1762_v33 = vor.u32 %v1761_v61, %v1760_v57  ;;  %vm1763_vm13 = vcmp.lt.s32.totalorder %v1744_v19, 1  ;;  %vm1766_vm8 = vcmp.lt.s32.totalorder %v1744_v19, 4 }
 0x1d7   :  { %v5215_v63 = vsub.s32 %v1585_v42, %v1588_v38  ;;  %v1779_v51 = vshll.u32 %v1739_v46, 8  ;;  %vm1765_vm10 = vcmp.lt.s32.totalorder %v1744_v19, 3  ;;  %v1768_v55 = vsel %vm1766_vm8, %v1756_v58, 2102212464 }
 0x1d8   :  { %v1771_v53 = vsel %vm1763_vm13, %v1750_v56, %v1753_v32  ;;  %v1772_v26 = vsel %vm1766_vm8, %v1759_v10, 920167782  ;;  %v1747_v15 = vshrl.u32 %v7510_v27, %v1746_v17  ;;  %vm1764_vm7 = vcmp.lt.s32.totalorder %v1744_v19, 2 }
 0x1d9   :  { %v1591_v52 = vsub.s32 0, %v5215_v63  ;;  %v1773_v9 = vsel %vm1765_vm10, %v1756_v58, %v1772_v26  ;;  %v7549_v3 = vand.u32 2147483647, %v4701_v25  ;;  %v7550_v42 = vmov 0 }
 0x1da   :  { %v1493_v46 = vsel %vm3836_vm1, 0, %v3835_v18  ;;  %v1774_v11 = vsel %vm1764_vm7, %v1771_v53, %v1773_v9  ;;  %v1775_v13 = vsel %vm1763_vm13, %v1753_v32, %v1756_v58  ;;  %v1776_v1 = vsel %vm1766_vm8, %v1762_v33, 1326507024  ;;  %v5240_v18 = vpop.f32.mrf.mxu0 }
 0x1db   :  { %vm5223_vm9 = vcmp.le.f32.partialorder %v7549_v3, 0.7853982  ;;  %v7553_v57 = vand.u32 2147483647, %v4771_v22  ;;  %v7554_v17 = vmov 0  ;;  %v3838_v61 = vmin.u32 %v1591_v52, %v5215_v63  ;;  %7557 = vst [vmem:[#allocation51_spill] sm:$0xff] %v5240_v18 }
 0x1dc   :  { %v7551_v42 = vsel %vm5223_vm9, 4294967295, %v7550_v42  ;;  %v1767_v38 = vsel %vm1763_vm13, %v1747_v15, %v1750_v56  ;;  %v1769_v26 = vsel %vm1765_vm10, %v1753_v32, %v1768_v55  ;;  %v1777_v3 = vsel %vm1765_vm10, %v1759_v10, %v1776_v1  ;;  %v5259_v15 = vpop.f32.mrf.mxu1 }
 0x1dd   :  { %7552 = vst [vmem:[#allocation49_spill] sm:$0xff] %v7551_v42  ;;  %vm5232_vm4 = vcmp.le.f32.partialorder %v7553_v57, 0.7853982  ;;  %v1296_v53 = vand.u32 2147483647, %v1295_v54  ;;  %v1778_v58 = vsel %vm1764_vm7, %v1775_v13, %v1777_v3  ;;  %v1494_v57 = vsub.s32 32, %v1493_v46 }
 0x1de   :  { %v7555_v17 = vsel %vm5232_vm4, 4294967295, %v7554_v17  ;;  %v5243_v33 = vmul.u32.u64.low %v1779_v51, %v1774_v11  ;;  %v5244_v9 = vmul.u32.u64.high %v1779_v51, %v1774_v11, %v5243_v33  ;;  %v1498_v0 = vsub.s32 4294967266, %v1493_v46  ;;  %7558 = vst [vmem:[#allocation52_spill] sm:$0xff] %v5259_v15 }
 0x1df   :  { %7556 = vst [vmem:[#allocation50_spill] sm:$0xff] %v7555_v17  ;;  %v5247_v60 = vmul.u32.u64.low %v1779_v51, %v1778_v58  ;;  %v5248_v29 = vmul.u32.u64.high %v1779_v51, %v1778_v58, %v5247_v60  ;;  %4084 = vsinq.f32 %v5043_v48  ;;  %v1298_v56 = vcvt.s32.f32 %v1291_v41 }
 0x1e0   :  { %v1770_v32 = vsel %vm1764_vm7, %v1767_v38, %v1769_v26  ;;  %v1631_v10 = vand.u32 2139095040, %v5240_v18  ;;  %4086 = vcosq.f32 %v5177_v5  ;;  %v1198_v54 = vsel %vm7344_vm6, %v1197_v14, %v5192_v45 }
 0x1e1   :  { %v1478_v55 = vadd.s32 %v5088_v47, %v5096_v62  ;;  %v1593_v52 = vclz %v3838_v61  ;;  %vm7559_vm10 = vcmp.lt.s32.totalorder %v4771_v22, 0  ;;  %v1299_v60 = vmul.f32 %v1298_v56, %v1296_v53 }
 0x1e2   :  { %v1404_v48 = vsel %vm7559_vm10, %v1403_v8, %v5194_v50  ;;  %v1789_v19 = vadd.s32 1, %v5244_v9  ;;  %v1632_v41 = vshrl.u32 %v1631_v10, 23  ;;  %v1499_v13 = vadd.s32 127, %v1498_v0 }
 0x1e3   :  { %v1496_v11 = vshrl.u32 %v1478_v55, %v1494_v57  ;;  %v1786_v1 = vmul.u32 %v1779_v51, %v1770_v32  ;;  %vm1788_vm7 = vc.u32 %v5248_v29, %v5243_v33  ;;  %v7333_v47 = vand.u32 2147483647, %v5240_v18 }
 0x1e4   :  { %v1790_v45 = vsel %vm1788_vm7, %v1789_v19, %v5244_v9  ;;  %v3841_v62 = vadd.s32 4294967169, %v1632_v41  ;;  %v1837_v14 = vand.u32 2139095040, %v5259_v15  ;;  %v1201_v50 = vsel %vm5223_vm9, %v4701_v25, %v1198_v54 }
 0x1e5   :  { %v1495_v8 = vshll.u32 %v5150_v23, %v1493_v46  ;;  %v3839_v61 = vadd.s32 4294967294, %v1593_v52  ;;  %v1791_v38 = vadd.s32 %v1790_v45, %v1786_v1  ;;  %v7560_v0 = vsub.s32 4, %v4617_v36 }
 0x1e6   :  { %vm7561_vm1 = vcmp.lt.s32.totalorder %v4466_v39, 0  ;;  %4088 = vsinq.f32 %v5177_v5  ;;  %v5285_v26 = vsel %vm5232_vm4, %v4771_v22, %v1404_v48  ;;  %v1638_v3 = vadd.s32 1, %v3841_v62 }
 0x1e7   :  { %v5279_v51 = vsel %vm7561_vm1, %v7560_v0, %v4617_v36  ;;  %v1300_v53 = vxor.u32 2147483648, %v1299_v60  ;;  %v5287_v58 = vor.u32 %v1496_v11, %v1495_v8  ;;  %v1500_v23 = vshll.u32 %v1499_v13, 23 }
 0x1e8   :  { %7562 = vst [vmem:[#allocation53_spill] sm:$0xff] %v5279_v51  ;;  %v1792_v46 = vadd.s32 536870912, %v1791_v38  ;;  %4090 = vcosq.f32 %v1201_v50  ;;  %v1635_v9 = vand.u32 8388607, %v7333_v47  ;;  %vm1639_vm13 = vcmp.gt.s32.totalorder %v1638_v3, 0 }
 0x1e9   :  { %v1838_v36 = vshrl.u32 %v1837_v14, 23  ;;  %4092 = vsinq.f32 %v1201_v50  ;;  %vm3840_vm8 = vcmp.lt.s32.totalorder %v3839_v61, 0  ;;  %v1640_v57 = vsel %vm1639_vm13, %v1638_v3, 0 }
 0x1ea   :  { %v5291_v5 = vshrl.u32 %v1792_v46, 30  ;;  %4094 = vcosq.f32 %v5285_v26  ;;  %vm7337_vm10 = vcmp.lt.s32.totalorder %v4839_v2, 0  ;;  %v1642_v32 = vand.u32 31, %v1640_v57 }
 0x1eb   :  { %v5298_v10 = vsel %vm7337_vm10, %v1300_v53, %v1299_v60  ;;  %v1501_v54 = vor.u32 4788187, %v1500_v23  ;;  %v1504_v55 = vcvt.s32.f32 %v5287_v58  ;;  %v5302_v48 = vsel %vm3840_vm8, 0, %v3839_v61 }
 0x1ec   :  { %v1794_v52 = vshll.u32 %v5291_v5, 30  ;;  %v1636_v19 = vor.u32 8388608, %v1635_v9  ;;  %v1643_v41 = vsub.s32 32, %v1642_v32  ;;  %v3849_v11 = vadd.s32 4294967169, %v1838_v36  ;;  %v5304_v13 = vpop.eup %4084 }
 0x1ed   :  { %7563 = vst [vmem:[#allocation54_spill] sm:$0xff] %v5304_v13  ;;  %v1641_v45 = vshrl.u32 %v1640_v57, 5  ;;  %v1645_v62 = vshll.u32 %v7510_v27, %v1642_v32  ;;  %v1648_v60 = vshll.u32 %v7501_v40, %v1642_v32  ;;  %v5310_v14 = vpop.eup %4086  ;;  %v1651_v61 = vshll.u32 %v7502_v43, %v1642_v32 }
 0x1ee   :  { %v5306_v1 = vsub.s32 %v1791_v38, %v1794_v52  ;;  %7564 = vst [vmem:[#allocation55_spill] sm:$0xff] %v5310_v14  ;;  %v1646_v50 = vshrl.u32 %v7501_v40, %v1643_v41  ;;  %v1649_v8 = vshrl.u32 %v7502_v43, %v1643_v41  ;;  %v1652_v0 = vshrl.u32 %v7503_v30, %v1643_v41 }
 0x1ef   :  { %v1654_v38 = vshll.u32 %v7503_v30, %v1642_v32  ;;  %v1655_v53 = vshrl.u32 %v7525_v6, %v1643_v41  ;;  %v1657_v58 = vshll.u32 %v7525_v6, %v1642_v32  ;;  %v1658_v36 = vshrl.u32 %v7493_v37, %v1643_v41 }
 0x1f0   :  { %v1797_v3 = vsub.s32 0, %v5306_v1  ;;  %v1647_v23 = vor.u32 %v1646_v50, %v1645_v62  ;;  %v1650_v46 = vor.u32 %v1649_v8, %v1648_v60  ;;  %v1653_v9 = vor.u32 %v1652_v0, %v1651_v61 }
 0x1f1   :  { %v1502_v57 = vand.u32 2147483647, %v1501_v54  ;;  %v1656_v47 = vor.u32 %v1655_v53, %v1654_v38  ;;  %v7565_v39 = vand.u32 2147483647, %v4839_v2  ;;  %v7566_v51 = vmov 0 }
 0x1f2   :  { %v3846_v52 = vmin.u32 %v1797_v3, %v5306_v1  ;;  %v1601_v14 = vsub.s32 4294967266, %v5302_v48  ;;  %v1659_v32 = vor.u32 %v1658_v36, %v1657_v58  ;;  %vm1663_vm1 = vcmp.lt.s32.totalorder %v1641_v45, 4 }
 0x1f3   :  { %vm5325_vm7 = vcmp.le.f32.partialorder %v7565_v39, 0.7853982  ;;  %v1676_v62 = vshll.u32 %v1636_v19, 8  ;;  %v5330_v60 = vpop.eup %4088  ;;  %v1644_v54 = vshrl.u32 %v7510_v27, %v1643_v41  ;;  %vm1660_vm13 = vcmp.lt.s32.totalorder %v1641_v45, 1 }
 0x1f4   :  { %v7567_v51 = vsel %vm5325_vm7, 4294967295, %v7566_v51  ;;  %7569 = vst [vmem:[#allocation57_spill] sm:$0xff] %v5330_v60  ;;  %v1799_v50 = vclz %v3846_v52  ;;  %v1665_v8 = vsel %vm1663_vm1, %v1653_v9, 2102212464  ;;  %vm1662_vm8 = vcmp.lt.s32.totalorder %v1641_v45, 3 }
 0x1f5   :  { %7568 = vst [vmem:[#allocation56_spill] sm:$0xff] %v7567_v51  ;;  %v1668_v61 = vsel %vm1660_vm13, %v1647_v23, %v1650_v46  ;;  %v1669_v39 = vsel %vm1663_vm1, %v1656_v47, 920167782  ;;  %v1844_v0 = vadd.s32 1, %v3849_v11  ;;  %v5335_v3 = vpop.eup %4090  ;;  %vm1661_vm10 = vcmp.lt.s32.totalorder %v1641_v45, 2 }
 0x1f6   :  { %7570 = vst [vmem:[#allocation58_spill] sm:$0xff] %v5335_v3  ;;  %v1664_v38 = vsel %vm1660_vm13, %v1644_v54, %v1647_v23  ;;  %v1666_v53 = vsel %vm1662_vm8, %v1650_v46, %v1665_v8  ;;  %v1670_v19 = vsel %vm1662_vm8, %v1653_v9, %v1669_v39  ;;  %v5339_v58 = vpop.eup %4092  ;;  %v3847_v36 = vadd.s32 4294967294, %v1799_v50 }
 0x1f7   :  { %7571 = vst [vmem:[#allocation59_spill] sm:$0xff] %v5339_v58  ;;  %v1671_v41 = vsel %vm1661_vm10, %v1668_v61, %v1670_v19  ;;  %v1672_v52 = vsel %vm1660_vm13, %v1650_v46, %v1653_v9  ;;  %v1673_v56 = vsel %vm1663_vm1, %v1659_v32, 1326507024  ;;  %v5343_v60 = vpop.eup %4094  ;;  %v5345_v34 = vmul.f32 %v1504_v55, %v1502_v57 }
 0x1f8   :  { %7572 = vst [vmem:[#allocation60_spill] sm:$0xff] %v5343_v60  ;;  %v1674_v11 = vsel %vm1662_vm8, %v1656_v47, %v1673_v56  ;;  %v5348_v4 = vmul.u32.u64.low %v1676_v62, %v1671_v41  ;;  %v5349_v23 = vmul.u32.u64.high %v1676_v62, %v1671_v41, %v5348_v4  ;;  %v1597_v54 = vsub.s32 32, %v5302_v48 }
 0x1f9   :  { %v1675_v8 = vsel %vm1661_vm10, %v1672_v52, %v1674_v11  ;;  %v7573_v50 = vand.u32 2147483647, %v5259_v15  ;;  %vm1845_vm13 = vcmp.gt.s32.totalorder %v1844_v0, 0  ;;  %v1581_v46 = vadd.s32 %v5165_v59, %v5170_v20 }
 0x1fa   :  { %v1602_v9 = vadd.s32 127, %v1601_v14  ;;  %v1667_v55 = vsel %vm1661_vm10, %v1664_v38, %v1666_v53  ;;  %v1846_v57 = vsel %vm1845_vm13, %v1844_v0, 0  ;;  %vm3848_vm1 = vcmp.lt.s32.totalorder %v3847_v36, 0 }
 0x1fb   :  { %v1841_v61 = vand.u32 8388607, %v7573_v50  ;;  %v5359_v47 = vmul.u32.u64.low %v1676_v62, %v1675_v8  ;;  %v5360_v56 = vmul.u32.u64.high %v1676_v62, %v1675_v8, %v5359_v47  ;;  %v1848_v32 = vand.u32 31, %v1846_v57 }
 0x1fc   :  { %4096 = vsinq.f32 %v5285_v26  ;;  %v5367_v39 = vsel %vm5325_vm7, %v4839_v2, %v5298_v10  ;;  %v1686_v59 = vadd.s32 1, %v5349_v23  ;;  %v1598_v20 = vshll.u32 %v5215_v63, %v5302_v48  ;;  %v5390_v47 = vpop.f32.mrf.mxu0 }
 0x1fd   :  { %v1599_v45 = vshrl.u32 %v1581_v46, %v1597_v54  ;;  %v1842_v14 = vor.u32 8388608, %v1841_v61  ;;  %v1849_v0 = vsub.s32 32, %v1848_v32  ;;  %v1603_v38 = vshll.u32 %v1602_v9, 23  ;;  %7574 = vst [vmem:[#allocation61_spill] sm:$0xff] %v5390_v47 }
 0x1fe   :  { %v5373_v53 = vsel %vm3848_vm1, 0, %v3847_v36  ;;  %v1683_v26 = vmul.u32 %v1676_v62, %v1667_v55  ;;  %v5375_v41 = vshrl.u32 %v1846_v57, 5  ;;  %vm1685_vm10 = vc.u32 %v5360_v56, %v5348_v4 }
 0x1ff   :  { %v1851_v10 = vshll.u32 %v7510_v27, %v1848_v32  ;;  %v1852_v52 = vshrl.u32 %v7501_v40, %v1849_v0  ;;  %v1854_v11 = vshll.u32 %v7501_v40, %v1848_v32  ;;  %v1687_v63 = vsel %vm1685_vm10, %v1686_v59, %v5349_v23 }
 0x200   :  { %v1855_v48 = vshrl.u32 %v7502_v43, %v1849_v0  ;;  %v1857_v54 = vshll.u32 %v7502_v43, %v1848_v32  ;;  %v1860_v36 = vshll.u32 %v7503_v30, %v1848_v32  ;;  %v1688_v62 = vadd.s32 %v1687_v63, %v1683_v26 }
 0x201   :  { %v1853_v8 = vor.u32 %v1852_v52, %v1851_v10  ;;  %v1858_v50 = vshrl.u32 %v7503_v30, %v1849_v0  ;;  %v1861_v61 = vshrl.u32 %v7525_v6, %v1849_v0  ;;  %v1600_v46 = vor.u32 %v1599_v45, %v1598_v20 }
 0x202   :  { %v1856_v9 = vor.u32 %v1855_v48, %v1854_v11  ;;  %v1863_v55 = vshll.u32 %v7525_v6, %v1848_v32  ;;  %v1864_v57 = vshrl.u32 %v7493_v37, %v1849_v0  ;;  %v1689_v23 = vadd.s32 536870912, %v1688_v62 }
 0x203   :  { %v1859_v59 = vor.u32 %v1858_v50, %v1857_v54  ;;  %v1862_v19 = vor.u32 %v1861_v61, %v1860_v36  ;;  %v5392_v13 = vshll.u32 %v1842_v14, 8  ;;  %v1604_v21 = vor.u32 4788187, %v1603_v38 }
 0x204   :  { %v1807_v26 = vsub.s32 4294967266, %v5373_v53  ;;  %v1865_v10 = vor.u32 %v1864_v57, %v1863_v55  ;;  %vm1866_vm8 = vcmp.lt.s32.totalorder %v5375_v41, 1  ;;  %v5396_v52 = vshrl.u32 %v1689_v23, 30 }
 0x205   :  { %vm1869_vm13 = vcmp.lt.s32.totalorder %v5375_v41, 4  ;;  %v1874_v32 = vsel %vm1866_vm8, %v1853_v8, %v1856_v9  ;;  %v1940_v20 = vand.u32 2139095040, %v5390_v47  ;;  %vm1867_vm10 = vcmp.lt.s32.totalorder %v5375_v41, 2 }
 0x206   :  { %7575 = vst [vmem:[#allocation62_spill] sm:$0xff] %v5396_v52  ;;  %vm1868_vm6 = vcmp.lt.s32.totalorder %v5375_v41, 3  ;;  %v1875_v45 = vsel %vm1869_vm13, %v1862_v19, 920167782  ;;  %v1878_v14 = vsel %vm1866_vm8, %v1856_v9, %v1859_v59  ;;  %v1691_v38 = vshll.u32 %v5396_v52, 30 }
 0x207   :  { %v1871_v11 = vsel %vm1869_vm13, %v1859_v59, 2102212464  ;;  %v1876_v63 = vsel %vm1868_vm6, %v1859_v59, %v1875_v45  ;;  %v1879_v48 = vsel %vm1869_vm13, %v1865_v10, 1326507024  ;;  %v1803_v54 = vsub.s32 32, %v5373_v53 }
 0x208   :  { %v1850_v36 = vshrl.u32 %v7510_v27, %v1849_v0  ;;  %v1877_v50 = vsel %vm1867_vm10, %v1874_v32, %v1876_v63  ;;  %v1880_v61 = vsel %vm1868_vm6, %v1862_v19, %v1879_v48  ;;  %v7577_v57 = vand.u32 2147483647, %v4943_v49 }
 0x209   :  { %v5416_v55 = vpop.eup %4096  ;;  %v7578_v23 = vmov 0  ;;  %v1808_v59 = vadd.s32 127, %v1807_v26  ;;  %v5424_v10 = vsub.s32 %v1688_v62, %v1691_v38  ;;  %v1881_v0 = vsel %vm1867_vm10, %v1878_v14, %v1880_v61 }
 0x20a   :  { %7576 = vst [vmem:[#allocation63_spill] sm:$0xff] %v5416_v55  ;;  %vm5420_vm1 = vcmp.le.f32.partialorder %v7577_v57, 0.7853982  ;;  %v1941_v45 = vshrl.u32 %v1940_v20, 23  ;;  %v1870_v32 = vsel %vm1866_vm8, %v1850_v36, %v1853_v8  ;;  %v1872_v19 = vsel %vm1868_vm6, %v1856_v9, %v1871_v11 }
 0x20b   :  { %v7579_v23 = vsel %vm5420_vm1, 4294967295, %v7578_v23  ;;  %v5433_v63 = vmul.u32.u64.low %v5392_v13, %v1881_v0  ;;  %v5434_v48 = vmul.u32.u64.high %v5392_v13, %v1881_v0, %v5433_v63  ;;  %v1787_v57 = vadd.s32 %v5243_v33, %v5248_v29  ;;  %v5449_v33 = vpop.f32.mrf.mxu1 }
 0x20c   :  { %7580 = vst [vmem:[#allocation64_spill] sm:$0xff] %v7579_v23  ;;  %v1694_v62 = vsub.s32 0, %v5424_v10  ;;  %v5440_v26 = vmul.u32.u64.low %v5392_v13, %v1877_v50  ;;  %v5441_v38 = vmul.u32.u64.high %v5392_v13, %v1877_v50, %v5440_v26  ;;  %v1405_v20 = vsub.s32 4, %v4976_v24  ;;  %7581 = vst [vmem:[#allocation65_spill] sm:$0xff] %v5449_v33 }
 0x20d   :  { %4098 = vcosq.f32 %v5367_v39  ;;  %v1605_v8 = vand.u32 2147483647, %v1604_v21  ;;  %v3853_v9 = vadd.s32 4294967169, %v1941_v45  ;;  %v1805_v14 = vshrl.u32 %v1787_v57, %v1803_v54 }
 0x20e   :  { %v1809_v11 = vshll.u32 %v1808_v59, 23  ;;  %v3842_v36 = vmin.u32 %v1694_v62, %v5424_v10  ;;  %v1873_v29 = vsel %vm1867_vm10, %v1870_v32, %v1872_v19  ;;  %v1607_v61 = vcvt.s32.f32 %v1600_v46 }
 0x20f   :  { %vm1891_vm6 = vc.u32 %v5434_v48, %v5440_v26  ;;  %v7345_v50 = vand.u32 2147483647, %v5390_v47  ;;  %v1947_v0 = vadd.s32 1, %v3853_v9  ;;  %v7582_v21 = vxor.u32 2147483648, %v5345_v34 }
 0x210   :  { %vm7583_vm8 = vcmp.lt.s32.totalorder %v4943_v49, 0  ;;  %v1804_v59 = vshll.u32 %v5306_v1, %v5373_v53  ;;  %v1696_v41 = vclz %v3842_v36  ;;  %v1892_v45 = vadd.s32 1, %v5441_v38 }
 0x211   :  { %v1507_v54 = vsel %vm7583_vm8, %v7582_v21, %v5345_v34  ;;  %v5462_v32 = vmul.f32 %v1607_v61, %v1605_v8  ;;  %v1889_v46 = vmul.u32 %v5392_v13, %v1873_v29  ;;  %vm1948_vm13 = vcmp.gt.s32.totalorder %v1947_v0, 0 }
 0x212   :  { %v2146_v19 = vand.u32 2139095040, %v5449_v33  ;;  %v1806_v63 = vor.u32 %v1805_v14, %v1804_v59  ;;  %v1810_v57 = vor.u32 4788187, %v1809_v11  ;;  %v1893_v62 = vsel %vm1891_vm6, %v1892_v45, %v5441_v38 }
 0x213   :  { %v1949_v9 = vsel %vm1948_vm13, %v1947_v0, 0  ;;  %v5470_v34 = vsel %vm5420_vm1, %v4943_v49, %v1507_v54  ;;  %v1894_v1 = vadd.s32 %v1893_v62, %v1889_v46  ;;  %v1944_v53 = vand.u32 8388607, %v7345_v50 }
 0x214   :  { %v1951_v8 = vand.u32 31, %v1949_v9  ;;  %v7584_v13 = vsub.s32 4, %v4895_v35  ;;  %vm7585_vm10 = vcmp.lt.s32.totalorder %v4701_v25, 0  ;;  %vm7587_vm6 = vcmp.lt.s32.totalorder %v4771_v22, 0  ;;  %v5534_v25 = vpop.f32.mrf.mxu0 }
 0x215   :  { %v5484_v38 = vsel %vm7587_vm6, %v1405_v20, %v4976_v24  ;;  %4100 = vsinq.f32 %v5367_v39  ;;  %v3843_v11 = vadd.s32 4294967294, %v1696_v41  ;;  %v1895_v29 = vadd.s32 536870912, %v1894_v1  ;;  %7596 = vst [vmem:[#allocation72_spill] sm:$0xff] %v5534_v25 }
 0x216   :  { %v5479_v14 = vsel %vm7585_vm10, %v7584_v13, %v4895_v35  ;;  %7588 = vst [vmem:[#allocation67_spill] sm:$0xff] %v5484_v38  ;;  %v1952_v61 = vsub.s32 32, %v1951_v8  ;;  %v2147_v0 = vshrl.u32 %v2146_v19, 23  ;;  %4102 = vcosq.f32 %v5470_v34 }
 0x217   :  { %7586 = vst [vmem:[#allocation66_spill] sm:$0xff] %v5479_v14  ;;  %v1609_v21 = vxor.u32 2147483648, %v5462_v32  ;;  %v1811_v54 = vand.u32 2147483647, %v1810_v57  ;;  %v1813_v35 = vcvt.s32.f32 %v1806_v63  ;;  %v5490_v59 = vshrl.u32 %v1895_v29, 30 }
 0x218   :  { %v1945_v45 = vor.u32 8388608, %v1944_v53  ;;  %v1955_v24 = vshrl.u32 %v7501_v40, %v1952_v61  ;;  %v1958_v20 = vshrl.u32 %v7502_v43, %v1952_v61  ;;  %vm3844_vm8 = vcmp.lt.s32.totalorder %v3843_v11, 0 }
 0x219   :  { %7589 = vst [vmem:[#allocation68_spill] sm:$0xff] %v5490_v59  ;;  %v1954_v39 = vshll.u32 %v7510_v27, %v1951_v8  ;;  %v1957_v41 = vshll.u32 %v7501_v40, %v1951_v8  ;;  %v1961_v46 = vshrl.u32 %v7503_v30, %v1952_v61  ;;  %v1897_v19 = vshll.u32 %v5490_v59, 30 }
 0x21a   :  { %v1950_v62 = vshrl.u32 %v1949_v9, 5  ;;  %v1960_v57 = vshll.u32 %v7502_v43, %v1951_v8  ;;  %v3861_v63 = vadd.s32 4294967169, %v2147_v0  ;;  %v5499_v13 = vpop.eup %4098  ;;  %v1963_v50 = vshll.u32 %v7503_v30, %v1951_v8 }
 0x21b   :  { %7590 = vst [vmem:[#allocation69_spill] sm:$0xff] %v5499_v13  ;;  %v1956_v53 = vor.u32 %v1955_v24, %v1954_v39  ;;  %v1959_v29 = vor.u32 %v1958_v20, %v1957_v41  ;;  %v1964_v36 = vshrl.u32 %v7525_v6, %v1952_v61  ;;  %v5504_v16 = vsel %vm3844_vm8, 0, %v3843_v11 }
 0x21c   :  { %v1962_v60 = vor.u32 %v1961_v46, %v1960_v57  ;;  %v1966_v22 = vshll.u32 %v7525_v6, %v1951_v8  ;;  %v1967_v9 = vshrl.u32 %v7493_v37, %v1952_v61  ;;  %v5508_v55 = vmul.f32 %v1813_v35, %v1811_v54 }
 0x21d   :  { %v5510_v0 = vsub.s32 %v1894_v1, %v1897_v19  ;;  %v1965_v17 = vor.u32 %v1964_v36, %v1963_v50  ;;  %vm1969_vm10 = vcmp.lt.s32.totalorder %v1950_v62, 1  ;;  %v1985_v39 = vshll.u32 %v1945_v45, 8 }
 0x21e   :  { %v1968_v20 = vor.u32 %v1967_v9, %v1966_v22  ;;  %v2153_v41 = vadd.s32 1, %v3861_v63  ;;  %v7591_v38 = vand.u32 2147483647, %v5032_v44  ;;  %v7592_v11 = vmov 0 }
 0x21f   :  { %v1704_v8 = vsub.s32 4294967266, %v5504_v16  ;;  %v1953_v54 = vshrl.u32 %v7510_v27, %v1952_v61  ;;  %vm1972_vm8 = vcmp.lt.s32.totalorder %v1950_v62, 4  ;;  %v1977_v1 = vsel %vm1969_vm10, %v1956_v53, %v1959_v29 }
 0x220   :  { %vm5515_vm6 = vcmp.le.f32.partialorder %v7591_v38, 0.7853982  ;;  %vm1971_vm13 = vcmp.lt.s32.totalorder %v1950_v62, 3  ;;  %v1974_v50 = vsel %vm1972_vm8, %v1962_v60, 2102212464  ;;  %v1981_v22 = vsel %vm1969_vm10, %v1959_v29, %v1962_v60 }
 0x221   :  { %v7593_v11 = vsel %vm5515_vm6, 4294967295, %v7592_v11  ;;  %v1978_v36 = vsel %vm1972_vm8, %v1965_v17, 920167782  ;;  %v1900_v35 = vsub.s32 0, %v5510_v0  ;;  %vm1970_vm2 = vcmp.lt.s32.totalorder %v1950_v62, 2 }
 0x222   :  { %7594 = vst [vmem:[#allocation70_spill] sm:$0xff] %v7593_v11  ;;  %v1979_v45 = vsel %vm1971_vm13, %v1962_v60, %v1978_v36  ;;  %v1982_v38 = vsel %vm1972_vm8, %v1968_v20, 1326507024  ;;  %v5524_v46 = vpop.eup %4100  ;;  %v1700_v19 = vsub.s32 32, %v5504_v16  ;;  %v1973_v57 = vsel %vm1969_vm10, %v1953_v54, %v1956_v53 }
 0x223   :  { %7595 = vst [vmem:[#allocation71_spill] sm:$0xff] %v5524_v46  ;;  %v1980_v61 = vsel %vm1970_vm2, %v1977_v1, %v1979_v45  ;;  %v1983_v63 = vsel %vm1971_vm13, %v1965_v17, %v1982_v38  ;;  %v1975_v9 = vsel %vm1971_vm13, %v1959_v29, %v1974_v50  ;;  %v5536_v60 = vpop.eup %4102  ;;  %v1705_v20 = vadd.s32 127, %v1704_v8 }
 0x224   :  { %v1984_v24 = vsel %vm1970_vm2, %v1981_v22, %v1983_v63  ;;  %v5530_v3 = vmul.u32.u64.low %v1985_v39, %v1980_v61  ;;  %v5531_v58 = vmul.u32.u64.high %v1985_v39, %v1980_v61, %v5530_v3  ;;  %7597 = vst [vmem:[#allocation73_spill] sm:$0xff] %v5536_v60  ;;  %vm2154_vm8 = vcmp.gt.s32.totalorder %v2153_v41, 0 }
 0x225   :  { %v5538_v36 = vmul.u32.u64.low %v1985_v39, %v1984_v24  ;;  %v5539_v23 = vmul.u32.u64.high %v1985_v39, %v1984_v24, %v5538_v36  ;;  %vm7598_vm10 = vcmp.lt.s32.totalorder %v5032_v44, 0  ;;  %v1684_v53 = vadd.s32 %v5348_v4, %v5360_v56 }
 0x226   :  { %v1610_v17 = vsel %vm7598_vm10, %v1609_v21, %v5462_v32  ;;  %v3850_v29 = vmin.u32 %v1900_v35, %v5510_v0  ;;  %v2155_v54 = vsel %vm2154_vm8, %v2153_v41, 0  ;;  %v1976_v1 = vsel %vm1970_vm2, %v1973_v57, %v1975_v9 }
 0x227   :  { %v7599_v50 = vand.u32 2147483647, %v5449_v33  ;;  %v2157_v8 = vand.u32 31, %v2155_v54  ;;  %v2043_v24 = vand.u32 2139095040, %v5534_v25  ;;  %4104 = vsinq.f32 %v5470_v34 }
 0x228   :  { %v1702_v38 = vshrl.u32 %v1684_v53, %v1700_v19  ;;  %v1995_v32 = vadd.s32 1, %v5531_v58  ;;  %v5557_v4 = vsel %vm5515_vm6, %v5032_v44, %v1610_v17  ;;  %v1701_v21 = vshll.u32 %v5424_v10, %v5504_v16 }
 0x229   :  { %v2150_v22 = vand.u32 8388607, %v7599_v50  ;;  %v1706_v62 = vshll.u32 %v1705_v20, 23  ;;  %v1902_v41 = vclz %v3850_v29  ;;  %v1992_v35 = vmul.u32 %v1985_v39, %v1976_v1 }
 0x22a   :  { %vm1994_vm2 = vc.u32 %v5539_v23, %v5530_v3  ;;  %v2158_v34 = vsub.s32 32, %v2157_v8  ;;  %v2044_v63 = vshrl.u32 %v2043_v24, 23  ;;  %v1703_v9 = vor.u32 %v1702_v38, %v1701_v21 }
 0x22b   :  { %v1996_v19 = vsel %vm1994_vm2, %v1995_v32, %v5531_v58  ;;  %v2151_v57 = vor.u32 8388608, %v2150_v22  ;;  %v1707_v16 = vor.u32 4788187, %v1706_v62  ;;  %v2160_v10 = vshll.u32 %v7510_v27, %v2157_v8 }
 0x22c   :  { %v1997_v36 = vadd.s32 %v1996_v19, %v1992_v35  ;;  %v2161_v17 = vshrl.u32 %v7501_v40, %v2158_v34  ;;  %v2164_v53 = vshrl.u32 %v7502_v43, %v2158_v34  ;;  %v2163_v39 = vshll.u32 %v7501_v40, %v2157_v8 }
 0x22d   :  { %v2167_v20 = vshrl.u32 %v7503_v30, %v2158_v34  ;;  %v3851_v29 = vadd.s32 4294967294, %v1902_v41  ;;  %v2156_v58 = vshrl.u32 %v2155_v54, 5  ;;  %v2166_v50 = vshll.u32 %v7502_v43, %v2157_v8 }
 0x22e   :  { %v1998_v1 = vadd.s32 536870912, %v1997_v36  ;;  %v2162_v22 = vor.u32 %v2161_v17, %v2160_v10  ;;  %v2165_v24 = vor.u32 %v2164_v53, %v2163_v39  ;;  %v2169_v38 = vshll.u32 %v7503_v30, %v2157_v8 }
 0x22f   :  { %v2170_v32 = vshrl.u32 %v7525_v6, %v2158_v34  ;;  %v2168_v62 = vor.u32 %v2167_v20, %v2166_v50  ;;  %v2172_v35 = vshll.u32 %v7525_v6, %v2157_v8  ;;  %v2173_v19 = vshrl.u32 %v7493_v37, %v2158_v34 }
 0x230   :  { %v5574_v21 = vshrl.u32 %v1998_v1, 30  ;;  %v1708_v45 = vand.u32 2147483647, %v1707_v16  ;;  %v1710_v56 = vcvt.s32.f32 %v1703_v9  ;;  %v2191_v61 = vshll.u32 %v2151_v57, 8 }
 0x231   :  { %v2171_v41 = vor.u32 %v2170_v32, %v2169_v38  ;;  %vm3852_vm13 = vcmp.lt.s32.totalorder %v3851_v29, 0  ;;  %v2174_v17 = vor.u32 %v2173_v19, %v2172_v35  ;;  %vm2175_vm8 = vcmp.lt.s32.totalorder %v2156_v58, 1 }
 0x232   :  { %v2000_v54 = vshll.u32 %v5574_v21, 30  ;;  %vm7366_vm10 = vcmp.lt.s32.totalorder %v5116_v28, 0  ;;  %v2159_v53 = vshrl.u32 %v7510_v27, %v2158_v34  ;;  %vm2178_vm2 = vcmp.lt.s32.totalorder %v2156_v58, 4 }
 0x233   :  { %v2183_v10 = vsel %vm2175_vm8, %v2162_v22, %v2165_v24  ;;  %v3857_v39 = vadd.s32 4294967169, %v2044_v63  ;;  %vm2177_vm5 = vcmp.lt.s32.totalorder %v2156_v58, 3  ;;  %v2180_v16 = vsel %vm2178_vm2, %v2168_v62, 2102212464 }
 0x234   :  { %v5582_v8 = vsub.s32 %v1997_v36, %v2000_v54  ;;  %v2184_v9 = vsel %vm2178_vm2, %v2171_v41, 920167782  ;;  %v5584_v20 = vpop.eup %4104  ;;  %v1905_v57 = vsel %vm3852_vm13, 0, %v3851_v29  ;;  %vm2176_vm12 = vcmp.lt.s32.totalorder %v2156_v58, 2 }
 0x235   :  { %7600 = vst [vmem:[#allocation74_spill] sm:$0xff] %v5584_v20  ;;  %v2185_v1 = vsel %vm2177_vm5, %v2168_v62, %v2184_v9  ;;  %v2187_v50 = vsel %vm2175_vm8, %v2165_v24, %v2168_v62  ;;  %v2179_v34 = vsel %vm2175_vm8, %v2159_v53, %v2162_v22  ;;  %v2188_v35 = vsel %vm2178_vm2, %v2174_v17, 1326507024 }
 0x236   :  { %v2003_v38 = vsub.s32 0, %v5582_v8  ;;  %v2186_v32 = vsel %vm2176_vm12, %v2183_v10, %v2185_v1  ;;  %v2181_v63 = vsel %vm2177_vm5, %v2165_v24, %v2180_v16  ;;  %v2189_v36 = vsel %vm2177_vm5, %v2171_v41, %v2188_v35 }
 0x237   :  { %v5590_v19 = vmul.u32.u64.low %v2191_v61, %v2186_v32  ;;  %v5591_v54 = vmul.u32.u64.high %v2191_v61, %v2186_v32, %v5590_v19  ;;  %v1910_v42 = vsub.s32 4294967266, %v1905_v57  ;;  %v2190_v9 = vsel %vm2176_vm12, %v2187_v50, %v2189_v36 }
 0x238   :  { %v3854_v29 = vmin.u32 %v2003_v38, %v5582_v8  ;;  %v2050_v14 = vadd.s32 1, %v3857_v39  ;;  %4106 = vcosq.f32 %v5557_v4  ;;  %v5597_v62 = vmul.f32 %v1710_v56, %v1708_v45 }
 0x239   :  { %v5599_v22 = vmul.u32.u64.low %v2191_v61, %v2190_v9  ;;  %v5600_v53 = vmul.u32.u64.high %v2191_v61, %v2190_v9, %v5599_v22  ;;  %v2182_v24 = vsel %vm2176_vm12, %v2179_v34, %v2181_v63  ;;  %v7601_v41 = vand.u32 2147483647, %v5534_v25 }
 0x23a   :  { %v2005_v17 = vclz %v3854_v29  ;;  %vm2051_vm5 = vcmp.gt.s32.totalorder %v2050_v14, 0  ;;  %4108 = vsinq.f32 %v5557_v4  ;;  %v1906_v16 = vsub.s32 32, %v1905_v57 }
 0x23b   :  { %v2047_v10 = vand.u32 8388607, %v7601_v41  ;;  %v2201_v1 = vadd.s32 1, %v5591_v54  ;;  %v2052_v39 = vsel %vm2051_vm5, %v2050_v14, 0  ;;  %v7602_v45 = vxor.u32 2147483648, %v5508_v55  ;;  %v5619_v14 = vpop.f32.mrf.mxu1 }
 0x23c   :  { %v1911_v50 = vadd.s32 127, %v1910_v42  ;;  %v3855_v58 = vadd.s32 4294967294, %v2005_v17  ;;  %v2054_v38 = vand.u32 31, %v2052_v39  ;;  %v1890_v32 = vadd.s32 %v5440_v26, %v5434_v48  ;;  %7603 = vst [vmem:[#allocation75_spill] sm:$0xff] %v5619_v14 }
 0x23d   :  { %v5612_v56 = vsel %vm7366_vm10, %v7602_v45, %v5508_v55  ;;  %v2198_v4 = vmul.u32 %v2191_v61, %v2182_v24  ;;  %vm2200_vm12 = vc.u32 %v5600_v53, %v5590_v19  ;;  %v2048_v63 = vor.u32 8388608, %v2047_v10 }
 0x23e   :  { %vm3856_vm13 = vcmp.lt.s32.totalorder %v3855_v58, 0  ;;  %v2202_v35 = vsel %vm2200_vm12, %v2201_v1, %v5591_v54  ;;  %v2055_v55 = vsub.s32 32, %v2054_v38  ;;  %v1907_v42 = vshll.u32 %v5510_v0, %v1905_v57 }
 0x23f   :  { %v1908_v36 = vshrl.u32 %v1890_v32, %v1906_v16  ;;  %v5623_v29 = vsel %vm3856_vm13, 0, %v3855_v58  ;;  %v2203_v9 = vadd.s32 %v2202_v35, %v2198_v4  ;;  %v1912_v22 = vshll.u32 %v1911_v50, 23 }
 0x240   :  { %v1993_v48 = vadd.s32 %v5530_v3, %v5539_v23  ;;  %v2013_v26 = vsub.s32 4294967266, %v5623_v29  ;;  %v2249_v61 = vand.u32 2139095040, %v5619_v14  ;;  %v2058_v24 = vshrl.u32 %v7501_v40, %v2055_v55 }
 0x241   :  { %v2204_v17 = vadd.s32 536870912, %v2203_v9  ;;  %v2061_v54 = vshrl.u32 %v7502_v43, %v2055_v55  ;;  %v2064_v41 = vshrl.u32 %v7503_v30, %v2055_v55  ;;  %v2057_v0 = vshll.u32 %v7510_v27, %v2054_v38 }
 0x242   :  { %v2060_v57 = vshll.u32 %v7501_v40, %v2054_v38  ;;  %v2063_v10 = vshll.u32 %v7502_v43, %v2054_v38  ;;  %v2067_v16 = vshrl.u32 %v7525_v6, %v2055_v55  ;;  %v5636_v3 = vor.u32 %v1908_v36, %v1907_v42 }
 0x243   :  { %v5638_v23 = vshrl.u32 %v2204_v17, 30  ;;  %v2053_v1 = vshrl.u32 %v2052_v39, 5  ;;  %v2066_v45 = vshll.u32 %v7503_v30, %v2054_v38  ;;  %v2014_v50 = vadd.s32 127, %v2013_v26 }
 0x244   :  { %v2059_v58 = vor.u32 %v2058_v24, %v2057_v0  ;;  %v2062_v32 = vor.u32 %v2061_v54, %v2060_v57  ;;  %v2065_v4 = vor.u32 %v2064_v41, %v2063_v10  ;;  %v2069_v60 = vshll.u32 %v7525_v6, %v2054_v38 }
 0x245   :  { %v2206_v35 = vshll.u32 %v5638_v23, 30  ;;  %v2068_v34 = vor.u32 %v2067_v16, %v2066_v45  ;;  %v2070_v20 = vshrl.u32 %v7493_v37, %v2055_v55  ;;  %v5645_v42 = vpop.eup %4106  ;;  %v1913_v36 = vor.u32 4788187, %v1912_v22 }
 0x246   :  { %7604 = vst [vmem:[#allocation76_spill] sm:$0xff] %v5645_v42  ;;  %v2009_v39 = vsub.s32 32, %v5623_v29  ;;  %v2088_v17 = vshll.u32 %v2048_v63, 8  ;;  %v2250_v49 = vshrl.u32 %v2249_v61, 23  ;;  %v7605_v26 = vand.u32 2147483647, %v5116_v28 }
 0x247   :  { %v7606_v24 = vmov 0  ;;  %v5654_v54 = vsub.s32 %v2203_v9, %v2206_v35  ;;  %v2071_v41 = vor.u32 %v2070_v20, %v2069_v60  ;;  %vm2072_vm5 = vcmp.lt.s32.totalorder %v2053_v1, 1  ;;  %v5656_v38 = vpop.eup %4108 }
 0x248   :  { %vm5650_vm2 = vcmp.le.f32.partialorder %v7605_v26, 0.7853982  ;;  %vm2075_vm12 = vcmp.lt.s32.totalorder %v2053_v1, 4  ;;  %7609 = vst [vmem:[#allocation78_spill] sm:$0xff] %v5656_v38  ;;  %v7610_v0 = vand.u32 2147483647, %v5240_v18  ;;  %v2056_v61 = vshrl.u32 %v7510_v27, %v2055_v55 }
 0x249   :  { %v7607_v24 = vsel %vm5650_vm2, 4294967295, %v7606_v24  ;;  %v7611_v22 = vmov 0  ;;  %v2015_v63 = vshll.u32 %v2014_v50, 23  ;;  %v2077_v57 = vsel %vm2075_vm12, %v2065_v4, 2102212464 }
 0x24a   :  { %7608 = vst [vmem:[#allocation77_spill] sm:$0xff] %v7607_v24  ;;  %vm5660_vm13 = vcmp.le.f32.partialorder %v7610_v0, 0.7853982  ;;  %v2080_v10 = vsel %vm2072_vm5, %v2059_v58, %v2062_v32  ;;  %v2209_v16 = vsub.s32 0, %v5654_v54  ;;  %vm2074_vm10 = vcmp.lt.s32.totalorder %v2053_v1, 3 }
 0x24b   :  { %v7612_v22 = vsel %vm5660_vm13, 4294967295, %v7611_v22  ;;  %v2081_v9 = vsel %vm2075_vm12, %v2068_v34, 920167782  ;;  %v2084_v60 = vsel %vm2072_vm5, %v2062_v32, %v2065_v4  ;;  %vm2073_vm8 = vcmp.lt.s32.totalorder %v2053_v1, 2 }
 0x24c   :  { %7613 = vst [vmem:[#allocation79_spill] sm:$0xff] %v7612_v22  ;;  %v2076_v20 = vsel %vm2072_vm5, %v2056_v61, %v2059_v58  ;;  %v2082_v45 = vsel %vm2074_vm10, %v2065_v4, %v2081_v9  ;;  %v2085_v35 = vsel %vm2075_vm12, %v2071_v41, 1326507024  ;;  %v3862_v26 = vmin.u32 %v2209_v16, %v5654_v54  ;;  %v5676_v4 = vpop.f32.mrf.mxu0 }
 0x24d   :  { %v2078_v0 = vsel %vm2074_vm10, %v2062_v32, %v2077_v57  ;;  %v2083_v31 = vsel %vm2073_vm8, %v2080_v10, %v2082_v45  ;;  %v2086_v13 = vsel %vm2074_vm10, %v2068_v34, %v2085_v35  ;;  %v2011_v50 = vshrl.u32 %v1993_v48, %v2009_v39  ;;  %7614 = vst [vmem:[#allocation80_spill] sm:$0xff] %v5676_v4 }
 0x24e   :  { %v2087_v55 = vsel %vm2073_vm8, %v2084_v60, %v2086_v13  ;;  %v5669_v51 = vmul.u32.u64.low %v2088_v17, %v2083_v31  ;;  %v5670_v46 = vmul.u32.u64.high %v2088_v17, %v2083_v31, %v5669_v51  ;;  %v2211_v2 = vclz %v3862_v26 }
 0x24f   :  { %v5673_v12 = vmul.u32.u64.low %v2088_v17, %v2087_v55  ;;  %v5674_v42 = vmul.u32.u64.high %v2088_v17, %v2087_v55, %v5673_v12  ;;  %v3865_v58 = vadd.s32 4294967169, %v2250_v49  ;;  %v7615_v32 = vxor.u32 2147483648, %v5597_v62 }
 0x250   :  { %vm7616_vm5 = vcmp.lt.s32.totalorder %v5240_v18, 0  ;;  %v1914_v48 = vand.u32 2147483647, %v1913_v36  ;;  %v2079_v13 = vsel %vm2073_vm8, %v2076_v20, %v2078_v0  ;;  %v7377_v31 = vand.u32 2147483647, %v5619_v14 }
 0x251   :  { %v1713_v34 = vsel %vm7616_vm5, %v7615_v32, %v5597_v62  ;;  %v2010_v39 = vshll.u32 %v5582_v8, %v5623_v29  ;;  %v2016_v41 = vor.u32 4788187, %v2015_v63  ;;  %v3863_v61 = vadd.s32 4294967294, %v2211_v2 }
 0x252   :  { %v2256_v12 = vadd.s32 1, %v3865_v58  ;;  %v1819_v49 = vsel %vm5650_vm2, %v5116_v28, %v5612_v56  ;;  %v1916_v57 = vcvt.s32.f32 %v5636_v3  ;;  %v2098_v62 = vadd.s32 1, %v5670_v46 }
 0x253   :  { %v2352_v1 = vand.u32 2139095040, %v5676_v4  ;;  %v1716_v36 = vsel %vm5660_vm13, %v5240_v18, %v1713_v34  ;;  %v2012_v10 = vor.u32 %v2011_v50, %v2010_v39  ;;  %v2095_v8 = vmul.u32 %v2088_v17, %v2079_v13 }
 0x254   :  { %vm2097_vm10 = vc.u32 %v5674_v42, %v5669_v51  ;;  %v5699_v2 = vmul.f32 %v1916_v57, %v1914_v48  ;;  %vm3864_vm8 = vcmp.lt.s32.totalorder %v3863_v61, 0  ;;  %vm2257_vm12 = vcmp.gt.s32.totalorder %v2256_v12, 0 }
 0x255   :  { %v2099_v56 = vsel %vm2097_vm10, %v2098_v62, %v5670_v46  ;;  %4110 = vcosq.f32 %v1819_v49  ;;  %v2017_v29 = vand.u32 2147483647, %v2016_v41  ;;  %v2253_v63 = vand.u32 8388607, %v7377_v31 }
 0x256   :  { %v2100_v3 = vadd.s32 %v2099_v56, %v2095_v8  ;;  %v7617_v16 = vsub.s32 4, %v5204_v7  ;;  %vm7618_vm5 = vcmp.lt.s32.totalorder %v5032_v44, 0  ;;  %4112 = vsinq.f32 %v1819_v49 }
 0x257   :  { %v2258_v9 = vsel %vm2257_vm12, %v2256_v12, 0  ;;  %v2353_v60 = vshrl.u32 %v2352_v1, 23  ;;  %4114 = vcosq.f32 %v1716_v36  ;;  %v2019_v20 = vcvt.s32.f32 %v2012_v10 }
 0x258   :  { %v5709_v17 = vsel %vm7618_vm5, %v7617_v16, %v5204_v7  ;;  %v5711_v46 = vsel %vm3864_vm8, 0, %v3863_v61  ;;  %v2101_v45 = vadd.s32 536870912, %v2100_v3  ;;  %v7620_v35 = vsub.s32 4, %v5291_v5 }
 0x259   :  { %7619 = vst [vmem:[#allocation81_spill] sm:$0xff] %v5709_v17  ;;  %vm7621_vm10 = vcmp.lt.s32.totalorder %v5116_v28, 0  ;;  %4116 = vsinq.f32 %v1716_v36  ;;  %v2260_v7 = vand.u32 31, %v2258_v9  ;;  %v5721_v50 = vmul.f32 %v2019_v20, %v2017_v29 }
 0x25a   :  { %v5718_v26 = vsel %vm7621_vm10, %v7620_v35, %v5291_v5  ;;  %v2199_v55 = vadd.s32 %v5590_v19, %v5600_v53  ;;  %v5725_v58 = vshrl.u32 %v2101_v45, 30  ;;  %v2254_v32 = vor.u32 8388608, %v2253_v63 }
 0x25b   :  { %7622 = vst [vmem:[#allocation82_spill] sm:$0xff] %v5718_v26  ;;  %v2219_v34 = vsub.s32 4294967266, %v5711_v46  ;;  %v2261_v48 = vsub.s32 32, %v2260_v7  ;;  %v7378_v13 = vand.u32 2147483647, %v5676_v4  ;;  %v3869_v39 = vadd.s32 4294967169, %v2353_v60 }
 0x25c   :  { %7623 = vst [vmem:[#allocation83_spill] sm:$0xff] %v5725_v58  ;;  %v2103_v5 = vshll.u32 %v5725_v58, 30  ;;  %v2259_v41 = vshrl.u32 %v2258_v9, 5  ;;  %v2263_v61 = vshll.u32 %v7510_v27, %v2260_v7  ;;  %v2266_v12 = vshll.u32 %v7501_v40, %v2260_v7 }
 0x25d   :  { %v2264_v49 = vshrl.u32 %v7501_v40, %v2261_v48  ;;  %v2267_v19 = vshrl.u32 %v7502_v43, %v2261_v48  ;;  %v2269_v53 = vshll.u32 %v7502_v43, %v2260_v7  ;;  %v2270_v57 = vshrl.u32 %v7503_v30, %v2261_v48 }
 0x25e   :  { %v5736_v62 = vsub.s32 %v2100_v3, %v2103_v5  ;;  %v2272_v1 = vshll.u32 %v7503_v30, %v2260_v7  ;;  %v2273_v36 = vshrl.u32 %v7525_v6, %v2261_v48  ;;  %v2275_v10 = vshll.u32 %v7525_v6, %v2260_v7 }
 0x25f   :  { %v2265_v8 = vor.u32 %v2264_v49, %v2263_v61  ;;  %v2268_v56 = vor.u32 %v2267_v19, %v2266_v12  ;;  %v2271_v29 = vor.u32 %v2270_v57, %v2269_v53  ;;  %v2276_v63 = vshrl.u32 %v7493_v37, %v2261_v48 }
 0x260   :  { %v2220_v16 = vadd.s32 127, %v2219_v34  ;;  %v2106_v9 = vsub.s32 0, %v5736_v62  ;;  %v2274_v60 = vor.u32 %v2273_v36, %v2272_v1  ;;  %v5744_v20 = vshll.u32 %v2254_v32, 8 }
 0x261   :  { %v2262_v3 = vshrl.u32 %v7510_v27, %v2261_v48  ;;  %v2277_v45 = vor.u32 %v2276_v63, %v2275_v10  ;;  %vm2278_vm12 = vcmp.lt.s32.totalorder %v2259_v41, 1  ;;  %v2359_v35 = vadd.s32 1, %v3869_v39 }
 0x262   :  { %v3858_v7 = vmin.u32 %v2106_v9, %v5736_v62  ;;  %vm2280_vm5 = vcmp.lt.s32.totalorder %v2259_v41, 3  ;;  %vm2281_vm10 = vcmp.lt.s32.totalorder %v2259_v41, 4  ;;  %v2286_v5 = vsel %vm2278_vm12, %v2265_v8, %v2268_v56  ;;  %v5749_v61 = vpop.eup %4110 }
 0x263   :  { %7624 = vst [vmem:[#allocation84_spill] sm:$0xff] %v5749_v61  ;;  %v2283_v12 = vsel %vm2281_vm10, %v2271_v29, 2102212464  ;;  %v2287_v34 = vsel %vm2281_vm10, %v2274_v60, 920167782  ;;  %v2290_v49 = vsel %vm2278_vm12, %v2268_v56, %v2271_v29  ;;  %v5752_v32 = vpop.eup %4112  ;;  %v2215_v48 = vsub.s32 32, %v5711_v46 }
 0x264   :  { %v2291_v19 = vsel %vm2281_vm10, %v2277_v45, 1326507024  ;;  %7625 = vst [vmem:[#allocation85_spill] sm:$0xff] %v5752_v32  ;;  %v2108_v53 = vclz %v3858_v7  ;;  %vm2279_vm8 = vcmp.lt.s32.totalorder %v2259_v41, 2  ;;  %v2288_v39 = vsel %vm2280_vm5, %v2271_v29, %v2287_v34  ;;  %v5756_v57 = vpop.eup %4114 }
 0x265   :  { %7626 = vst [vmem:[#allocation86_spill] sm:$0xff] %v5756_v57  ;;  %v2282_v1 = vsel %vm2278_vm12, %v2262_v3, %v2265_v8  ;;  %v2289_v36 = vsel %vm2279_vm8, %v2286_v5, %v2288_v39  ;;  %v2292_v10 = vsel %vm2280_vm5, %v2274_v60, %v2291_v19  ;;  %v2356_v63 = vand.u32 8388607, %v7378_v13 }
 0x266   :  { %v5763_v9 = vpop.eup %4116  ;;  %v3859_v45 = vadd.s32 4294967294, %v2108_v53  ;;  %v2284_v31 = vsel %vm2280_vm5, %v2268_v56, %v2283_v12  ;;  %v2293_v7 = vsel %vm2279_vm8, %v2290_v49, %v2292_v10  ;;  %vm2360_vm10 = vcmp.gt.s32.totalorder %v2359_v35, 0 }
 0x267   :  { %7627 = vst [vmem:[#allocation87_spill] sm:$0xff] %v5763_v9  ;;  %v2221_v29 = vshll.u32 %v2220_v16, 23  ;;  %v5768_v34 = vmul.u32.u64.low %v5744_v20, %v2293_v7  ;;  %v5769_v0 = vmul.u32.u64.high %v5744_v20, %v2293_v7, %v5768_v34  ;;  %v2361_v8 = vsel %vm2360_vm10, %v2359_v35, 0 }
 0x268   :  { %v2217_v3 = vshrl.u32 %v2199_v55, %v2215_v48  ;;  %vm3860_vm12 = vcmp.lt.s32.totalorder %v3859_v45, 0  ;;  %v5772_v60 = vmul.u32.u64.low %v5744_v20, %v2289_v36  ;;  %v5773_v5 = vmul.u32.u64.high %v5744_v20, %v2289_v36, %v5772_v60 }
 0x269   :  { %v7628_v19 = vxor.u32 2147483648, %v5699_v2  ;;  %vm7629_vm5 = vcmp.lt.s32.totalorder %v5259_v15, 0  ;;  %v5783_v16 = vsel %vm3860_vm12, 0, %v3859_v45  ;;  %v2285_v12 = vsel %vm2279_vm8, %v2282_v1, %v2284_v31 }
 0x26a   :  { %v2363_v49 = vand.u32 31, %v2361_v8  ;;  %v2216_v35 = vshll.u32 %v5654_v54, %v5711_v46  ;;  %v2096_v48 = vadd.s32 %v5669_v51, %v5674_v42  ;;  %v2357_v53 = vor.u32 8388608, %v2356_v63 }
 0x26b   :  { %v5781_v56 = vsel %vm7629_vm5, %v7628_v19, %v5699_v2  ;;  %v5791_v39 = vor.u32 4788187, %v2221_v29  ;;  %v2116_v36 = vsub.s32 4294967266, %v5783_v16  ;;  %vm2303_vm10 = vc.u32 %v5769_v0, %v5772_v60 }
 0x26c   :  { %v2364_v2 = vsub.s32 32, %v2363_v49  ;;  %v5796_v41 = vor.u32 %v2217_v3, %v2216_v35  ;;  %v2301_v31 = vmul.u32 %v5744_v20, %v2285_v12  ;;  %v2304_v1 = vadd.s32 1, %v5773_v5 }
 0x26d   :  { %v2362_v10 = vshrl.u32 %v2361_v8, 5  ;;  %v2112_v54 = vsub.s32 32, %v5783_v16  ;;  %v2366_v51 = vshll.u32 %v7510_v27, %v2363_v49  ;;  %v2369_v45 = vshll.u32 %v7501_v40, %v2363_v49 }
 0x26e   :  { %v2367_v42 = vshrl.u32 %v7501_v40, %v2364_v2  ;;  %v2370_v46 = vshrl.u32 %v7502_v43, %v2364_v2  ;;  %v2305_v63 = vsel %vm2303_vm10, %v2304_v1, %v5773_v5  ;;  %v2372_v7 = vshll.u32 %v7502_v43, %v2363_v49 }
 0x26f   :  { %v2373_v29 = vshrl.u32 %v7503_v30, %v2364_v2  ;;  %v2223_v20 = vand.u32 2147483647, %v5791_v39  ;;  %v2117_v34 = vadd.s32 127, %v2116_v36  ;;  %v2306_v8 = vadd.s32 %v2305_v63, %v2301_v31 }
 0x270   :  { %v2368_v3 = vor.u32 %v2367_v42, %v2366_v51  ;;  %v2371_v19 = vor.u32 %v2370_v46, %v2369_v45  ;;  %v2375_v35 = vshll.u32 %v7503_v30, %v2363_v49  ;;  %v2376_v13 = vshrl.u32 %v7525_v6, %v2364_v2  ;;  %v5830_v45 = vpop.f32.mrf.mxu1 }
 0x271   :  { %v2374_v12 = vor.u32 %v2373_v29, %v2372_v7  ;;  %v2307_v55 = vadd.s32 536870912, %v2306_v8  ;;  %v2378_v5 = vshll.u32 %v7525_v6, %v2363_v49  ;;  %v2379_v1 = vshrl.u32 %v7493_v37, %v2364_v2  ;;  %7635 = vst [vmem:[#allocation90_spill] sm:$0xff] %v5830_v45 }
 0x272   :  { %v5813_v28 = vshll.u32 %v2357_v53, 8  ;;  %v7630_v61 = vand.u32 2147483647, %v5259_v15  ;;  %v7631_v39 = vmov 0  ;;  %v2114_v36 = vshrl.u32 %v2096_v48, %v2112_v54 }
 0x273   :  { %v2377_v31 = vor.u32 %v2376_v13, %v2375_v35  ;;  %vm2381_vm12 = vcmp.lt.s32.totalorder %v2362_v10, 1  ;;  %vm2384_vm5 = vcmp.lt.s32.totalorder %v2362_v10, 4  ;;  %v5822_v51 = vshrl.u32 %v2307_v55, 30 }
 0x274   :  { %vm5817_vm8 = vcmp.le.f32.partialorder %v7630_v61, 0.7853982  ;;  %v2365_v49 = vshrl.u32 %v7510_v27, %v2364_v2  ;;  %v2380_v42 = vor.u32 %v2379_v1, %v2378_v5  ;;  %v2386_v53 = vsel %vm2384_vm5, %v2374_v12, 2102212464 }
 0x275   :  { %v7632_v39 = vsel %vm5817_vm8, 4294967295, %v7631_v39  ;;  %7634 = vst [vmem:[#allocation89_spill] sm:$0xff] %v5822_v51  ;;  %v2118_v46 = vshll.u32 %v2117_v34, 23  ;;  %vm2383_vm11 = vcmp.lt.s32.totalorder %v2362_v10, 3  ;;  %v2389_v61 = vsel %vm2381_vm12, %v2368_v3, %v2371_v19 }
 0x276   :  { %7633 = vst [vmem:[#allocation88_spill] sm:$0xff] %v7632_v39  ;;  %v2390_v63 = vsel %vm2384_vm5, %v2377_v31, 920167782  ;;  %v2309_v48 = vshll.u32 %v5822_v51, 30  ;;  %vm2382_vm0 = vcmp.lt.s32.totalorder %v2362_v10, 2  ;;  %v2393_v54 = vsel %vm2381_vm12, %v2371_v19, %v2374_v12 }
 0x277   :  { %v2391_v13 = vsel %vm2383_vm11, %v2374_v12, %v2390_v63  ;;  %v2385_v55 = vsel %vm2381_vm12, %v2365_v49, %v2368_v3  ;;  %v2387_v2 = vsel %vm2383_vm11, %v2371_v19, %v2386_v53  ;;  %v2394_v29 = vsel %vm2384_vm5, %v2380_v42, 1326507024 }
 0x278   :  { %v2392_v7 = vsel %vm2382_vm0, %v2389_v61, %v2391_v13  ;;  %v7636_v34 = vand.u32 2147483647, %v5390_v47  ;;  %v7637_v35 = vmov 0  ;;  %v5841_v5 = vsub.s32 %v2306_v8, %v2309_v48 }
 0x279   :  { %v2395_v1 = vsel %vm2383_vm11, %v2377_v31, %v2394_v29  ;;  %v5844_v12 = vmul.u32.u64.low %v5813_v28, %v2392_v7  ;;  %v5845_v63 = vmul.u32.u64.high %v5813_v28, %v2392_v7, %v5844_v12  ;;  %v2113_v3 = vshll.u32 %v5736_v62, %v5783_v16 }
 0x27a   :  { %vm5837_vm10 = vcmp.le.f32.partialorder %v7636_v34, 0.7853982  ;;  %v2119_v19 = vor.u32 4788187, %v2118_v46  ;;  %v2396_v49 = vsel %vm2382_vm0, %v2393_v54, %v2395_v1  ;;  %v2558_v42 = vand.u32 2139095040, %v5830_v45  ;;  %v5861_v46 = vpop.f32.mrf.mxu0 }
 0x27b   :  { %v7638_v35 = vsel %vm5837_vm10, 4294967295, %v7637_v35  ;;  %v2225_v53 = vcvt.s32.f32 %v5796_v41  ;;  %v2312_v61 = vsub.s32 0, %v5841_v5  ;;  %v2023_v48 = vsub.s32 4, %v5574_v21  ;;  %7640 = vst [vmem:[#allocation92_spill] sm:$0xff] %v5861_v46 }
 0x27c   :  { %7639 = vst [vmem:[#allocation91_spill] sm:$0xff] %v7638_v35  ;;  %v5855_v8 = vmul.u32.u64.low %v5813_v28, %v2396_v49  ;;  %v5856_v31 = vmul.u32.u64.high %v5813_v28, %v2396_v49, %v5855_v8  ;;  %vm7387_vm11 = vcmp.lt.s32.totalorder %v5449_v33, 0  ;;  %v2115_v13 = vor.u32 %v2114_v36, %v2113_v3 }
 0x27d   :  { %v2388_v62 = vsel %vm2382_vm0, %v2385_v55, %v2387_v2  ;;  %v2559_v16 = vshrl.u32 %v2558_v42, 23  ;;  %v1922_v41 = vsel %vm5817_vm8, %v5259_v15, %v5781_v56  ;;  %v2226_v54 = vmul.f32 %v2225_v53, %v2223_v20 }
 0x27e   :  { %v3866_v7 = vmin.u32 %v2312_v61, %v5841_v5  ;;  %v2407_v29 = vadd.s32 1, %v5845_v63  ;;  %v7641_v34 = vxor.u32 2147483648, %v5721_v50  ;;  %vm7642_vm12 = vcmp.lt.s32.totalorder %v5390_v47, 0 }
 0x27f   :  { %v2120_v36 = vand.u32 2147483647, %v2119_v19  ;;  %v7383_v55 = vand.u32 2147483647, %v5830_v45  ;;  %v3877_v2 = vadd.s32 4294967169, %v2559_v16  ;;  %v2404_v3 = vmul.u32 %v5813_v28, %v2388_v62  ;;  %vm7643_vm5 = vmmov %vm7642_vm12 }
 0x280   :  { %v2022_v10 = vsel %vm7642_vm12, %v7641_v34, %v5721_v50  ;;  %v2314_v1 = vclz %v3866_v7  ;;  %vm2406_vm0 = vc.u32 %v5856_v31, %v5844_v12  ;;  %v2455_v56 = vand.u32 2139095040, %v5861_v46 }
 0x281   :  { %v5882_v20 = vsel %vm7643_vm5, %v2023_v48, %v5574_v21  ;;  %v2122_v49 = vcvt.s32.f32 %v2115_v13  ;;  %v2408_v50 = vsel %vm2406_vm0, %v2407_v29, %v5845_v63  ;;  %v2565_v19 = vadd.s32 1, %v3877_v2 }
 0x282   :  { %7644 = vst [vmem:[#allocation93_spill] sm:$0xff] %v5882_v20  ;;  %4118 = vcosq.f32 %v1922_v41  ;;  %v2227_v42 = vxor.u32 2147483648, %v2226_v54  ;;  %v3867_v53 = vadd.s32 4294967294, %v2314_v1  ;;  %v2409_v61 = vadd.s32 %v2408_v50, %v2404_v3 }
 0x283   :  { %v5888_v28 = vsel %vm5837_vm10, %v5390_v47, %v2022_v10  ;;  %v5890_v8 = vmul.f32 %v2122_v49, %v2120_v36  ;;  %v2562_v62 = vand.u32 8388607, %v7383_v55  ;;  %vm2566_vm12 = vcmp.gt.s32.totalorder %v2565_v19, 0 }
 0x284   :  { %vm3868_vm5 = vcmp.lt.s32.totalorder %v3867_v53, 0  ;;  %v2410_v21 = vadd.s32 536870912, %v2409_v61  ;;  %v2567_v48 = vsel %vm2566_vm12, %v2565_v19, 0  ;;  %v2456_v63 = vshrl.u32 %v2455_v56, 23 }
 0x285   :  { %4120 = vsinq.f32 %v1922_v41  ;;  %v5895_v16 = vsel %vm3868_vm5, 0, %v3867_v53  ;;  %v2569_v7 = vand.u32 31, %v2567_v48  ;;  %v2228_v29 = vsel %vm7387_vm11, %v2227_v42, %v2226_v54 }
 0x286   :  { %4122 = vcosq.f32 %v5888_v28  ;;  %v2302_v34 = vadd.s32 %v5772_v60, %v5769_v0  ;;  %v5902_v10 = vshrl.u32 %v2410_v21, 30  ;;  %v2563_v2 = vor.u32 8388608, %v2562_v62 }
 0x287   :  { %v2570_v1 = vsub.s32 32, %v2569_v7  ;;  %v2318_v3 = vsub.s32 32, %v5895_v16  ;;  %v2572_v49 = vshll.u32 %v7510_v27, %v2569_v7  ;;  %v3873_v50 = vadd.s32 4294967169, %v2456_v63 }
 0x288   :  { %v2412_v56 = vshll.u32 %v5902_v10, 30  ;;  %v2575_v19 = vshll.u32 %v7501_v40, %v2569_v7  ;;  %v2322_v42 = vsub.s32 4294967266, %v5895_v16  ;;  %v2568_v62 = vshrl.u32 %v2567_v48, 5 }
 0x289   :  { %v2573_v54 = vshrl.u32 %v7501_v40, %v2570_v1  ;;  %v2576_v0 = vshrl.u32 %v7502_v43, %v2570_v1  ;;  %v2579_v60 = vshrl.u32 %v7503_v30, %v2570_v1  ;;  %v2578_v21 = vshll.u32 %v7502_v43, %v2569_v7 }
 0x28a   :  { %v5914_v53 = vsub.s32 %v2409_v61, %v2412_v56  ;;  %v7645_v55 = vand.u32 2147483647, %v5449_v33  ;;  %v7646_v13 = vmov 0  ;;  %v5923_v41 = vshll.u32 %v2563_v2, 8 }
 0x28b   :  { %v2574_v63 = vor.u32 %v2573_v54, %v2572_v49  ;;  %v2577_v36 = vor.u32 %v2576_v0, %v2575_v19  ;;  %v7649_v32 = vand.u32 2147483647, %v5861_v46  ;;  %v2580_v56 = vor.u32 %v2579_v60, %v2578_v21 }
 0x28c   :  { %vm5919_vm0 = vcmp.le.f32.partialorder %v7645_v55, 0.7853982  ;;  %v2415_v61 = vsub.s32 0, %v5914_v53  ;;  %v2581_v48 = vshll.u32 %v7503_v30, %v2569_v7  ;;  %v2582_v24 = vshrl.u32 %v7525_v6, %v2570_v1 }
 0x28d   :  { %v7647_v13 = vsel %vm5919_vm0, 4294967295, %v7646_v13  ;;  %v5927_v44 = vand.u32 8388607, %v7649_v32  ;;  %v2320_v55 = vshrl.u32 %v2302_v34, %v2318_v3  ;;  %v2584_v26 = vshll.u32 %v7525_v6, %v2569_v7 }
 0x28e   :  { %7648 = vst [vmem:[#allocation94_spill] sm:$0xff] %v7647_v13  ;;  %v2585_v49 = vshrl.u32 %v7493_v37, %v2570_v1  ;;  %v2462_v2 = vadd.s32 1, %v3873_v50  ;;  %v2323_v54 = vadd.s32 127, %v2322_v42  ;;  %v3870_v19 = vmin.u32 %v2415_v61, %v5914_v53 }
 0x28f   :  { %v2583_v32 = vor.u32 %v2582_v24, %v2581_v48  ;;  %vm2587_vm5 = vcmp.lt.s32.totalorder %v2568_v62, 1  ;;  %v5936_v0 = vpop.eup %4118  ;;  %v2571_v60 = vshrl.u32 %v7510_v27, %v2570_v1  ;;  %vm2590_vm11 = vcmp.lt.s32.totalorder %v2568_v62, 4 }
 0x290   :  { %7650 = vst [vmem:[#allocation95_spill] sm:$0xff] %v5936_v0  ;;  %v2586_v21 = vor.u32 %v2585_v49, %v2584_v26  ;;  %v2595_v38 = vsel %vm2587_vm5, %v2574_v63, %v2577_v36  ;;  %v7651_v34 = vand.u32 2147483647, %v5534_v25  ;;  %v7652_v7 = vmov 0 }
 0x291   :  { %v2417_v3 = vclz %v3870_v19  ;;  %vm2589_vm14 = vcmp.lt.s32.totalorder %v2568_v62, 3  ;;  %v2592_v50 = vsel %vm2590_vm11, %v2580_v56, 2102212464  ;;  %v2596_v42 = vsel %vm2590_vm11, %v2583_v32, 920167782 }
 0x292   :  { %vm5942_vm12 = vcmp.le.f32.partialorder %v7651_v34, 0.7853982  ;;  %vm2588_vm3 = vcmp.lt.s32.totalorder %v2568_v62, 2  ;;  %v2597_v24 = vsel %vm2589_vm14, %v2580_v56, %v2596_v42  ;;  %v2599_v61 = vsel %vm2587_vm5, %v2577_v36, %v2580_v56  ;;  %v5947_v1 = vpop.eup %4120 }
 0x293   :  { %v7653_v7 = vsel %vm5942_vm12, 4294967295, %v7652_v7  ;;  %v2600_v48 = vsel %vm2590_vm11, %v2586_v21, 1326507024  ;;  %7655 = vst [vmem:[#allocation97_spill] sm:$0xff] %v5947_v1  ;;  %v2324_v26 = vshll.u32 %v2323_v54, 23  ;;  %v3871_v49 = vadd.s32 4294967294, %v2417_v3  ;;  %v5951_v11 = vpop.eup %4122 }
 0x294   :  { %7654 = vst [vmem:[#allocation96_spill] sm:$0xff] %v7653_v7  ;;  %v2591_v0 = vsel %vm2587_vm5, %v2571_v60, %v2574_v63  ;;  %v2598_v34 = vsel %vm2588_vm3, %v2595_v38, %v2597_v24  ;;  %7656 = vst [vmem:[#allocation98_spill] sm:$0xff] %v5951_v11  ;;  %v2593_v17 = vsel %vm2589_vm14, %v2577_v36, %v2592_v50  ;;  %vm2463_vm5 = vcmp.gt.s32.totalorder %v2462_v2, 0  ;;  %v5981_v24 = vpop.f32.mrf.mxu1 }
 0x295   :  { %v2601_v19 = vsel %vm2589_vm14, %v2583_v32, %v2600_v48  ;;  %v5954_v39 = vmul.u32.u64.low %v5923_v41, %v2598_v34  ;;  %v5955_v15 = vmul.u32.u64.high %v5923_v41, %v2598_v34, %v5954_v39  ;;  %v5961_v56 = vsel %vm5919_vm0, %v5449_v33, %v2228_v29  ;;  %7659 = vst [vmem:[#allocation99_spill] sm:$0xff] %v5981_v24 }
 0x296   :  { %vm3872_vm11 = vcmp.lt.s32.totalorder %v3871_v49, 0  ;;  %v2602_v54 = vsel %vm2588_vm3, %v2599_v61, %v2601_v19  ;;  %v2319_v38 = vshll.u32 %v5841_v5, %v5895_v16  ;;  %4124 = vsinq.f32 %v5888_v28 }
 0x297   :  { %v5966_v63 = vsel %vm3872_vm11, 0, %v3871_v49  ;;  %v5969_v36 = vmul.u32.u64.low %v5923_v41, %v2602_v54  ;;  %v5970_v32 = vmul.u32.u64.high %v5923_v41, %v2602_v54, %v5969_v36  ;;  %v7657_v60 = vxor.u32 2147483648, %v5890_v8 }
 0x298   :  { %vm7658_vm14 = vcmp.lt.s32.totalorder %v5534_v25, 0  ;;  %v2594_v21 = vsel %vm2588_vm3, %v2591_v0, %v2593_v17  ;;  %v2460_v3 = vor.u32 8388608, %v5927_v44  ;;  %v2321_v50 = vor.u32 %v2320_v55, %v2319_v38 }
 0x299   :  { %v2125_v29 = vsel %vm7658_vm14, %v7657_v60, %v5890_v8  ;;  %v2325_v5 = vor.u32 4788187, %v2324_v26  ;;  %v2613_v16 = vadd.s32 1, %v5955_v15  ;;  %v2464_v42 = vsel %vm2463_vm5, %v2462_v2, 0 }
 0x29a   :  { %v7660_v28 = vsub.s32 4, %v5638_v23  ;;  %vm7661_vm11 = vcmp.lt.s32.totalorder %v5449_v33, 0  ;;  %4126 = vcosq.f32 %v5961_v56  ;;  %v2425_v17 = vsub.s32 4294967266, %v5966_v63 }
 0x29b   :  { %v2466_v8 = vand.u32 31, %v2464_v42  ;;  %v5995_v44 = vsel %vm5942_vm12, %v5534_v25, %v2125_v29  ;;  %v2405_v62 = vadd.s32 %v5844_v12, %v5856_v31  ;;  %v2610_v55 = vmul.u32 %v5923_v41, %v2594_v21 }
 0x29c   :  { %v5988_v61 = vsel %vm7661_vm11, %v7660_v28, %v5638_v23  ;;  %vm2612_vm3 = vc.u32 %v5970_v32, %v5954_v39  ;;  %v2661_v48 = vand.u32 2139095040, %v5981_v24  ;;  %v2326_v26 = vand.u32 2147483647, %v2325_v5 }
 0x29d   :  { %7662 = vst [vmem:[#allocation100_spill] sm:$0xff] %v5988_v61  ;;  %v2614_v23 = vsel %vm2612_vm3, %v2613_v16, %v5955_v15  ;;  %v2467_v2 = vsub.s32 32, %v2466_v8  ;;  %v2328_v49 = vcvt.s32.f32 %v2321_v50  ;;  %v6005_v19 = vshll.u32 %v2460_v3, 8 }
 0x29e   :  { %v2615_v34 = vadd.s32 %v2614_v23, %v2610_v55  ;;  %v2426_v54 = vadd.s32 127, %v2425_v17  ;;  %v2465_v38 = vshrl.u32 %v2464_v42, 5  ;;  %v2469_v12 = vshll.u32 %v7510_v27, %v2466_v8 }
 0x29f   :  { %v2470_v31 = vshrl.u32 %v7501_v40, %v2467_v2  ;;  %v2472_v36 = vshll.u32 %v7501_v40, %v2466_v8  ;;  %v2473_v15 = vshrl.u32 %v7502_v43, %v2467_v2  ;;  %v2476_v60 = vshrl.u32 %v7503_v30, %v2467_v2 }
 0x2a0   :  { %v2616_v41 = vadd.s32 536870912, %v2615_v34  ;;  %v2475_v21 = vshll.u32 %v7502_v43, %v2466_v8  ;;  %v2478_v50 = vshll.u32 %v7503_v30, %v2466_v8  ;;  %v2479_v3 = vshrl.u32 %v7525_v6, %v2467_v2 }
 0x2a1   :  { %v2471_v29 = vor.u32 %v2470_v31, %v2469_v12  ;;  %v2421_v5 = vsub.s32 32, %v5966_v63  ;;  %v2474_v42 = vor.u32 %v2473_v15, %v2472_v36  ;;  %v2482_v28 = vshrl.u32 %v7493_v37, %v2467_v2 }
 0x2a2   :  { %v6016_v16 = vshrl.u32 %v2616_v41, 30  ;;  %v2477_v17 = vor.u32 %v2476_v60, %v2475_v21  ;;  %v2480_v55 = vor.u32 %v2479_v3, %v2478_v50  ;;  %v2481_v23 = vshll.u32 %v7525_v6, %v2466_v8 }
 0x2a3   :  { %v2662_v0 = vshrl.u32 %v2661_v48, 23  ;;  %v2329_v1 = vmul.f32 %v2328_v49, %v2326_v26  ;;  %v2422_v12 = vshll.u32 %v5914_v53, %v5966_v63  ;;  %vm2484_vm5 = vcmp.lt.s32.totalorder %v2465_v38, 1  ;;  %v6024_v36 = vpop.eup %4124 }
 0x2a4   :  { %v2618_v31 = vshll.u32 %v6016_v16, 30  ;;  %v2427_v22 = vshll.u32 %v2426_v54, 23  ;;  %v2483_v57 = vor.u32 %v2482_v28, %v2481_v23  ;;  %vm2487_vm14 = vcmp.lt.s32.totalorder %v2465_v38, 4  ;;  %7663 = vst [vmem:[#allocation101_spill] sm:$0xff] %v6024_v36 }
 0x2a5   :  { %v2492_v41 = vsel %vm2484_vm5, %v2471_v29, %v2474_v42  ;;  %vm7402_vm11 = vcmp.lt.s32.totalorder %v5619_v14, 0  ;;  %v2423_v15 = vshrl.u32 %v2405_v62, %v2421_v5  ;;  %vm2486_vm3 = vcmp.lt.s32.totalorder %v2465_v38, 3 }
 0x2a6   :  { %v6027_v60 = vsub.s32 %v2615_v34, %v2618_v31  ;;  %v2493_v8 = vsel %vm2487_vm14, %v2480_v55, 920167782  ;;  %vm2485_vm15 = vcmp.lt.s32.totalorder %v2465_v38, 2  ;;  %v2489_v53 = vsel %vm2487_vm14, %v2477_v17, 2102212464 }
 0x2a7   :  { %v2494_v63 = vsel %vm2486_vm3, %v2477_v17, %v2493_v8  ;;  %v3881_v48 = vadd.s32 4294967169, %v2662_v0  ;;  %v6032_v26 = vpop.eup %4126  ;;  %v2468_v54 = vshrl.u32 %v7510_v27, %v2467_v2  ;;  %v2496_v62 = vsel %vm2484_vm5, %v2474_v42, %v2477_v17 }
 0x2a8   :  { %7664 = vst [vmem:[#allocation102_spill] sm:$0xff] %v6032_v26  ;;  %v2621_v49 = vsub.s32 0, %v6027_v60  ;;  %v2495_v21 = vsel %vm2485_vm15, %v2492_v41, %v2494_v63  ;;  %v2428_v34 = vor.u32 4788187, %v2427_v22  ;;  %v2497_v50 = vsel %vm2487_vm14, %v2483_v57, 1326507024 }
 0x2a9   :  { %v6040_v3 = vmul.u32.u64.low %v6005_v19, %v2495_v21  ;;  %v6041_v5 = vmul.u32.u64.high %v6005_v19, %v2495_v21, %v6040_v3  ;;  %v2488_v28 = vsel %vm2484_vm5, %v2468_v54, %v2471_v29  ;;  %v2490_v23 = vsel %vm2486_vm3, %v2474_v42, %v2489_v53 }
 0x2aa   :  { %v3878_v0 = vmin.u32 %v2621_v49, %v6027_v60  ;;  %v2498_v2 = vsel %vm2486_vm3, %v2480_v55, %v2497_v50  ;;  %v2330_v31 = vxor.u32 2147483648, %v2329_v1  ;;  %v2424_v41 = vor.u32 %v2423_v15, %v2422_v12 }
 0x2ab   :  { %v2499_v17 = vsel %vm2485_vm15, %v2496_v62, %v2498_v2  ;;  %v2668_v22 = vadd.s32 1, %v3881_v48  ;;  %4128 = vsinq.f32 %v5961_v56  ;;  %v2429_v21 = vand.u32 2147483647, %v2428_v34  ;;  %v6069_v62 = vpop.f32.mrf.mxu0 }
 0x2ac   :  { %v2623_v57 = vclz %v3878_v0  ;;  %v6051_v8 = vmul.u32.u64.low %v6005_v19, %v2499_v17  ;;  %v6052_v63 = vmul.u32.u64.high %v6005_v19, %v2499_v17, %v6051_v8  ;;  %v2491_v49 = vsel %vm2485_vm15, %v2488_v28, %v2490_v23 }
 0x2ad   :  { %v2510_v29 = vadd.s32 1, %v6041_v5  ;;  %vm2669_vm5 = vcmp.gt.s32.totalorder %v2668_v22, 0  ;;  %4130 = vcosq.f32 %v5995_v44  ;;  %v7665_v55 = vand.u32 2147483647, %v5981_v24 }
 0x2ae   :  { %v3879_v42 = vadd.s32 4294967294, %v2623_v57  ;;  %v2670_v15 = vsel %vm2669_vm5, %v2668_v22, 0  ;;  %4132 = vsinq.f32 %v5995_v44  ;;  %v6062_v56 = vsel %vm7402_vm11, %v2330_v31, %v2329_v1 }
 0x2af   :  { %v2665_v12 = vand.u32 8388607, %v7665_v55  ;;  %v2431_v53 = vcvt.s32.f32 %v2424_v41  ;;  %v2672_v48 = vand.u32 31, %v2670_v15  ;;  %v2611_v38 = vadd.s32 %v5954_v39, %v5970_v32 }
 0x2b0   :  { %vm3880_vm15 = vcmp.lt.s32.totalorder %v3879_v42, 0  ;;  %v2507_v54 = vmul.u32 %v6005_v19, %v2491_v49  ;;  %vm2509_vm14 = vc.u32 %v6052_v63, %v6040_v3  ;;  %v2764_v31 = vand.u32 2139095040, %v6069_v62 }
 0x2b1   :  { %v6071_v34 = vmul.f32 %v2431_v53, %v2429_v21  ;;  %v2626_v44 = vsel %vm3880_vm15, 0, %v3879_v42  ;;  %v2511_v50 = vsel %vm2509_vm14, %v2510_v29, %v6041_v5  ;;  %v2673_v1 = vsub.s32 32, %v2672_v48 }
 0x2b2   :  { %v2627_v0 = vsub.s32 32, %v2626_v44  ;;  %v2631_v28 = vsub.s32 4294967266, %v2626_v44  ;;  %v2512_v23 = vadd.s32 %v2511_v50, %v2507_v54  ;;  %v2666_v2 = vor.u32 8388608, %v2665_v12 }
 0x2b3   :  { %v2676_v39 = vshrl.u32 %v7501_v40, %v2673_v1  ;;  %v2679_v32 = vshrl.u32 %v7502_v43, %v2673_v1  ;;  %v2671_v17 = vshrl.u32 %v2670_v15, 5  ;;  %v2675_v22 = vshll.u32 %v7510_v27, %v2672_v48 }
 0x2b4   :  { %v2513_v41 = vadd.s32 536870912, %v2512_v23  ;;  %v2678_v57 = vshll.u32 %v7501_v40, %v2672_v48  ;;  %v2629_v5 = vshrl.u32 %v2611_v38, %v2627_v0  ;;  %v2632_v8 = vadd.s32 127, %v2631_v28 }
 0x2b5   :  { %v2681_v21 = vshll.u32 %v7502_v43, %v2672_v48  ;;  %v2682_v49 = vshrl.u32 %v7503_v30, %v2673_v1  ;;  %v2677_v42 = vor.u32 %v2676_v39, %v2675_v22  ;;  %v2684_v55 = vshll.u32 %v7503_v30, %v2672_v48 }
 0x2b6   :  { %v6082_v29 = vshrl.u32 %v2513_v41, 30  ;;  %v2685_v12 = vshrl.u32 %v7525_v6, %v2673_v1  ;;  %v2680_v53 = vor.u32 %v2679_v32, %v2678_v57  ;;  %v2687_v15 = vshll.u32 %v7525_v6, %v2672_v48 }
 0x2b7   :  { %v2683_v54 = vor.u32 %v2682_v49, %v2681_v21  ;;  %v2688_v50 = vshrl.u32 %v7493_v37, %v2673_v1  ;;  %v7666_v38 = vand.u32 2147483647, %v5619_v14  ;;  %v7667_v0 = vmov 0 }
 0x2b8   :  { %v2628_v28 = vshll.u32 %v6027_v60, %v2626_v44  ;;  %v2515_v39 = vshll.u32 %v6082_v29, 30  ;;  %v2686_v41 = vor.u32 %v2685_v12, %v2684_v55  ;;  %v2706_v22 = vshll.u32 %v2666_v2, 8  ;;  %v6096_v19 = vpop.eup %4128 }
 0x2b9   :  { %vm6090_vm3 = vcmp.le.f32.partialorder %v7666_v38, 0.7853982  ;;  %7670 = vst [vmem:[#allocation104_spill] sm:$0xff] %v6096_v19  ;;  %v2633_v32 = vshll.u32 %v2632_v8, 23  ;;  %v2674_v57 = vshrl.u32 %v7510_v27, %v2673_v1  ;;  %v2689_v48 = vor.u32 %v2688_v50, %v2687_v15 }
 0x2ba   :  { %v7668_v0 = vsel %vm6090_vm3, 4294967295, %v7667_v0  ;;  %v2765_v21 = vshrl.u32 %v2764_v31, 23  ;;  %v6099_v49 = vor.u32 %v2629_v5, %v2628_v28  ;;  %v6101_v59 = vsub.s32 %v2512_v23, %v2515_v39  ;;  %v6103_v38 = vpop.eup %4130 }
 0x2bb   :  { %7669 = vst [vmem:[#allocation103_spill] sm:$0xff] %v7668_v0  ;;  %vm2690_vm5 = vcmp.lt.s32.totalorder %v2671_v17, 1  ;;  %vm2693_vm15 = vcmp.lt.s32.totalorder %v2671_v17, 4  ;;  %7671 = vst [vmem:[#allocation105_spill] sm:$0xff] %v6103_v38  ;;  %vm2692_vm14 = vcmp.lt.s32.totalorder %v2671_v17, 3  ;;  %v6106_v55 = vpop.eup %4132  ;;  %vm2691_vm11 = vcmp.lt.s32.totalorder %v2671_v17, 2 }
 0x2bc   :  { %v2695_v60 = vsel %vm2693_vm15, %v2683_v54, 2102212464  ;;  %v2698_v44 = vsel %vm2690_vm5, %v2677_v42, %v2680_v53  ;;  %v2699_v2 = vsel %vm2693_vm15, %v2686_v41, 920167782  ;;  %7672 = vst [vmem:[#allocation106_spill] sm:$0xff] %v6106_v55  ;;  %v2518_v8 = vsub.s32 0, %v6101_v59 }
 0x2bd   :  { %v2700_v1 = vsel %vm2692_vm14, %v2683_v54, %v2699_v2  ;;  %v2702_v31 = vsel %vm2690_vm5, %v2680_v53, %v2683_v54  ;;  %v6111_v23 = vor.u32 4788187, %v2633_v32  ;;  %v2703_v12 = vsel %vm2693_vm15, %v2689_v48, 1326507024  ;;  %v6123_v32 = vpop.f32.mrf.mxu1 }
 0x2be   :  { %v2701_v5 = vsel %vm2691_vm11, %v2698_v44, %v2700_v1  ;;  %v3885_v15 = vadd.s32 4294967169, %v2765_v21  ;;  %v3874_v50 = vmin.u32 %v2518_v8, %v6101_v59  ;;  %v2694_v28 = vsel %vm2690_vm5, %v2674_v57, %v2677_v42 }
 0x2bf   :  { %v2696_v39 = vsel %vm2692_vm14, %v2680_v53, %v2695_v60  ;;  %v2704_v9 = vsel %vm2692_vm14, %v2686_v41, %v2703_v12  ;;  %v6119_v52 = vmul.u32.u64.low %v2706_v22, %v2701_v5  ;;  %v6120_v2 = vmul.u32.u64.high %v2706_v22, %v2701_v5, %v6119_v52 }
 0x2c0   :  { %v2705_v18 = vsel %vm2691_vm11, %v2702_v31, %v2704_v9  ;;  %v2771_v54 = vadd.s32 1, %v3885_v15  ;;  %v2520_v44 = vclz %v3874_v50  ;;  %v7673_v8 = vand.u32 2147483647, %v6069_v62 }
 0x2c1   :  { %v6125_v48 = vmul.u32.u64.low %v2706_v22, %v2705_v18  ;;  %v6126_v21 = vmul.u32.u64.high %v2706_v22, %v2705_v18, %v6125_v48  ;;  %v6134_v53 = vsel %vm6090_vm3, %v5619_v14, %v6062_v56  ;;  %v2697_v41 = vsel %vm2691_vm11, %v2694_v28, %v2696_v39 }
 0x2c2   :  { %v2768_v42 = vand.u32 8388607, %v7673_v8  ;;  %vm2772_vm5 = vcmp.gt.s32.totalorder %v2771_v54, 0  ;;  %v2508_v57 = vadd.s32 %v6040_v3, %v6052_v63  ;;  %v3875_v60 = vadd.s32 4294967294, %v2520_v44 }
 0x2c3   :  { %v2773_v18 = vsel %vm2772_vm5, %v2771_v54, 0  ;;  %v2635_v31 = vand.u32 2147483647, %v6111_v23  ;;  %v2637_v5 = vcvt.s32.f32 %v6099_v49  ;;  %v2716_v12 = vadd.s32 1, %v6120_v2 }
 0x2c4   :  { %v2775_v56 = vand.u32 31, %v2773_v18  ;;  %vm3876_vm15 = vcmp.lt.s32.totalorder %v3875_v60, 0  ;;  %v2713_v15 = vmul.u32 %v2706_v22, %v2697_v41  ;;  %vm2715_vm11 = vc.u32 %v6126_v21, %v6119_v52 }
 0x2c5   :  { %v2769_v17 = vor.u32 8388608, %v2768_v42  ;;  %v2523_v50 = vsel %vm3876_vm15, 0, %v3875_v60  ;;  %v2717_v3 = vsel %vm2715_vm11, %v2716_v12, %v6120_v2  ;;  %v2970_v28 = vand.u32 2139095040, %v6123_v32 }
 0x2c6   :  { %v2776_v63 = vsub.s32 32, %v2775_v56  ;;  %v2524_v39 = vsub.s32 32, %v2523_v50  ;;  %v2528_v54 = vsub.s32 4294967266, %v2523_v50  ;;  %v2718_v23 = vadd.s32 %v2717_v3, %v2713_v15 }
 0x2c7   :  { %v2774_v44 = vshrl.u32 %v2773_v18, 5  ;;  %v2525_v49 = vshll.u32 %v6101_v59, %v2523_v50  ;;  %v2778_v48 = vshll.u32 %v7510_v27, %v2775_v56  ;;  %v2781_v2 = vshll.u32 %v7501_v40, %v2775_v56 }
 0x2c8   :  { %v2779_v22 = vshrl.u32 %v7501_v40, %v2776_v63  ;;  %v2782_v8 = vshrl.u32 %v7502_v43, %v2776_v63  ;;  %v2526_v41 = vshrl.u32 %v2508_v57, %v2524_v39  ;;  %v2529_v42 = vadd.s32 127, %v2528_v54 }
 0x2c9   :  { %v2719_v60 = vadd.s32 536870912, %v2718_v23  ;;  %v2784_v1 = vshll.u32 %v7502_v43, %v2775_v56  ;;  %v2785_v9 = vshrl.u32 %v7503_v30, %v2776_v63  ;;  %v2787_v18 = vshll.u32 %v7503_v30, %v2775_v56 }
 0x2ca   :  { %v2780_v12 = vor.u32 %v2779_v22, %v2778_v48  ;;  %v2527_v15 = vor.u32 %v2526_v41, %v2525_v49  ;;  %v2530_v59 = vshll.u32 %v2529_v42, 23  ;;  %v2788_v3 = vshrl.u32 %v7525_v6, %v2776_v63 }
 0x2cb   :  { %v6156_v50 = vshrl.u32 %v2719_v60, 30  ;;  %v2783_v57 = vor.u32 %v2782_v8, %v2781_v2  ;;  %v2786_v39 = vor.u32 %v2785_v9, %v2784_v1  ;;  %v2790_v54 = vshll.u32 %v7525_v6, %v2775_v56 }
 0x2cc   :  { %v2791_v48 = vshrl.u32 %v7493_v37, %v2776_v63  ;;  %v6162_v22 = vmul.f32 %v2637_v5, %v2635_v31  ;;  %v2789_v19 = vor.u32 %v2788_v3, %v2787_v18  ;;  %v2809_v33 = vshll.u32 %v2769_v17, 8 }
 0x2cd   :  { %7674 = vst [vmem:[#allocation107_spill] sm:$0xff] %v6156_v50  ;;  %v2721_v26 = vshll.u32 %v6156_v50, 30  ;;  %v2531_v49 = vor.u32 4788187, %v2530_v59  ;;  %v2777_v41 = vshrl.u32 %v7510_v27, %v2776_v63  ;;  %v2971_v60 = vshrl.u32 %v2970_v28, 23 }
 0x2ce   :  { %v2792_v42 = vor.u32 %v2791_v48, %v2790_v54  ;;  %v7675_v13 = vand.u32 2147483647, %v5676_v4  ;;  %v7676_v8 = vmov 0  ;;  %v2534_v9 = vcvt.s32.f32 %v2527_v15 }
 0x2cf   :  { %v6172_v1 = vsub.s32 %v2718_v23, %v2721_v26  ;;  %vm2793_vm15 = vcmp.lt.s32.totalorder %v2774_v44, 1  ;;  %vm2796_vm11 = vcmp.lt.s32.totalorder %v2774_v44, 4  ;;  %vm2795_vm14 = vcmp.lt.s32.totalorder %v2774_v44, 3 }
 0x2d0   :  { %vm6168_vm5 = vcmp.le.f32.partialorder %v7675_v13, 0.7853982  ;;  %v2798_v31 = vsel %vm2796_vm11, %v2786_v39, 2102212464  ;;  %v2801_v5 = vsel %vm2793_vm15, %v2780_v12, %v2783_v57  ;;  %v2802_v56 = vsel %vm2796_vm11, %v2789_v19, 920167782 }
 0x2d1   :  { %v7677_v8 = vsel %vm6168_vm5, 4294967295, %v7676_v8  ;;  %v2724_v17 = vsub.s32 0, %v6172_v1  ;;  %vm2794_vm4 = vcmp.lt.s32.totalorder %v2774_v44, 2  ;;  %v2803_v63 = vsel %vm2795_vm14, %v2786_v39, %v2802_v56 }
 0x2d2   :  { %7678 = vst [vmem:[#allocation108_spill] sm:$0xff] %v7677_v8  ;;  %v2805_v28 = vsel %vm2793_vm15, %v2783_v57, %v2786_v39  ;;  %v2532_v2 = vand.u32 2147483647, %v2531_v49  ;;  %v2804_v13 = vsel %vm2794_vm4, %v2801_v5, %v2803_v63  ;;  %v2806_v18 = vsel %vm2796_vm11, %v2792_v42, 1326507024 }
 0x2d3   :  { %v3893_v59 = vadd.s32 4294967169, %v2971_v60  ;;  %v3882_v15 = vmin.u32 %v2724_v17, %v6172_v1  ;;  %v2797_v26 = vsel %vm2793_vm15, %v2777_v41, %v2780_v12  ;;  %v2799_v23 = vsel %vm2795_vm14, %v2783_v57, %v2798_v31 }
 0x2d4   :  { %v2807_v3 = vsel %vm2795_vm14, %v2789_v19, %v2806_v18  ;;  %v6178_v48 = vmul.u32.u64.low %v2809_v33, %v2804_v13  ;;  %v6179_v61 = vmul.u32.u64.high %v2809_v33, %v2804_v13, %v6178_v48  ;;  %v7679_v39 = vxor.u32 2147483648, %v6071_v34 }
 0x2d5   :  { %v2808_v54 = vsel %vm2794_vm4, %v2805_v28, %v2807_v3  ;;  %v2977_v11 = vadd.s32 1, %v3893_v59  ;;  %vm7680_vm1 = vcmp.lt.s32.totalorder %v5676_v4, 0  ;;  %v2726_v42 = vclz %v3882_v15 }
 0x2d6   :  { %v2434_v49 = vsel %vm7680_vm1, %v7679_v39, %v6071_v34  ;;  %v6187_v60 = vmul.u32.u64.low %v2809_v33, %v2808_v54  ;;  %v6188_v5 = vmul.u32.u64.high %v2809_v33, %v2808_v54, %v6187_v60  ;;  %4134 = vcosq.f32 %v6134_v53 }
 0x2d7   :  { %v2535_v19 = vmul.f32 %v2534_v9, %v2532_v2  ;;  %v2800_v12 = vsel %vm2794_vm4, %v2797_v26, %v2799_v23  ;;  %vm2978_vm14 = vcmp.gt.s32.totalorder %v2977_v11, 0  ;;  %4136 = vsinq.f32 %v6134_v53 }
 0x2d8   :  { %v3883_v57 = vadd.s32 4294967294, %v2726_v42  ;;  %v7681_v41 = vand.u32 2147483647, %v6123_v32  ;;  %v2979_v56 = vsel %vm2978_vm14, %v2977_v11, 0  ;;  %v6198_v34 = vsel %vm6168_vm5, %v5676_v4, %v2434_v49 }
 0x2d9   :  { %vm7417_vm1 = vcmp.lt.s32.totalorder %v5830_v45, 0  ;;  %v2639_v17 = vxor.u32 2147483648, %v6162_v22  ;;  %vm7416_vm15 = vcmp.lt.s32.totalorder %v5861_v46, 0  ;;  %v2819_v44 = vadd.s32 1, %v6179_v61 }
 0x2da   :  { %v2974_v31 = vand.u32 8388607, %v7681_v41  ;;  %v2981_v9 = vand.u32 31, %v2979_v56  ;;  %v2714_v53 = vadd.s32 %v6119_v52, %v6126_v21  ;;  %vm3884_vm4 = vcmp.lt.s32.totalorder %v3883_v57, 0 }
 0x2db   :  { %v2816_v63 = vmul.u32 %v2809_v33, %v2800_v12  ;;  %vm2818_vm11 = vc.u32 %v6188_v5, %v6178_v48  ;;  %v2536_v11 = vxor.u32 2147483648, %v2535_v19  ;;  %v2729_v28 = vsel %vm3884_vm4, 0, %v3883_v57 }
 0x2dc   :  { %v2820_v2 = vsel %vm2818_vm11, %v2819_v44, %v6179_v61  ;;  %v2982_v13 = vsub.s32 32, %v2981_v9  ;;  %v2730_v18 = vsub.s32 32, %v2729_v28  ;;  %v2734_v59 = vsub.s32 4294967266, %v2729_v28 }
 0x2dd   :  { %v2821_v15 = vadd.s32 %v2820_v2, %v2816_v63  ;;  %v2975_v26 = vor.u32 8388608, %v2974_v31  ;;  %v6209_v23 = vshrl.u32 %v2979_v56, 5  ;;  %v2984_v3 = vshll.u32 %v7510_v27, %v2981_v9 }
 0x2de   :  { %v2985_v52 = vshrl.u32 %v7501_v40, %v2982_v13  ;;  %v2988_v33 = vshrl.u32 %v7502_v43, %v2982_v13  ;;  %v2731_v21 = vshll.u32 %v6172_v1, %v2729_v28  ;;  %v2735_v54 = vadd.s32 127, %v2734_v59 }
 0x2df   :  { %v2822_v39 = vadd.s32 536870912, %v2821_v15  ;;  %v2987_v49 = vshll.u32 %v7501_v40, %v2981_v9  ;;  %v2732_v61 = vshrl.u32 %v2714_v53, %v2730_v18  ;;  %v2990_v60 = vshll.u32 %v7502_v43, %v2981_v9 }
 0x2e0   :  { %v2986_v42 = vor.u32 %v2985_v52, %v2984_v3  ;;  %v2991_v12 = vshrl.u32 %v7503_v30, %v2982_v13  ;;  %v2736_v57 = vshll.u32 %v2735_v54, 23  ;;  %v2994_v56 = vshrl.u32 %v7525_v6, %v2982_v13 }
 0x2e1   :  { %v6218_v41 = vshrl.u32 %v2822_v39, 30  ;;  %v2989_v31 = vor.u32 %v2988_v33, %v2987_v49  ;;  %v2993_v63 = vshll.u32 %v7503_v30, %v2981_v9  ;;  %v2996_v1 = vshll.u32 %v7525_v6, %v2981_v9 }
 0x2e2   :  { %v2992_v44 = vor.u32 %v2991_v12, %v2990_v60  ;;  %v2997_v28 = vshrl.u32 %v7493_v37, %v2982_v13  ;;  %v2640_v53 = vsel %vm7417_vm1, %v2639_v17, %v6162_v22  ;;  %v2537_v2 = vsel %vm7416_vm15, %v2536_v11, %v2535_v19 }
 0x2e3   :  { %v2737_v18 = vor.u32 4788187, %v2736_v57  ;;  %v2824_v59 = vshll.u32 %v6218_v41, 30  ;;  %v7682_v3 = vand.u32 2147483647, %v5830_v45  ;;  %v7683_v52 = vmov 0  ;;  %v6236_v49 = vpop.eup %4134 }
 0x2e4   :  { %v2733_v33 = vor.u32 %v2732_v61, %v2731_v21  ;;  %v2995_v9 = vor.u32 %v2994_v56, %v2993_v63  ;;  %v2998_v54 = vor.u32 %v2997_v28, %v2996_v1  ;;  %v3015_v39 = vshll.u32 %v2975_v26, 8  ;;  %7686 = vst [vmem:[#allocation110_spill] sm:$0xff] %v6236_v49  ;;  %v6249_v11 = vpop.eup %4136 }
 0x2e5   :  { %vm6232_vm14 = vcmp.le.f32.partialorder %v7682_v3, 0.7853982  ;;  %v7687_v22 = vand.u32 2147483647, %v5861_v46  ;;  %v7688_v17 = vmov 0  ;;  %v6244_v19 = vsub.s32 %v2821_v15, %v2824_v59  ;;  %7691 = vst [vmem:[#allocation112_spill] sm:$0xff] %v6249_v11 }
 0x2e6   :  { %v7684_v52 = vsel %vm6232_vm14, 4294967295, %v7683_v52  ;;  %vm2999_vm11 = vcmp.lt.s32.totalorder %v6209_v23, 1  ;;  %vm3001_vm15 = vcmp.lt.s32.totalorder %v6209_v23, 3  ;;  %vm3002_vm1 = vcmp.lt.s32.totalorder %v6209_v23, 4 }
 0x2e7   :  { %7685 = vst [vmem:[#allocation109_spill] sm:$0xff] %v7684_v52  ;;  %vm6240_vm4 = vcmp.le.f32.partialorder %v7687_v22, 0.7853982  ;;  %v2738_v21 = vand.u32 2147483647, %v2737_v18  ;;  %v3007_v61 = vsel %vm2999_vm11, %v2986_v42, %v2989_v31  ;;  %v2827_v12 = vsub.s32 0, %v6244_v19  ;;  %v6262_v18 = vpop.f32.mrf.mxu0 }
 0x2e8   :  { %v7689_v17 = vsel %vm6240_vm4, 4294967295, %v7688_v17  ;;  %v3004_v26 = vsel %vm3002_vm1, %v2992_v44, 2102212464  ;;  %v3008_v60 = vsel %vm3002_vm1, %v2995_v9, 920167782  ;;  %v2983_v57 = vshrl.u32 %v7510_v27, %v2982_v13 }
 0x2e9   :  { %7690 = vst [vmem:[#allocation111_spill] sm:$0xff] %v7689_v17  ;;  %vm3000_vm9 = vcmp.lt.s32.totalorder %v6209_v23, 2  ;;  %v3009_v15 = vsel %vm3001_vm15, %v2992_v44, %v3008_v60  ;;  %v2740_v56 = vcvt.s32.f32 %v2733_v33  ;;  %v3011_v1 = vsel %vm2999_vm11, %v2989_v31, %v2992_v44 }
 0x2ea   :  { %v3010_v63 = vsel %vm3000_vm9, %v3007_v61, %v3009_v15  ;;  %v3012_v28 = vsel %vm3002_vm1, %v2998_v54, 1326507024  ;;  %v3886_v59 = vmin.u32 %v2827_v12, %v6244_v19  ;;  %v3003_v13 = vsel %vm2999_vm11, %v2983_v57, %v2986_v42  ;;  %v6290_v57 = vpop.f32.mrf.mxu1 }
 0x2eb   :  { %v3005_v3 = vsel %vm3001_vm15, %v2989_v31, %v3004_v26  ;;  %v3013_v33 = vsel %vm3001_vm15, %v2995_v9, %v3012_v28  ;;  %v2741_v22 = vmul.f32 %v2740_v56, %v2738_v21  ;;  %v7420_v12 = vand.u32 2147483647, %v6262_v18 }
 0x2ec   :  { %v3014_v61 = vsel %vm3000_vm9, %v3011_v1, %v3013_v33  ;;  %v6273_v60 = vmul.u32.u64.low %v3015_v39, %v3010_v63  ;;  %v6274_v44 = vmul.u32.u64.high %v3015_v39, %v3010_v63, %v6273_v60  ;;  %v2829_v54 = vclz %v3886_v59 }
 0x2ed   :  { %v6276_v15 = vmul.u32.u64.low %v3015_v39, %v3014_v61  ;;  %v6277_v36 = vmul.u32.u64.high %v3015_v39, %v3014_v61, %v6276_v15  ;;  %4138 = vcosq.f32 %v6198_v34  ;;  %v3006_v42 = vsel %vm3000_vm9, %v3003_v13, %v3005_v3 }
 0x2ee   :  { %v2867_v31 = vand.u32 2139095040, %v6262_v18  ;;  %v2435_v9 = vsub.s32 4, %v5902_v10  ;;  %4140 = vsinq.f32 %v6198_v34  ;;  %v2643_v21 = vsel %vm6232_vm14, %v5830_v45, %v2640_v53 }
 0x2ef   :  { %v3887_v26 = vadd.s32 4294967294, %v2829_v54  ;;  %v2540_v56 = vsel %vm6240_vm4, %v5861_v46, %v2537_v2  ;;  %v2742_v63 = vxor.u32 2147483648, %v2741_v22  ;;  %v3025_v23 = vadd.s32 1, %v6274_v44 }
 0x2f0   :  { %v2868_v1 = vshrl.u32 %v2867_v31, 23  ;;  %v3022_v28 = vmul.u32 %v3015_v39, %v3006_v42  ;;  %vm3024_vm15 = vc.u32 %v6277_v36, %v6273_v60  ;;  %v2871_v34 = vand.u32 8388607, %v7420_v12 }
 0x2f1   :  { %vm3888_vm9 = vcmp.lt.s32.totalorder %v3887_v26, 0  ;;  %v3026_v53 = vsel %vm3024_vm15, %v3025_v23, %v6274_v44  ;;  %v3073_v3 = vand.u32 2139095040, %v6290_v57  ;;  %v2641_v33 = vsub.s32 4, %v6016_v16 }
 0x2f2   :  { %v2832_v59 = vsel %vm3888_vm9, 0, %v3887_v26  ;;  %v3889_v13 = vadd.s32 4294967169, %v2868_v1  ;;  %4142 = vcosq.f32 %v2643_v21  ;;  %v3027_v61 = vadd.s32 %v3026_v53, %v3022_v28 }
 0x2f3   :  { %v2837_v2 = vsub.s32 4294967266, %v2832_v59  ;;  %vm7692_vm11 = vcmp.lt.s32.totalorder %v5676_v4, 0  ;;  %4144 = vsinq.f32 %v2643_v21  ;;  %v7694_v54 = vand.u32 2147483647, %v5981_v24 }
 0x2f4   :  { %v6305_v39 = vsel %vm7692_vm11, %v2435_v9, %v5902_v10  ;;  %v7695_v15 = vmov 0  ;;  %v2874_v44 = vadd.s32 1, %v3889_v13  ;;  %4146 = vcosq.f32 %v2540_v56 }
 0x2f5   :  { %7693 = vst [vmem:[#allocation113_spill] sm:$0xff] %v6305_v39  ;;  %vm6309_vm1 = vcmp.le.f32.partialorder %v7694_v54, 0.7853982  ;;  %vm7698_vm9 = vcmp.lt.s32.totalorder %v5981_v24, 0  ;;  %v3028_v31 = vadd.s32 536870912, %v3027_v61  ;;  %v2872_v26 = vor.u32 8388608, %v2871_v34 }
 0x2f6   :  { %v7696_v15 = vsel %vm6309_vm1, 4294967295, %v7695_v15  ;;  %v2743_v42 = vsel %vm7698_vm9, %v2742_v63, %v2741_v22  ;;  %v2833_v23 = vsub.s32 32, %v2832_v59  ;;  %v2838_v1 = vadd.s32 127, %v2837_v2 }
 0x2f7   :  { %7697 = vst [vmem:[#allocation114_spill] sm:$0xff] %v7696_v15  ;;  %vm2875_vm15 = vcmp.gt.s32.totalorder %v2874_v44, 0  ;;  %v3074_v28 = vshrl.u32 %v3073_v3, 23  ;;  %vm7699_vm11 = vcmp.lt.s32.totalorder %v5830_v45, 0  ;;  %4148 = vsinq.f32 %v2540_v56 }
 0x2f8   :  { %v6318_v10 = vsel %vm7699_vm11, %v2641_v33, %v6016_v16  ;;  %v6320_v9 = vshrl.u32 %v3028_v31, 30  ;;  %v2876_v21 = vsel %vm2875_vm15, %v2874_v44, 0  ;;  %v6325_v53 = vsel %vm6309_vm1, %v5981_v24, %v2743_v42 }
 0x2f9   :  { %7700 = vst [vmem:[#allocation115_spill] sm:$0xff] %v6318_v10  ;;  %v2817_v22 = vadd.s32 %v6178_v48, %v6188_v5  ;;  %v2878_v63 = vand.u32 31, %v2876_v21  ;;  %v2834_v13 = vshll.u32 %v6244_v19, %v2832_v59  ;;  %v6332_v16 = vadd.s32 %v6273_v60, %v6277_v36 }
 0x2fa   :  { %v3030_v56 = vshll.u32 %v6320_v9, 30  ;;  %v6335_v3 = vshll.u32 %v2872_v26, 8  ;;  %v2839_v2 = vshll.u32 %v2838_v1, 23  ;;  %v3897_v44 = vadd.s32 4294967169, %v3074_v28  ;;  %v6337_v42 = vpop.eup %4138  ;;  %v6349_v1 = vpop.f32.mrf.mxu0 }
 0x2fb   :  { %v2835_v33 = vshrl.u32 %v2817_v22, %v2833_v23  ;;  %v2879_v54 = vsub.s32 32, %v2878_v63  ;;  %7701 = vst [vmem:[#allocation116_spill] sm:$0xff] %v6337_v42  ;;  %v2877_v48 = vshrl.u32 %v2876_v21, 5  ;;  %v2881_v5 = vshll.u32 %v7510_v27, %v2878_v63  ;;  %v6343_v59 = vpop.eup %4140 }
 0x2fc   :  { %v6339_v31 = vsub.s32 %v3027_v61, %v3030_v56  ;;  %v2884_v19 = vshll.u32 %v7501_v40, %v2878_v63  ;;  %7702 = vst [vmem:[#allocation117_spill] sm:$0xff] %v6343_v59  ;;  %v2887_v26 = vshll.u32 %v7502_v43, %v2878_v63  ;;  %v2890_v28 = vshll.u32 %v7503_v30, %v2878_v63 }
 0x2fd   :  { %v2882_v36 = vshrl.u32 %v7501_v40, %v2879_v54  ;;  %v2885_v60 = vshrl.u32 %v7502_v43, %v2879_v54  ;;  %v2888_v23 = vshrl.u32 %v7503_v30, %v2879_v54  ;;  %v2891_v21 = vshrl.u32 %v7525_v6, %v2879_v54 }
 0x2fe   :  { %v3033_v61 = vsub.s32 0, %v6339_v31  ;;  %v2893_v22 = vshll.u32 %v7525_v6, %v2878_v63  ;;  %v2894_v47 = vshrl.u32 %v7493_v37, %v2879_v54  ;;  %v7703_v35 = vand.u32 2147483647, %v6290_v57 }
 0x2ff   :  { %v2883_v56 = vor.u32 %v2882_v36, %v2881_v5  ;;  %v2886_v12 = vor.u32 %v2885_v60, %v2884_v19  ;;  %v2889_v34 = vor.u32 %v2888_v23, %v2887_v26  ;;  %v2892_v0 = vor.u32 %v2891_v21, %v2890_v28  ;;  %v6362_v14 = vpop.eup %4142 }
 0x300   :  { %v3894_v49 = vmin.u32 %v3033_v61, %v6339_v31  ;;  %v6359_v20 = vand.u32 8388607, %v7703_v35  ;;  %7704 = vst [vmem:[#allocation118_spill] sm:$0xff] %v6362_v14  ;;  %v2836_v7 = vor.u32 %v2835_v33, %v2834_v13  ;;  %v2895_v38 = vor.u32 %v2894_v47, %v2893_v22  ;;  %v6364_v5 = vpop.eup %4144 }
 0x301   :  { %vm2899_vm9 = vcmp.lt.s32.totalorder %v2877_v48, 4  ;;  %v3080_v63 = vadd.s32 1, %v3897_v44  ;;  %7705 = vst [vmem:[#allocation119_spill] sm:$0xff] %v6364_v5  ;;  %v2880_v36 = vshrl.u32 %v7510_v27, %v2879_v54  ;;  %vm2896_vm15 = vcmp.lt.s32.totalorder %v2877_v48, 1  ;;  %v6368_v26 = vpop.eup %4146 }
 0x302   :  { %v3035_v19 = vclz %v3894_v49  ;;  %v2901_v60 = vsel %vm2899_vm9, %v2889_v34, 2102212464  ;;  %7706 = vst [vmem:[#allocation120_spill] sm:$0xff] %v6368_v26  ;;  %v2840_v35 = vor.u32 4788187, %v2839_v2  ;;  %vm2898_vm11 = vcmp.lt.s32.totalorder %v2877_v48, 3 }
 0x303   :  { %v2904_v23 = vsel %vm2896_vm15, %v2883_v56, %v2886_v12  ;;  %v2905_v61 = vsel %vm2899_vm9, %v2892_v0, 920167782  ;;  %vm2897_vm7 = vcmp.lt.s32.totalorder %v2877_v48, 2  ;;  %v2900_v47 = vsel %vm2896_vm15, %v2880_v36, %v2883_v56 }
 0x304   :  { %v3895_v28 = vadd.s32 4294967294, %v3035_v19  ;;  %v2906_v13 = vsel %vm2898_vm11, %v2889_v34, %v2905_v61  ;;  %v6371_v33 = vpop.eup %4148  ;;  %v2902_v44 = vsel %vm2898_vm11, %v2886_v12, %v2901_v60  ;;  %v2908_v54 = vsel %vm2896_vm15, %v2886_v12, %v2889_v34 }
 0x305   :  { %7707 = vst [vmem:[#allocation121_spill] sm:$0xff] %v6371_v33  ;;  %v2907_v49 = vsel %vm2897_vm7, %v2904_v23, %v2906_v13  ;;  %v2909_v21 = vsel %vm2899_vm9, %v2895_v38, 1326507024  ;;  %v2841_v55 = vand.u32 2147483647, %v2840_v35  ;;  %vm3081_vm6 = vcmp.gt.s32.totalorder %v3080_v63, 0 }
 0x306   :  { %vm3896_vm2 = vcmp.lt.s32.totalorder %v3895_v28, 0  ;;  %v2910_v22 = vsel %vm2898_vm11, %v2892_v0, %v2909_v21  ;;  %v6376_v2 = vmul.u32.u64.low %v6335_v3, %v2907_v49  ;;  %v6377_v11 = vmul.u32.u64.high %v6335_v3, %v2907_v49, %v6376_v2 }
 0x307   :  { %v3038_v19 = vsel %vm3896_vm2, 0, %v3895_v28  ;;  %v2911_v56 = vsel %vm2897_vm7, %v2908_v54, %v2910_v22  ;;  %v2903_v60 = vsel %vm2897_vm7, %v2900_v47, %v2902_v44  ;;  %v3082_v23 = vsel %vm3081_vm6, %v3080_v63, 0 }
 0x308   :  { %v3039_v36 = vsub.s32 32, %v3038_v19  ;;  %v3043_v61 = vsub.s32 4294967266, %v3038_v19  ;;  %v2843_v12 = vcvt.s32.f32 %v2836_v7  ;;  %v3084_v0 = vand.u32 31, %v3082_v23 }
 0x309   :  { %v6383_v38 = vmul.u32.u64.low %v6335_v3, %v2911_v56  ;;  %v6384_v34 = vmul.u32.u64.high %v6335_v3, %v2911_v56, %v6383_v38  ;;  %v2922_v35 = vadd.s32 1, %v6377_v11  ;;  %v3078_v28 = vor.u32 8388608, %v6359_v20 }
 0x30a   :  { %v3041_v13 = vshrl.u32 %v6332_v16, %v3039_v36  ;;  %v3044_v49 = vadd.s32 127, %v3043_v61  ;;  %v2844_v54 = vmul.f32 %v2843_v12, %v2841_v55  ;;  %v3040_v21 = vshll.u32 %v6339_v31, %v3038_v19 }
 0x30b   :  { %v2919_v48 = vmul.u32 %v6335_v3, %v2903_v60  ;;  %v3085_v47 = vsub.s32 32, %v3084_v0  ;;  %v6391_v7 = vshrl.u32 %v3082_v23, 5  ;;  %v3087_v44 = vshll.u32 %v7510_v27, %v3084_v0 }
 0x30c   :  { %v3045_v63 = vshll.u32 %v3044_v49, 23  ;;  %v3090_v22 = vshll.u32 %v7501_v40, %v3084_v0  ;;  %vm7449_vm7 = vcmp.lt.s32.totalorder %v6069_v62, 0  ;;  %v3042_v16 = vor.u32 %v3041_v13, %v3040_v21 }
 0x30d   :  { %vm2921_vm6 = vc.u32 %v6384_v34, %v6376_v2  ;;  %v3088_v20 = vshrl.u32 %v7501_v40, %v3085_v47  ;;  %v3093_v55 = vshll.u32 %v7502_v43, %v3084_v0  ;;  %v3091_v19 = vshrl.u32 %v7502_v43, %v3085_v47 }
 0x30e   :  { %v3046_v31 = vor.u32 4788187, %v3045_v63  ;;  %v2923_v3 = vsel %vm2921_vm6, %v2922_v35, %v6377_v11  ;;  %v3096_v56 = vshll.u32 %v7503_v30, %v3084_v0  ;;  %v3094_v60 = vshrl.u32 %v7503_v30, %v3085_v47 }
 0x30f   :  { %v2924_v36 = vadd.s32 %v2923_v3, %v2919_v48  ;;  %v3089_v61 = vor.u32 %v3088_v20, %v3087_v44  ;;  %v3097_v23 = vshrl.u32 %v7525_v6, %v3085_v47  ;;  %v3092_v12 = vor.u32 %v3091_v19, %v3090_v22 }
 0x310   :  { %v3099_v38 = vshll.u32 %v7525_v6, %v3084_v0  ;;  %v3100_v13 = vshrl.u32 %v7493_v37, %v3085_v47  ;;  %v6407_v49 = vshll.u32 %v3078_v28, 8  ;;  %v2845_v21 = vxor.u32 2147483648, %v2844_v54 }
 0x311   :  { %v2925_v63 = vadd.s32 536870912, %v2924_v36  ;;  %v3095_v11 = vor.u32 %v3094_v60, %v3093_v55  ;;  %v3098_v35 = vor.u32 %v3097_v23, %v3096_v56  ;;  %v7708_v51 = vand.u32 2147483647, %v6069_v62 }
 0x312   :  { %v3049_v44 = vcvt.s32.f32 %v3042_v16  ;;  %v3101_v20 = vor.u32 %v3100_v13, %v3099_v38  ;;  %vm3102_vm9 = vcmp.lt.s32.totalorder %v6391_v7, 1  ;;  %v3176_v0 = vand.u32 2139095040, %v6349_v1 }
 0x313   :  { %vm6411_vm2 = vcmp.le.f32.partialorder %v7708_v51, 0.7853982  ;;  %v3047_v22 = vand.u32 2147483647, %v3046_v31  ;;  %v6417_v3 = vshrl.u32 %v2925_v63, 30  ;;  %vm3105_vm15 = vcmp.lt.s32.totalorder %v6391_v7, 4 }
 0x314   :  { %v3110_v28 = vsel %vm3102_vm9, %v3089_v61, %v3092_v12  ;;  %vm3103_vm11 = vcmp.lt.s32.totalorder %v6391_v7, 2  ;;  %vm3104_vm6 = vcmp.lt.s32.totalorder %v6391_v7, 3  ;;  %v3111_v51 = vsel %vm3105_vm15, %v3098_v35, 920167782 }
 0x315   :  { %v3114_v16 = vsel %vm3102_vm9, %v3092_v12, %v3095_v11  ;;  %v2927_v55 = vshll.u32 %v6417_v3, 30  ;;  %v3107_v19 = vsel %vm3105_vm15, %v3095_v11, 2102212464  ;;  %v3112_v31 = vsel %vm3104_vm6, %v3095_v11, %v3111_v51 }
 0x316   :  { %v3115_v56 = vsel %vm3105_vm15, %v3101_v20, 1326507024  ;;  %v2846_v60 = vsel %vm7449_vm7, %v2845_v21, %v2844_v54  ;;  %v3086_v23 = vshrl.u32 %v7510_v27, %v3085_v47  ;;  %v3113_v38 = vsel %vm3103_vm11, %v3110_v28, %v3112_v31  ;;  %v6448_v20 = vpop.f32.mrf.mxu1 }
 0x317   :  { %v3116_v13 = vsel %vm3104_vm6, %v3098_v35, %v3115_v56  ;;  %v3050_v63 = vmul.f32 %v3049_v44, %v3047_v22  ;;  %v6436_v25 = vsub.s32 %v2924_v36, %v2927_v55  ;;  %v3177_v58 = vshrl.u32 %v3176_v0, 23 }
 0x318   :  { %v3117_v45 = vsel %vm3103_vm11, %v3114_v16, %v3116_v13  ;;  %v3106_v11 = vsel %vm3102_vm9, %v3086_v23, %v3089_v61  ;;  %v3108_v54 = vsel %vm3104_vm6, %v3092_v12, %v3107_v19  ;;  %v7711_v0 = vand.u32 2147483647, %v6349_v1  ;;  %v6475_v23 = vpop.f32.mrf.mxu0 }
 0x319   :  { %v6445_v47 = vmul.u32.u64.low %v6407_v49, %v3117_v45  ;;  %v6446_v21 = vmul.u32.u64.high %v6407_v49, %v3117_v45, %v6445_v47  ;;  %v2930_v35 = vsub.s32 0, %v6436_v25  ;;  %4150 = vcosq.f32 %v6325_v53 }
 0x31a   :  { %v6452_v36 = vmul.u32.u64.low %v6407_v49, %v3113_v38  ;;  %v6453_v44 = vmul.u32.u64.high %v6407_v49, %v3113_v38, %v6452_v36  ;;  %v3180_v22 = vand.u32 8388607, %v7711_v0  ;;  %vm7448_vm9 = vcmp.lt.s32.totalorder %v6123_v32, 0 }
 0x31b   :  { %v3901_v45 = vadd.s32 4294967169, %v3177_v58  ;;  %v6464_v12 = vsel %vm6411_vm2, %v6069_v62, %v2846_v60  ;;  %v3890_v28 = vmin.u32 %v2930_v35, %v6436_v25  ;;  %v3109_v51 = vsel %vm3103_vm11, %v3106_v11, %v3108_v54 }
 0x31c   :  { %v3382_v16 = vand.u32 2139095040, %v6448_v20  ;;  %4152 = vsinq.f32 %v6325_v53  ;;  %v3051_v55 = vxor.u32 2147483648, %v3050_v63  ;;  %vm3127_vm15 = vc.u32 %v6446_v21, %v6452_v36 }
 0x31d   :  { %v3183_v19 = vadd.s32 1, %v3901_v45  ;;  %v2932_v58 = vclz %v3890_v28  ;;  %v3128_v31 = vadd.s32 1, %v6453_v44  ;;  %v3181_v56 = vor.u32 8388608, %v3180_v22 }
 0x31e   :  { %v7442_v60 = vand.u32 2147483647, %v6448_v20  ;;  %4154 = vcosq.f32 %v6464_v12  ;;  %v3125_v7 = vmul.u32 %v6407_v49, %v3109_v51  ;;  %v3383_v38 = vshrl.u32 %v3382_v16, 23 }
 0x31f   :  { %vm3184_vm11 = vcmp.gt.s32.totalorder %v3183_v19, 0  ;;  %v2920_v53 = vadd.s32 %v6376_v2, %v6384_v34  ;;  %v3891_v13 = vadd.s32 4294967294, %v2932_v58  ;;  %v3129_v11 = vsel %vm3127_vm15, %v3128_v31, %v6453_v44 }
 0x320   :  { %v3185_v54 = vsel %vm3184_vm11, %v3183_v19, 0  ;;  %v6484_v47 = vsel %vm7448_vm9, %v3051_v55, %v3050_v63  ;;  %v3130_v35 = vadd.s32 %v3129_v11, %v3125_v7  ;;  %v6487_v45 = vshll.u32 %v3181_v56, 8 }
 0x321   :  { %v3187_v0 = vand.u32 31, %v3185_v54  ;;  %vm3892_vm6 = vcmp.lt.s32.totalorder %v3891_v13, 0  ;;  %v6491_v49 = vand.u32 8388607, %v7442_v60  ;;  %v3909_v51 = vadd.s32 4294967169, %v3383_v38 }
 0x322   :  { %v2935_v34 = vsel %vm3892_vm6, 0, %v3891_v13  ;;  %v3131_v44 = vadd.s32 536870912, %v3130_v35  ;;  %v6494_v55 = vshrl.u32 %v3185_v54, 5  ;;  %vm7454_vm7 = vcmp.lt.s32.totalorder %v6262_v18, 0 }
 0x323   :  { %v3188_v28 = vsub.s32 32, %v3187_v0  ;;  %v2936_v16 = vsub.s32 32, %v2935_v34  ;;  %v2940_v63 = vsub.s32 4294967266, %v2935_v34  ;;  %v3190_v19 = vshll.u32 %v7510_v27, %v3187_v0 }
 0x324   :  { %v6497_v58 = vshrl.u32 %v3131_v44, 30  ;;  %v3193_v56 = vshll.u32 %v7501_v40, %v3187_v0  ;;  %v2937_v11 = vshll.u32 %v6436_v25, %v2935_v34  ;;  %v3196_v61 = vshll.u32 %v7502_v43, %v3187_v0 }
 0x325   :  { %v3191_v31 = vshrl.u32 %v7501_v40, %v3188_v28  ;;  %v3194_v7 = vshrl.u32 %v7502_v43, %v3188_v28  ;;  %v2938_v13 = vshrl.u32 %v2920_v53, %v2936_v16  ;;  %v2941_v60 = vadd.s32 127, %v2940_v63 }
 0x326   :  { %v3197_v38 = vshrl.u32 %v7503_v30, %v3188_v28  ;;  %v3133_v22 = vshll.u32 %v6497_v58, 30  ;;  %v6506_v44 = vpop.eup %4150  ;;  %v3199_v52 = vshll.u32 %v7503_v30, %v3187_v0  ;;  %v3200_v10 = vshrl.u32 %v7525_v6, %v3188_v28 }
 0x327   :  { %v3192_v54 = vor.u32 %v3191_v31, %v3190_v19  ;;  %v3195_v2 = vor.u32 %v3194_v7, %v3193_v56  ;;  %7712 = vst [vmem:[#allocation122_spill] sm:$0xff] %v6506_v44  ;;  %v2939_v14 = vor.u32 %v2938_v13, %v2937_v11  ;;  %v2942_v5 = vshll.u32 %v2941_v60, 23 }
 0x328   :  { %v6510_v4 = vsub.s32 %v3130_v35, %v3133_v22  ;;  %v3198_v25 = vor.u32 %v3197_v38, %v3196_v61  ;;  %v3202_v53 = vshll.u32 %v7525_v6, %v3187_v0  ;;  %v3203_v34 = vshrl.u32 %v7493_v37, %v3188_v28 }
 0x329   :  { %v6514_v16 = vpop.eup %4152  ;;  %v7714_v63 = vand.u32 2147483647, %v6123_v32  ;;  %v2943_v60 = vor.u32 4788187, %v2942_v5  ;;  %v3189_v31 = vshrl.u32 %v7510_v27, %v3188_v28  ;;  %v3201_v56 = vor.u32 %v3200_v10, %v3199_v52 }
 0x32a   :  { %7713 = vst [vmem:[#allocation123_spill] sm:$0xff] %v6514_v16  ;;  %v3389_v7 = vadd.s32 1, %v3909_v51  ;;  %v2946_v35 = vcvt.s32.f32 %v2939_v14  ;;  %v3136_v61 = vsub.s32 0, %v6510_v4  ;;  %v3204_v22 = vor.u32 %v3203_v34, %v3202_v53 }
 0x32b   :  { %vm6518_vm15 = vcmp.le.f32.partialorder %v7714_v63, 0.7853982  ;;  %vm3205_vm11 = vcmp.lt.s32.totalorder %v6494_v55, 1  ;;  %v6525_v0 = vpop.eup %4154  ;;  %v2944_v11 = vand.u32 2147483647, %v2943_v60  ;;  %vm3207_vm6 = vcmp.lt.s32.totalorder %v6494_v55, 3 }
 0x32c   :  { %vm3208_vm9 = vcmp.lt.s32.totalorder %v6494_v55, 4  ;;  %v3213_v5 = vsel %vm3205_vm11, %v3192_v54, %v3195_v2  ;;  %v3898_v52 = vmin.u32 %v3136_v61, %v6510_v4  ;;  %v3217_v28 = vsel %vm3205_vm11, %v3195_v2, %v3198_v25 }
 0x32d   :  { %v3210_v14 = vsel %vm3208_vm9, %v3198_v25, 2102212464  ;;  %v3214_v10 = vsel %vm3208_vm9, %v3201_v56, 920167782  ;;  %v2947_v51 = vmul.f32 %v2946_v35, %v2944_v11  ;;  %vm3206_vm8 = vcmp.lt.s32.totalorder %v6494_v55, 2 }
 0x32e   :  { %v3215_v13 = vsel %vm3207_vm6, %v3198_v25, %v3214_v10  ;;  %v3218_v38 = vsel %vm3208_vm9, %v3204_v22, 1326507024  ;;  %v3138_v53 = vclz %v3898_v52  ;;  %v3209_v34 = vsel %vm3205_vm11, %v3189_v31, %v3192_v54 }
 0x32f   :  { %v3216_v63 = vsel %vm3206_vm8, %v3213_v5, %v3215_v13  ;;  %v3219_v60 = vsel %vm3207_vm6, %v3201_v56, %v3218_v38  ;;  %v3211_v61 = vsel %vm3207_vm6, %v3195_v2, %v3210_v14  ;;  %vm3390_vm9 = vcmp.gt.s32.totalorder %v3389_v7, 0 }
 0x330   :  { %v3220_v35 = vsel %vm3206_vm8, %v3217_v28, %v3219_v60  ;;  %v6549_v11 = vmul.u32.u64.low %v6487_v45, %v3216_v63  ;;  %v6550_v25 = vmul.u32.u64.high %v6487_v45, %v3216_v63, %v6549_v11  ;;  %v3899_v22 = vadd.s32 4294967294, %v3138_v53 }
 0x331   :  { %v6554_v54 = vmul.u32.u64.low %v6487_v45, %v3220_v35  ;;  %v6555_v31 = vmul.u32.u64.high %v6487_v45, %v3220_v35, %v6554_v54  ;;  %v7717_v56 = vsub.s32 4, %v6218_v41  ;;  %vm7718_vm11 = vcmp.lt.s32.totalorder %v6069_v62, 0 }
 0x332   :  { %4156 = vsinq.f32 %v6464_v12  ;;  %v2948_v5 = vxor.u32 2147483648, %v2947_v51  ;;  %v3391_v52 = vsel %vm3390_vm9, %v3389_v7, 0  ;;  %v6569_v14 = vsel %vm6518_vm15, %v6123_v32, %v6484_v47 }
 0x333   :  { %v6562_v2 = vsel %vm7718_vm11, %v7717_v56, %v6218_v41  ;;  %vm3900_vm6 = vcmp.lt.s32.totalorder %v3899_v22, 0  ;;  %v3212_v10 = vsel %vm3206_vm8, %v3209_v34, %v3211_v61  ;;  %v3393_v28 = vand.u32 31, %v3391_v52 }
 0x334   :  { %v3126_v13 = vadd.s32 %v6452_v36, %v6446_v21  ;;  %v3141_v41 = vsel %vm3900_vm6, 0, %v3899_v22  ;;  %v3231_v38 = vadd.s32 1, %v6550_v25  ;;  %v3387_v12 = vor.u32 8388608, %v6491_v49 }
 0x335   :  { %v3142_v7 = vsub.s32 32, %v3141_v41  ;;  %v3146_v53 = vsub.s32 4294967266, %v3141_v41  ;;  %v7719_v63 = vand.u32 2139095040, %v6475_v23  ;;  %v7720_v47 = vand.u32 2147483647, %v6475_v23 }
 0x336   :  { %v2949_v55 = vsel %vm7454_vm7, %v2948_v5, %v2947_v51  ;;  %v3228_v34 = vmul.u32 %v6487_v45, %v3212_v10  ;;  %vm3230_vm8 = vc.u32 %v6555_v31, %v6549_v11  ;;  %v3394_v21 = vsub.s32 32, %v3393_v28 }
 0x337   :  { %v3280_v60 = vshrl.u32 %v7719_v63, 23  ;;  %v6581_v35 = vand.u32 8388607, %v7720_v47  ;;  %v3143_v36 = vshll.u32 %v6510_v4, %v3141_v41  ;;  %v3144_v49 = vshrl.u32 %v3126_v13, %v3142_v7 }
 0x338   :  { %v3147_v61 = vadd.s32 127, %v3146_v53  ;;  %v3232_v22 = vsel %vm3230_vm8, %v3231_v38, %v6550_v25  ;;  %v3396_v56 = vshll.u32 %v7510_v27, %v3393_v28  ;;  %v3397_v63 = vshrl.u32 %v7501_v40, %v3394_v21 }
 0x339   :  { %v3233_v54 = vadd.s32 %v3232_v22, %v3228_v34  ;;  %v3400_v47 = vshrl.u32 %v7502_v43, %v3394_v21  ;;  %v3145_v51 = vor.u32 %v3144_v49, %v3143_v36  ;;  %v3399_v45 = vshll.u32 %v7501_v40, %v3393_v28 }
 0x33a   :  { %v3148_v5 = vshll.u32 %v3147_v61, 23  ;;  %v3403_v10 = vshrl.u32 %v7503_v30, %v3394_v21  ;;  %v3392_v59 = vshrl.u32 %v3391_v52, 5  ;;  %v3398_v4 = vor.u32 %v3397_v63, %v3396_v56 }
 0x33b   :  { %v3234_v42 = vadd.s32 536870912, %v3233_v54  ;;  %v3402_v13 = vshll.u32 %v7502_v43, %v3393_v28  ;;  %v7721_v25 = vand.u32 2147483647, %v6262_v18  ;;  %v3401_v7 = vor.u32 %v3400_v47, %v3399_v45 }
 0x33c   :  { %v3149_v38 = vor.u32 4788187, %v3148_v5  ;;  %v3405_v53 = vshll.u32 %v7503_v30, %v3393_v28  ;;  %v3406_v34 = vshrl.u32 %v7525_v6, %v3394_v21  ;;  %v3408_v52 = vshll.u32 %v7525_v6, %v3393_v28 }
 0x33d   :  { %vm6598_vm9 = vcmp.le.f32.partialorder %v7721_v25, 0.7853982  ;;  %v6604_v36 = vshrl.u32 %v3234_v42, 30  ;;  %v3404_v49 = vor.u32 %v3403_v10, %v3402_v13  ;;  %v3409_v61 = vshrl.u32 %v7493_v37, %v3394_v21 }
 0x33e   :  { %v3150_v22 = vand.u32 2147483647, %v3149_v38  ;;  %v3152_v56 = vcvt.s32.f32 %v3145_v51  ;;  %v3407_v63 = vor.u32 %v3406_v34, %v3405_v53  ;;  %v3427_v25 = vshll.u32 %v3387_v12, 8 }
 0x33f   :  { %v3236_v5 = vshll.u32 %v6604_v36, 30  ;;  %v3410_v47 = vor.u32 %v3409_v61, %v3408_v52  ;;  %vm3411_vm6 = vcmp.lt.s32.totalorder %v3392_v59, 1  ;;  %v3905_v45 = vadd.s32 4294967169, %v3280_v60  ;;  %v6610_v8 = vpop.eup %4156 }
 0x340   :  { %v3153_v42 = vmul.f32 %v3152_v56, %v3150_v22  ;;  %v3395_v10 = vshrl.u32 %v7510_v27, %v3394_v21  ;;  %vm3414_vm8 = vcmp.lt.s32.totalorder %v3392_v59, 4  ;;  %v3419_v28 = vsel %vm3411_vm6, %v3398_v4, %v3401_v7 }
 0x341   :  { %v7724_v13 = vand.u32 2147483647, %v6290_v57  ;;  %v6619_v51 = vsub.s32 %v3233_v54, %v3236_v5  ;;  %vm3413_vm11 = vcmp.lt.s32.totalorder %v3392_v59, 3  ;;  %v3416_v12 = vsel %vm3414_vm8, %v3404_v49, 2102212464 }
 0x342   :  { %v3420_v38 = vsel %vm3414_vm8, %v3407_v63, 920167782  ;;  %vm3412_vm13 = vcmp.lt.s32.totalorder %v3392_v59, 2  ;;  %v3415_v60 = vsel %vm3411_vm6, %v3395_v10, %v3398_v4  ;;  %v3423_v34 = vsel %vm3411_vm6, %v3401_v7, %v3404_v49 }
 0x343   :  { %vm6615_vm7 = vcmp.le.f32.partialorder %v7724_v13, 0.7853982  ;;  %v3421_v53 = vsel %vm3413_vm11, %v3404_v49, %v3420_v38  ;;  %v3154_v52 = vxor.u32 2147483648, %v3153_v42  ;;  %v3239_v21 = vsub.s32 0, %v6619_v51 }
 0x344   :  { %v3422_v61 = vsel %vm3412_vm13, %v3419_v28, %v3421_v53  ;;  %v3424_v22 = vsel %vm3414_vm8, %v3410_v47, 1326507024  ;;  %v3417_v56 = vsel %vm3413_vm11, %v3401_v7, %v3416_v12  ;;  %v6630_v54 = vsel %vm6598_vm9, %v6262_v18, %v2949_v55  ;;  %v6645_v53 = vpop.f32.mrf.mxu1 }
 0x345   :  { %v3425_v13 = vsel %vm3413_vm11, %v3407_v63, %v3424_v22  ;;  %v6623_v44 = vmul.u32.u64.low %v3427_v25, %v3422_v61  ;;  %v6624_v16 = vmul.u32.u64.high %v3427_v25, %v3422_v61, %v6623_v44  ;;  %v3902_v4 = vmin.u32 %v3239_v21, %v6619_v51 }
 0x346   :  { %v3426_v49 = vsel %vm3412_vm13, %v3423_v34, %v3425_v13  ;;  %v3286_v5 = vadd.s32 1, %v3905_v45  ;;  %4158 = vcosq.f32 %v6569_v14  ;;  %v3284_v7 = vor.u32 8388608, %v6581_v35 }
 0x347   :  { %v6635_v10 = vmul.u32.u64.low %v3427_v25, %v3426_v49  ;;  %v6636_v47 = vmul.u32.u64.high %v3427_v25, %v3426_v49, %v6635_v10  ;;  %vm7727_vm11 = vcmp.lt.s32.totalorder %v6290_v57, 0  ;;  %v3241_v28 = vclz %v3902_v4 }
 0x348   :  { %v3155_v63 = vsel %vm7727_vm11, %v3154_v52, %v3153_v42  ;;  %v3418_v12 = vsel %vm3412_vm13, %v3415_v60, %v3417_v56  ;;  %vm3287_vm6 = vcmp.gt.s32.totalorder %v3286_v5, 0  ;;  %4160 = vcosq.f32 %v6630_v54 }
 0x349   :  { %v3437_v45 = vadd.s32 1, %v6624_v16  ;;  %v3288_v38 = vsel %vm3287_vm6, %v3286_v5, 0  ;;  %v3229_v34 = vadd.s32 %v6549_v11, %v6555_v31  ;;  %v3903_v35 = vadd.s32 4294967294, %v3241_v28 }
 0x34a   :  { %v3290_v42 = vand.u32 31, %v3288_v38  ;;  %v6653_v59 = vsel %vm6615_vm7, %v6290_v57, %v3155_v63  ;;  %v3434_v60 = vmul.u32 %v3427_v25, %v3418_v12  ;;  %vm3436_vm13 = vc.u32 %v6636_v47, %v6623_v44 }
 0x34b   :  { %v6657_v52 = vshll.u32 %v3284_v7, 8  ;;  %vm3904_vm8 = vcmp.lt.s32.totalorder %v3903_v35, 0  ;;  %v3438_v61 = vsel %vm3436_vm13, %v3437_v45, %v6624_v16  ;;  %v3485_v11 = vand.u32 2139095040, %v6645_v53 }
 0x34c   :  { %v3291_v22 = vsub.s32 32, %v3290_v42  ;;  %v3244_v31 = vsel %vm3904_vm8, 0, %v3903_v35  ;;  %v3439_v56 = vadd.s32 %v3438_v61, %v3434_v60  ;;  %v6661_v13 = vshrl.u32 %v3288_v38, 5 }
 0x34d   :  { %v3293_v4 = vshll.u32 %v7510_v27, %v3290_v42  ;;  %v3245_v49 = vsub.s32 32, %v3244_v31  ;;  %v3249_v5 = vsub.s32 4294967266, %v3244_v31  ;;  %v3296_v25 = vshll.u32 %v7501_v40, %v3290_v42 }
 0x34e   :  { %v3299_v10 = vshll.u32 %v7502_v43, %v3290_v42  ;;  %v3440_v7 = vadd.s32 536870912, %v3439_v56  ;;  %v3294_v63 = vshrl.u32 %v7501_v40, %v3291_v22  ;;  %v3297_v16 = vshrl.u32 %v7502_v43, %v3291_v22 }
 0x34f   :  { %v3300_v28 = vshrl.u32 %v7503_v30, %v3291_v22  ;;  %v3246_v12 = vshll.u32 %v6619_v51, %v3244_v31  ;;  %v3247_v45 = vshrl.u32 %v3229_v34, %v3245_v49  ;;  %v3250_v38 = vadd.s32 127, %v3249_v5 }
 0x350   :  { %v3303_v35 = vshrl.u32 %v7525_v6, %v3291_v22  ;;  %v6671_v60 = vshrl.u32 %v3440_v7, 30  ;;  %v3295_v61 = vor.u32 %v3294_v63, %v3293_v4  ;;  %v3302_v55 = vshll.u32 %v7503_v30, %v3290_v42 }
 0x351   :  { %v3248_v15 = vor.u32 %v3247_v45, %v3246_v12  ;;  %v3251_v24 = vshll.u32 %v3250_v38, 23  ;;  %v3298_v26 = vor.u32 %v3297_v16, %v3296_v25  ;;  %v3301_v17 = vor.u32 %v3300_v28, %v3299_v10 }
 0x352   :  { %v3442_v50 = vshll.u32 %v6671_v60, 30  ;;  %v3304_v51 = vor.u32 %v3303_v35, %v3302_v55  ;;  %v3305_v34 = vshll.u32 %v7525_v6, %v3290_v42  ;;  %v3306_v31 = vshrl.u32 %v7493_v37, %v3291_v22 }
 0x353   :  { %v6679_v49 = vpop.eup %4158  ;;  %v3252_v4 = vor.u32 4788187, %v3251_v24  ;;  %v3292_v5 = vshrl.u32 %v7510_v27, %v3291_v22  ;;  %vm3308_vm6 = vcmp.lt.s32.totalorder %v6661_v13, 1  ;;  %v3486_v7 = vshrl.u32 %v3485_v11, 23 }
 0x354   :  { %v3255_v63 = vcvt.s32.f32 %v3248_v15  ;;  %v6683_v25 = vsub.s32 %v3439_v56, %v3442_v50  ;;  %v3307_v10 = vor.u32 %v3306_v31, %v3305_v34  ;;  %vm3311_vm13 = vcmp.lt.s32.totalorder %v6661_v13, 4 }
 0x355   :  { %v6686_v16 = vpop.eup %4160  ;;  %v7728_v55 = vand.u32 2147483647, %v6349_v1  ;;  %v3253_v24 = vand.u32 2147483647, %v3252_v4  ;;  %vm3309_vm11 = vcmp.lt.s32.totalorder %v6661_v13, 2  ;;  %v3316_v15 = vsel %vm3308_vm6, %v3295_v61, %v3298_v26 }
 0x356   :  { %v3313_v22 = vsel %vm3311_vm13, %v3301_v17, 2102212464  ;;  %v3445_v50 = vsub.s32 0, %v6683_v25  ;;  %vm3310_vm0 = vcmp.lt.s32.totalorder %v6661_v13, 3  ;;  %v3317_v11 = vsel %vm3311_vm13, %v3304_v51, 920167782 }
 0x357   :  { %vm6690_vm8 = vcmp.le.f32.partialorder %v7728_v55, 0.7853982  ;;  %v3320_v56 = vsel %vm3308_vm6, %v3298_v26, %v3301_v17  ;;  %v3256_v28 = vmul.f32 %v3255_v63, %v3253_v24  ;;  %v3312_v12 = vsel %vm3308_vm6, %v3292_v5, %v3295_v61 }
 0x358   :  { %v3318_v45 = vsel %vm3310_vm0, %v3301_v17, %v3317_v11  ;;  %v3321_v38 = vsel %vm3311_vm13, %v3307_v10, 1326507024  ;;  %v3910_v35 = vmin.u32 %v3445_v50, %v6683_v25  ;;  %v3314_v34 = vsel %vm3310_vm0, %v3298_v26, %v3313_v22 }
 0x359   :  { %v3319_v31 = vsel %vm3309_vm11, %v3316_v15, %v3318_v45  ;;  %v3322_v4 = vsel %vm3310_vm0, %v3304_v51, %v3321_v38  ;;  %v3257_v55 = vxor.u32 2147483648, %v3256_v28  ;;  %v3913_v5 = vadd.s32 4294967169, %v3486_v7 }
 0x35a   :  { %v3323_v21 = vsel %vm3309_vm11, %v3320_v56, %v3322_v4  ;;  %v6709_v33 = vmul.u32.u64.low %v6657_v52, %v3319_v31  ;;  %v6710_v46 = vmul.u32.u64.high %v6657_v52, %v3319_v31, %v6709_v33  ;;  %v3447_v63 = vclz %v3910_v35 }
 0x35b   :  { %v6713_v61 = vmul.u32.u64.low %v6657_v52, %v3323_v21  ;;  %v6714_v17 = vmul.u32.u64.high %v6657_v52, %v3323_v21, %v6713_v61  ;;  %4162 = vsinq.f32 %v6630_v54  ;;  %vm7731_vm6 = vcmp.lt.s32.totalorder %v6349_v1, 0 }
 0x35c   :  { %v3258_v26 = vsel %vm7731_vm6, %v3257_v55, %v3256_v28  ;;  %v3315_v51 = vsel %vm3309_vm11, %v3312_v12, %v3314_v34  ;;  %v7732_v10 = vand.u32 2147483647, %v6645_v53  ;;  %4164 = vcosq.f32 %v6653_v59  ;;  %vm7734_vm13 = vmmov %vm7731_vm6 }
 0x35d   :  { %v3911_v22 = vadd.s32 4294967294, %v3447_v63  ;;  %v3492_v15 = vadd.s32 1, %v3913_v5  ;;  %4166 = vsinq.f32 %v6653_v59  ;;  %v7733_v54 = vsub.s32 4, %v6604_v36 }
 0x35e   :  { %v3489_v24 = vand.u32 8388607, %v7732_v10  ;;  %v3465_v13 = vsub.s32 4, %v6671_v60  ;;  %v3334_v7 = vadd.s32 1, %v6710_v46  ;;  %v3261_v50 = vsel %vm6690_vm8, %v6349_v1, %v3258_v26 }
 0x35f   :  { %v3260_v21 = vsel %vm7734_vm13, %v7733_v54, %v6604_v36  ;;  %vm3912_vm11 = vcmp.lt.s32.totalorder %v3911_v22, 0  ;;  %v3331_v11 = vmul.u32 %v6657_v52, %v3315_v51  ;;  %vm3333_vm6 = vc.u32 %v6714_v17, %v6709_v33 }
 0x360   :  { %v3450_v59 = vsel %vm3912_vm11, 0, %v3911_v22  ;;  %v3335_v56 = vsel %vm3333_vm6, %v3334_v7, %v6710_v46  ;;  %v3490_v28 = vor.u32 8388608, %v3489_v24  ;;  %vm3493_vm0 = vcmp.gt.s32.totalorder %v3492_v15, 0 }
 0x361   :  { %v3435_v36 = vadd.s32 %v6623_v44, %v6636_v47  ;;  %v3451_v12 = vsub.s32 32, %v3450_v59  ;;  %v3455_v45 = vsub.s32 4294967266, %v3450_v59  ;;  %v3336_v38 = vadd.s32 %v3335_v56, %v3331_v11 }
 0x362   :  { %v7735_v35 = vsub.s32 4, %v6320_v9  ;;  %vm7736_vm13 = vcmp.lt.s32.totalorder %v6123_v32, 0  ;;  %4168 = vcosq.f32 %v3261_v50  ;;  %vm7737_vm11 = vcmp.lt.s32.totalorder %v6448_v20, 0 }
 0x363   :  { %v6751_v46 = vsel %vm7737_vm11, %v3465_v13, %v6671_v60  ;;  %v3494_v52 = vsel %vm3493_vm0, %v3492_v15, 0  ;;  %v3452_v31 = vshll.u32 %v6683_v25, %v3450_v59  ;;  %v3453_v44 = vshrl.u32 %v3435_v36, %v3451_v12 }
 0x364   :  { %v6746_v34 = vsel %vm7736_vm13, %v7735_v35, %v6320_v9  ;;  %v3456_v47 = vadd.s32 127, %v3455_v45  ;;  %v3337_v4 = vadd.s32 536870912, %v3336_v38  ;;  %4170 = vsinq.f32 %v3261_v50 }
 0x365   :  { %v3496_v55 = vand.u32 31, %v3494_v52  ;;  %v6754_v63 = vshll.u32 %v3490_v28, 8  ;;  %v3262_v9 = vsel %vm6690_vm8, 0, %v3260_v21  ;;  %v3454_v61 = vor.u32 %v3453_v44, %v3452_v31 }
 0x366   :  { %v3457_v5 = vshll.u32 %v3456_v47, 23  ;;  %v6759_v26 = vadd.s32 %v6709_v33, %v6714_v17  ;;  %v6761_v60 = vshrl.u32 %v3337_v4, 30  ;;  %v6763_v51 = vshrl.u32 %v3494_v52, 5 }
 0x367   :  { %v3497_v25 = vsub.s32 32, %v3496_v55  ;;  %v3499_v10 = vshll.u32 %v7510_v27, %v3496_v55  ;;  %v3502_v24 = vshll.u32 %v7501_v40, %v3496_v55  ;;  %v7738_v22 = vand.u32 2147483647, %v6448_v20 }
 0x368   :  { %v3458_v42 = vor.u32 4788187, %v3457_v5  ;;  %v3461_v54 = vcvt.s32.f32 %v3454_v61  ;;  %v3339_v33 = vshll.u32 %v6761_v60, 30  ;;  %v3505_v17 = vshll.u32 %v7502_v43, %v3496_v55  ;;  %v6779_v11 = vpop.eup %4162 }
 0x369   :  { %vm6769_vm0 = vcmp.le.f32.partialorder %v7738_v22, 0.7853982  ;;  %v3500_v21 = vshrl.u32 %v7501_v40, %v3497_v25  ;;  %v3503_v13 = vshrl.u32 %v7502_v43, %v3497_v25  ;;  %v3506_v7 = vshrl.u32 %v7503_v30, %v3497_v25  ;;  %v6785_v12 = vpop.eup %4164 }
 0x36a   :  { %v3508_v50 = vshll.u32 %v7503_v30, %v3496_v55  ;;  %v3459_v59 = vand.u32 2147483647, %v3458_v42  ;;  %v6781_v56 = vsub.s32 %v3336_v38, %v3339_v33  ;;  %v3509_v28 = vshrl.u32 %v7525_v6, %v3497_v25  ;;  %v6789_v52 = vpop.eup %4166 }
 0x36b   :  { %v3511_v36 = vshll.u32 %v7525_v6, %v3496_v55  ;;  %v3501_v40 = vor.u32 %v3500_v21, %v3499_v10  ;;  %v3504_v45 = vor.u32 %v3503_v13, %v3502_v24  ;;  %v3507_v43 = vor.u32 %v3506_v7, %v3505_v17 }
 0x36c   :  { %v3512_v35 = vshrl.u32 %v7493_v37, %v3497_v25  ;;  %v3462_v30 = vmul.f32 %v3461_v54, %v3459_v59  ;;  %v3342_v31 = vsub.s32 0, %v6781_v56  ;;  %v3510_v38 = vor.u32 %v3509_v28, %v3508_v50 }
 0x36d   :  { %v6792_v44 = vand.u32 3, %v3262_v9  ;;  %v3498_v47 = vshrl.u32 %v7510_v27, %v3497_v25  ;;  %vm3514_vm6 = vcmp.lt.s32.totalorder %v6763_v51, 1  ;;  %v7741_v55 = vand.u32 2147483647, %v6475_v23 }
 0x36e   :  { %v3513_v6 = vor.u32 %v3512_v35, %v3511_v36  ;;  %v3463_v4 = vxor.u32 2147483648, %v3462_v30  ;;  %v3906_v61 = vmin.u32 %v3342_v31, %v6781_v56  ;;  %vm3517_vm8 = vcmp.lt.s32.totalorder %v6763_v51, 4 }
 0x36f   :  { %vm6799_vm11 = vcmp.le.f32.partialorder %v7741_v55, 0.7853982  ;;  %v3522_v9 = vsel %vm3514_vm6, %v3501_v40, %v3504_v45  ;;  %vm3516_vm3 = vcmp.lt.s32.totalorder %v6763_v51, 3  ;;  %v3523_v27 = vsel %vm3517_vm8, %v3510_v38, 920167782  ;;  %v4169_v10 = vpop.eup %4168 }
 0x370   :  { %v3526_v5 = vsel %vm3514_vm6, %v3504_v45, %v3507_v43  ;;  %v3527_v25 = vsel %vm3517_vm8, %v3513_v6, 1326507024  ;;  %vm7744_vm13 = vcmp.lt.s32.totalorder %v6448_v20, 0  ;;  %v3344_v22 = vclz %v3906_v61 }
 0x371   :  { %v3464_v24 = vsel %vm7744_vm13, %v3463_v4, %v3462_v30  ;;  %v3519_v42 = vsel %vm3517_vm8, %v3507_v43, 2102212464  ;;  %v3524_v54 = vsel %vm3516_vm3, %v3507_v43, %v3523_v27  ;;  %v3518_v17 = vsel %vm3514_vm6, %v3498_v47, %v3501_v40  ;;  %v4171_v7 = vpop.eup %4170 }
 0x372   :  { %v3467_v33 = vsel %vm6769_vm0, %v6448_v20, %v3464_v24  ;;  %vm7745_vm10 = vcmp.lt.s32.totalorder %v6763_v51, 2  ;;  %v3528_v13 = vsel %vm3516_vm3, %v3510_v38, %v3527_v25  ;;  %v3907_v50 = vadd.s32 4294967294, %v3344_v22 }
 0x373   :  { %v3525_v21 = vsel %vm7745_vm10, %v3522_v9, %v3524_v54  ;;  %4172 = vcosq.f32 %v3467_v33  ;;  %vm7746_vm8 = vmmov %vm7745_vm10  ;;  %v3362_v28 = vsub.s32 4, %v6761_v60  ;;  %v3520_v36 = vsel %vm3516_vm3, %v3504_v45, %v3519_v42 }
 0x374   :  { %v3529_v59 = vsel %vm7746_vm8, %v3526_v5, %v3528_v13  ;;  %4174 = vsinq.f32 %v3467_v33  ;;  %vm3908_vm10 = vcmp.lt.s32.totalorder %v3907_v50, 0  ;;  %vm7747_vm6 = vcmp.lt.s32.totalorder %v6475_v23, 0  ;;  %vm7748_vm3 = vmmov %vm7746_vm8 }
 0x375   :  { %v6829_v40 = vmul.u32.u64.low %v6754_v63, %v3529_v59  ;;  %v6830_v43 = vmul.u32.u64.high %v6754_v63, %v3529_v59, %v6829_v40  ;;  %v6833_v35 = vmul.u32.u64.low %v6754_v63, %v3525_v21  ;;  %v6834_v30 = vmul.u32.u64.high %v6754_v63, %v3525_v21, %v6833_v35 }
 0x376   :  { %v3363_v31 = vsel %vm7747_vm6, %v3362_v28, %v6761_v60  ;;  %v3347_v38 = vsel %vm3908_vm10, 0, %v3907_v50  ;;  %vm3268_vm13 = vcmp.eq.s32.totalorder %v6792_v44, 0  ;;  %v3269_v47 = vxor.u32 2147483648, %v4171_v7 }
 0x377   :  { %v3272_v6 = vxor.u32 2147483648, %v4169_v10  ;;  %v3348_v4 = vsub.s32 32, %v3347_v38  ;;  %v3352_v45 = vsub.s32 4294967266, %v3347_v38  ;;  %v3521_v55 = vsel %vm7748_vm3, %v3518_v17, %v3520_v36 }
 0x378   :  { %vm3271_vm8 = vcmp.eq.s32.totalorder %v6792_v44, 2  ;;  %vm3539_vm12 = vc.u32 %v6830_v43, %v6833_v35  ;;  %v3365_v61 = vsel %vm6799_vm11, 0, %v3363_v31  ;;  %v3468_v60 = vsel %vm6769_vm0, 0, %v6751_v46 }
 0x379   :  { %v2950_v9 = vsub.s32 4, %v6417_v3  ;;  %v3349_v27 = vshll.u32 %v6781_v56, %v3347_v38  ;;  %v3350_v5 = vshrl.u32 %v6759_v26, %v3348_v4  ;;  %v3353_v25 = vadd.s32 127, %v3352_v45 }
 0x37a   :  { %v3540_v51 = vadd.s32 1, %v6834_v30  ;;  %4176 = vsinq.f32 %v6569_v14  ;;  %v3537_v24 = vmul.u32 %v6754_v63, %v3521_v55  ;;  %v3270_v22 = vsel %vm3268_vm13, %v4169_v10, %v3269_v47 }
 0x37b   :  { %v3273_v42 = vsel %vm3271_vm8, %v3272_v6, %v4171_v7  ;;  %v3351_v54 = vor.u32 %v3350_v5, %v3349_v27  ;;  %v3354_v15 = vshll.u32 %v3353_v25, 23  ;;  %vm7472_vm0 = vcmp.lt.s32.totalorder %v6645_v53, 0 }
 0x37c   :  { %v3541_v46 = vsel %vm3539_vm12, %v3540_v51, %v6834_v30  ;;  %v3472_v56 = vand.u32 3, %v3468_v60  ;;  %v6859_v26 = vand.u32 3, %v3365_v61  ;;  %vm3267_vm10 = vcmp.lt.s32.totalorder %v6792_v44, 2 }
 0x37d   :  { %v3542_v33 = vadd.s32 %v3541_v46, %v3537_v24  ;;  %vm7749_vm6 = vcmp.lt.s32.totalorder %v6262_v18, 0  ;;  %v3355_v63 = vor.u32 4788187, %v3354_v15  ;;  %v7750_v10 = vand.u32 2147483647, %v6645_v53 }
 0x37e   :  { %v2951_v14 = vsel %vm7749_vm6, %v2950_v9, %v6417_v3  ;;  %v6872_v21 = vadd.s32 %v6833_v35, %v6830_v43  ;;  %v3274_v13 = vsel %vm3267_vm10, %v3270_v22, %v3273_v42  ;;  %v2960_v3 = vxor.u32 2147483648, %v6779_v11 }
 0x37f   :  { %vm6867_vm13 = vcmp.le.f32.partialorder %v7750_v10, 0.7853982  ;;  %v2953_v7 = vsel %vm6598_vm9, 0, %v2951_v14  ;;  %v3543_v50 = vadd.s32 536870912, %v3542_v33  ;;  %v2963_v59 = vxor.u32 2147483648, %v6686_v16 }
 0x380   :  { %v2957_v44 = vand.u32 3, %v2953_v7  ;;  %v3356_v28 = vand.u32 2147483647, %v3355_v63  ;;  %v3358_v36 = vcvt.s32.f32 %v3351_v54  ;;  %v3156_v40 = vsub.s32 4, %v6497_v58  ;;  %v4173_v30 = vpop.eup %4172 }
 0x381   :  { %v3544_v43 = vshrl.u32 %v3543_v50, 30  ;;  %v4175_v41 = vpop.eup %4174  ;;  %v3478_v31 = vxor.u32 2147483648, %v4173_v30  ;;  %vm3477_vm9 = vcmp.eq.s32.totalorder %v3472_v56, 2  ;;  %vm3471_vm3 = vweird.f32 %v6448_v20 }
 0x382   :  { %vm2959_vm10 = vcmp.eq.s32.totalorder %v2957_v44, 0  ;;  %vm2962_vm6 = vcmp.eq.s32.totalorder %v2957_v44, 2  ;;  %v3359_v35 = vmul.f32 %v3358_v36, %v3356_v28  ;;  %v3475_v45 = vxor.u32 2147483648, %v4175_v41 }
 0x383   :  { %v2961_v38 = vsel %vm2959_vm10, %v6686_v16, %v2960_v3  ;;  %v2964_v47 = vsel %vm2962_vm6, %v2963_v59, %v6779_v11  ;;  %v3545_v6 = vshll.u32 %v3544_v43, 30  ;;  %v3568_v4 = vsub.s32 4, %v3544_v43 }
 0x384   :  { %v3360_v55 = vxor.u32 2147483648, %v3359_v35  ;;  %vm2958_vm12 = vcmp.lt.s32.totalorder %v2957_v44, 2  ;;  %vm7753_vm8 = vcmp.lt.s32.totalorder %v6290_v57, 0  ;;  %v3166_v60 = vxor.u32 2147483648, %v6789_v52 }
 0x385   :  { %v3157_v61 = vsel %vm7753_vm8, %v3156_v40, %v6497_v58  ;;  %v6887_v9 = vsub.s32 %v3542_v33, %v3545_v6  ;;  %v3569_v16 = vsel %vm7472_vm0, %v3568_v4, %v3544_v43  ;;  %v2965_v11 = vsel %vm2958_vm12, %v2961_v38, %v2964_v47  ;;  %v7760_v38 = vld [vmem:[#allocation121_spill] sm:$0xff]  ;;  %v7761_v6 = vld [vmem:[#allocation107_spill] sm:$0xff] }
 0x386   :  { %v3159_v27 = vsel %vm6615_vm7, 0, %v3157_v61  ;;  %vm7754_vm10 = vcmp.lt.s32.totalorder %v6475_v23, 0  ;;  %vm7755_vm6 = vcmp.eq.s32.totalorder %v3472_v56, 0  ;;  %v3479_v51 = vsel %vm3477_vm9, %v3478_v31, %v4175_v41 }
 0x387   :  { %v3361_v5 = vsel %vm7754_vm10, %v3360_v55, %v3359_v35  ;;  %v3476_v25 = vsel %vm7755_vm6, %v4173_v30, %v3475_v45  ;;  %v3163_v24 = vand.u32 3, %v3159_v27  ;;  %v3548_v22 = vsub.s32 0, %v6887_v9  ;;  %v4177_v39 = vpop.eup %4176  ;;  %v7758_v35 = vld [vmem:[#allocation92_spill] sm:$0xff] }
 0x388   :  { %v3364_v58 = vsel %vm6799_vm11, %v6475_v23, %v3361_v5  ;;  %v3571_v42 = vsel %vm6867_vm13, 0, %v3569_v16  ;;  %vm2956_vm12 = vweird.f32 %v6262_v18  ;;  %vm7756_vm7 = vweird.f32 %v6349_v1 }
 0x389   :  { %4178 = vcosq.f32 %v3364_v58  ;;  %v6905_v54 = vsel %vm7756_vm7, nan, %v3274_v13  ;;  %v6907_v15 = vsel %vm2956_vm12, nan, %v2965_v11  ;;  %vm3162_vm8 = vweird.f32 %v6290_v57 }
 0x38a   :  { %4180 = vsinq.f32 %v3364_v58  ;;  %v3914_v37 = vmin.u32 %v3548_v22, %v6887_v9  ;;  %vm7757_vm11 = vcmp.lt.s32.totalorder %v3472_v56, 2  ;;  %vm3165_vm9 = vcmp.eq.s32.totalorder %v3163_v24, 0 }
 0x38b   :  { %v3480_v46 = vsel %vm7757_vm11, %v3476_v25, %v3479_v51  ;;  %v6912_v33 = vand.u32 3, %v3571_v42  ;;  %v3167_v18 = vsel %vm3165_vm9, %v6785_v12, %v3166_v60  ;;  %v3169_v14 = vxor.u32 2147483648, %v6785_v12 }
 0x38c   :  { %v2850_v1 = vsel %vm6411_vm2, 0, %v6562_v2  ;;  %v3550_v63 = vclz %v3914_v37  ;;  %vm3168_vm10 = vcmp.eq.s32.totalorder %v3163_v24, 2  ;;  %v2857_v13 = vxor.u32 2147483648, %v6610_v8 }
 0x38d   :  { %v2854_v10 = vand.u32 3, %v2850_v1  ;;  %vm3164_vm6 = vcmp.lt.s32.totalorder %v3163_v24, 2  ;;  %v3170_v56 = vsel %vm3168_vm10, %v3169_v14, %v6789_v52  ;;  %v2860_v7 = vxor.u32 2147483648, %v6525_v0 }
 0x38e   :  { %v3056_v50 = vsel %vm6518_vm15, 0, %v6746_v34  ;;  %v3915_v44 = vadd.s32 4294967294, %v3550_v63  ;;  %v6927_v12 = vsel %vm3471_vm3, nan, %v3480_v46  ;;  %v3171_v48 = vsel %vm3164_vm6, %v3167_v18, %v3170_v56 }
 0x38f   :  { %vm2856_vm2 = vcmp.eq.s32.totalorder %v2854_v10, 0  ;;  %vm2855_vm12 = vcmp.lt.s32.totalorder %v2854_v10, 2  ;;  %vm2859_vm7 = vcmp.eq.s32.totalorder %v2854_v10, 2  ;;  %v3060_v3 = vand.u32 3, %v3056_v50 }
 0x390   :  { %v2858_v2 = vsel %vm2856_vm2, %v6525_v0, %v2857_v13  ;;  %vm3916_vm11 = vcmp.lt.s32.totalorder %v3915_v44, 0  ;;  %vm3374_vm9 = vcmp.eq.s32.totalorder %v6859_v26, 2  ;;  %v2861_v52 = vsel %vm2859_vm7, %v2860_v7, %v6610_v8  ;;  %v7767_v13 = vld [vmem:[#allocation123_spill] sm:$0xff] }
 0x391   :  { %v3063_v59 = vxor.u32 2147483648, %v4177_v39  ;;  %v3066_v19 = vxor.u32 2147483648, %v6679_v49  ;;  %v3553_v34 = vsel %vm3916_vm11, 0, %v3915_v44  ;;  %vm3371_vm15 = vcmp.eq.s32.totalorder %v6859_v26, 0 }
 0x392   :  { %v6936_v20 = vsel %vm3162_vm8, nan, %v3171_v48  ;;  %vm2853_vm3 = vweird.f32 %v6069_v62  ;;  %v2862_v0 = vsel %vm2855_vm12, %v2858_v2, %v2861_v52  ;;  %v3554_v28 = vsub.s32 32, %v3553_v34  ;;  %v7768_v48 = vld [vmem:[#allocation122_spill] sm:$0xff] }
 0x393   :  { %v3558_v36 = vsub.s32 4294967266, %v3553_v34  ;;  %vm3370_vm10 = vcmp.lt.s32.totalorder %v6859_v26, 2  ;;  %vm3061_vm6 = vcmp.lt.s32.totalorder %v3060_v3, 2  ;;  %vm3062_vm2 = vcmp.eq.s32.totalorder %v3060_v3, 0  ;;  %v7769_v26 = vld [vmem:[#allocation113_spill] sm:$0xff] }
 0x394   :  { %v3555_v8 = vshll.u32 %v6887_v9, %v3553_v34  ;;  %vm3368_vm7 = vweird.f32 %v6475_v23  ;;  %v2863_v40 = vsel %vm2853_vm3, nan, %v2862_v0  ;;  %vm3059_vm11 = vweird.f32 %v6123_v32  ;;  %v7763_v9 = vld [vmem:[#allocation120_spill] sm:$0xff]  ;;  %v7771_v0 = vld [vmem:[#allocation117_spill] sm:$0xff] }
 0x395   :  { %vm3065_vm0 = vcmp.eq.s32.totalorder %v3060_v3, 2  ;;  %v2538_v57 = vsub.s32 4, %v6082_v29  ;;  %v3556_v30 = vshrl.u32 %v6872_v21, %v3554_v28  ;;  %v3559_v62 = vadd.s32 127, %v3558_v36  ;;  %v7772_v36 = vld [vmem:[#allocation116_spill] sm:$0xff]  ;;  %v7797_v3 = vld [vmem:[#allocation61_spill] sm:$0xff] }
 0x396   :  { %v3064_v43 = vsel %vm3062_vm2, %v6679_v49, %v3063_v59  ;;  %v3067_v41 = vsel %vm3065_vm0, %v3066_v19, %v4177_v39  ;;  %vm7759_vm8 = vcmp.lt.s32.totalorder %v7758_v35, 0  ;;  %vm2544_vm12 = vweird.f32 %v7758_v35  ;;  %v4179_v45 = vpop.eup %4178 }
 0x397   :  { %v2539_v31 = vsel %vm7759_vm8, %v2538_v57, %v6082_v29  ;;  %v2548_v47 = vxor.u32 2147483648, %v7760_v38  ;;  %v2744_v4 = vsub.s32 4, %v7761_v6  ;;  %v3557_v55 = vor.u32 %v3556_v30, %v3555_v8  ;;  %v4181_v49 = vpop.eup %4180  ;;  %v7764_v29 = vld [vmem:[#allocation99_spill] sm:$0xff]  ;;  %v7774_v30 = vld [vmem:[#allocation80_spill] sm:$0xff] }
 0x398   :  { %v3560_v61 = vshll.u32 %v3559_v62, 23  ;;  %v2541_v21 = vsel %vm6240_vm4, 0, %v2539_v31  ;;  %v2551_v16 = vxor.u32 2147483648, %v7763_v9  ;;  %v3375_v11 = vxor.u32 2147483648, %v4179_v45  ;;  %v7775_v62 = vld [vmem:[#allocation115_spill] sm:$0xff] }
 0x399   :  { %v3068_v27 = vsel %vm3061_vm6, %v3064_v43, %v3067_v41  ;;  %v2545_v5 = vand.u32 3, %v2541_v21  ;;  %vm7765_vm0 = vcmp.lt.s32.totalorder %v7764_v29, 0  ;;  %v3564_v24 = vcvt.s32.f32 %v3557_v55  ;;  %v7779_v21 = vld [vmem:[#allocation83_spill] sm:$0xff] }
 0x39a   :  { %v2745_v25 = vsel %vm7765_vm0, %v2744_v4, %v7761_v6  ;;  %v3561_v51 = vor.u32 4788187, %v3560_v61  ;;  %v3372_v58 = vxor.u32 2147483648, %v4181_v49  ;;  %v3376_v39 = vsel %vm3374_vm9, %v3375_v11, %v4181_v49  ;;  %v7778_v4 = vld [vmem:[#allocation118_spill] sm:$0xff]  ;;  %v7781_v11 = vld [vmem:[#allocation72_spill] sm:$0xff] }
 0x39b   :  { %v2747_v42 = vsel %vm6309_vm1, 0, %v2745_v25  ;;  %vm2546_vm4 = vcmp.lt.s32.totalorder %v2545_v5, 2  ;;  %vm2547_vm3 = vcmp.eq.s32.totalorder %v2545_v5, 0  ;;  %vm2550_vm2 = vcmp.eq.s32.totalorder %v2545_v5, 2 }
 0x39c   :  { %v3562_v37 = vand.u32 2147483647, %v3561_v51  ;;  %v3373_v46 = vsel %vm3371_vm15, %v4179_v45, %v3372_v58  ;;  %v2549_v18 = vsel %vm2547_vm3, %v7763_v9, %v2548_v47  ;;  %v2552_v14 = vsel %vm2550_vm2, %v2551_v16, %v7760_v38  ;;  %v7777_v47 = vld [vmem:[#allocation119_spill] sm:$0xff]  ;;  %v7780_v16 = vld [vmem:[#allocation90_spill] sm:$0xff]  ;;  %v7785_v58 = vld [vmem:[#allocation105_spill] sm:$0xff] }
 0x39d   :  { %v3377_v1 = vsel %vm3370_vm10, %v3373_v46, %v3376_v39  ;;  %v2553_v63 = vsel %vm2546_vm4, %v2549_v18, %v2552_v14  ;;  %v2751_v10 = vand.u32 3, %v2747_v42  ;;  %v2754_v56 = vxor.u32 2147483648, %v7767_v13  ;;  %v7784_v51 = vld [vmem:[#allocation106_spill] sm:$0xff]  ;;  %v7786_v42 = vld [vmem:[#allocation96_spill] sm:$0xff] }
 0x39e   :  { %v3565_v7 = vmul.f32 %v3564_v24, %v3562_v37  ;;  %v3378_v50 = vsel %vm3368_vm7, nan, %v3377_v1  ;;  %v6974_v44 = vsel %vm3059_vm11, nan, %v3068_v27  ;;  %v2757_v2 = vxor.u32 2147483648, %v7768_v48  ;;  %v7782_v27 = vld [vmem:[#allocation89_spill] sm:$0xff]  ;;  %v7788_v37 = vld [vmem:[#allocation75_spill] sm:$0xff]  ;;  %v7790_v18 = vld [vmem:[#allocation112_spill] sm:$0xff] }
 0x39f   :  { %3606 = vmatprep.subr.mxu0 %v3378_v50  ;;  %vm2750_vm1 = vweird.f32 %v7764_v29  ;;  %vm2753_vm9 = vcmp.eq.s32.totalorder %v2751_v10, 0  ;;  %vm2756_vm15 = vcmp.eq.s32.totalorder %v2751_v10, 2  ;;  %v2438_v52 = vsel %vm6168_vm5, 0, %v7769_v26  ;;  %v7791_v1 = vld [vmem:[#allocation93_spill] sm:$0xff]  ;;  %v7796_v50 = vld [vmem:[#allocation110_spill] sm:$0xff] }
 0x3a0   :  { %v3566_v59 = vxor.u32 2147483648, %v3565_v7  ;;  %3607 = vmatpush1.msra.mxu0 %v6905_v54  ;;  %v2554_v23 = vsel %vm2544_vm12, nan, %v2553_v63  ;;  %v2755_v32 = vsel %vm2753_vm9, %v7768_v48, %v2754_v56  ;;  %v2758_v19 = vsel %vm2756_vm15, %v2757_v2, %v7767_v13  ;;  %v7792_v63 = vld [vmem:[#allocation91_spill] sm:$0xff] }
 0x3a1   :  { %3608 = vmatprep.subr.mxu0 %v6907_v15  ;;  %vm2752_vm10 = vcmp.lt.s32.totalorder %v2751_v10, 2  ;;  %v2442_v34 = vand.u32 3, %v2438_v52  ;;  %v2445_v28 = vxor.u32 2147483648, %v7771_v0  ;;  %v2448_v8 = vxor.u32 2147483648, %v7772_v36  ;;  %v7794_v56 = vld [vmem:[#allocation103_spill] sm:$0xff]  ;;  %v7798_v52 = vld [vmem:[#allocation101_spill] sm:$0xff] }
 0x3a2   :  { %vm7773_vm5 = vcmp.lt.s32.totalorder %v6645_v53, 0  ;;  %3609 = vmatpush1.msra.mxu0 %v2863_v40  ;;  %v2759_v54 = vsel %vm2752_vm10, %v2755_v32, %v2758_v19  ;;  %vm2441_vm6 = vweird.f32 %v7774_v30  ;;  %v2644_v41 = vsel %vm6232_vm14, 0, %v7775_v62  ;;  %v7800_v19 = vld [vmem:[#allocation100_spill] sm:$0xff] }
 0x3a3   :  { %v3567_v57 = vsel %vm7773_vm5, %v3566_v59, %v3565_v7  ;;  %3610 = vmatprep.subr.mxu0 %v2554_v23  ;;  %vm2443_vm7 = vcmp.lt.s32.totalorder %v2442_v34, 2  ;;  %vm2444_vm11 = vcmp.eq.s32.totalorder %v2442_v34, 0  ;;  %vm2447_vm8 = vcmp.eq.s32.totalorder %v2442_v34, 2  ;;  %v7799_v23 = vld [vmem:[#allocation98_spill] sm:$0xff] }
 0x3a4   :  { %v3570_v15 = vsel %vm6867_vm13, %v6645_v53, %v3567_v57  ;;  %v2446_v35 = vsel %vm2444_vm11, %v7772_v36, %v2445_v28  ;;  %v2449_v40 = vsel %vm2447_vm8, %v2448_v8, %v7771_v0  ;;  %v2648_v31 = vand.u32 3, %v2644_v41  ;;  %v7801_v34 = vld [vmem:[#allocation94_spill] sm:$0xff] }
 0x3a5   :  { %4182 = vcosq.f32 %v3570_v15  ;;  %v2450_v38 = vsel %vm2443_vm7, %v2446_v35, %v2449_v40  ;;  %v2651_v6 = vxor.u32 2147483648, %v7777_v47  ;;  %v2654_v45 = vxor.u32 2147483648, %v7778_v4 }
 0x3a6   :  { %4184 = vsinq.f32 %v3570_v15  ;;  %v7004_v17 = vsel %vm2750_vm1, nan, %v2759_v54  ;;  %v2451_v55 = vsel %vm2441_vm6, nan, %v2450_v38  ;;  %vm2650_vm14 = vcmp.eq.s32.totalorder %v2648_v31, 0 }
 0x3a7   :  { %vm2653_vm13 = vcmp.eq.s32.totalorder %v2648_v31, 2  ;;  %3611 = vmatpush1.msra.mxu0 %v2451_v55  ;;  %vm2649_vm12 = vcmp.lt.s32.totalorder %v2648_v31, 2  ;;  %v2652_v61 = vsel %vm2650_vm14, %v7778_v4, %v2651_v6  ;;  %v2126_v9 = vsub.s32 4, %v7779_v21  ;;  %v7804_v6 = vld [vmem:[#allocation104_spill] sm:$0xff] }
 0x3a8   :  { %v2655_v60 = vsel %vm2653_vm13, %v2654_v45, %v7777_v47  ;;  %vm2647_vm0 = vweird.f32 %v7780_v16  ;;  %vm2132_vm4 = vweird.f32 %v7781_v11  ;;  %v2332_v5 = vsub.s32 4, %v7782_v27  ;;  %v7803_v47 = vld [vmem:[#allocation65_spill] sm:$0xff] }
 0x3a9   :  { %v2656_v49 = vsel %vm2649_vm12, %v2652_v61, %v2655_v60  ;;  %vm7783_vm3 = vcmp.lt.s32.totalorder %v7781_v11, 0  ;;  %v2136_v24 = vxor.u32 2147483648, %v7784_v51  ;;  %v2139_v22 = vxor.u32 2147483648, %v7785_v58  ;;  %v7806_v11 = vld [vmem:[#allocation62_spill] sm:$0xff] }
 0x3aa   :  { %v7014_v29 = vsel %vm2647_vm0, nan, %v2656_v49  ;;  %v2127_v25 = vsel %vm7783_vm3, %v2126_v9, %v7779_v21  ;;  %vm7787_vm2 = vnez %v7786_v42  ;;  %vm7789_vm1 = vcmp.lt.s32.totalorder %v7788_v37, 0  ;;  %v7805_v21 = vld [vmem:[#allocation102_spill] sm:$0xff] }
 0x3ab   :  { %v2129_v39 = vsel %vm7787_vm2, 0, %v2127_v25  ;;  %v2333_v46 = vsel %vm7789_vm1, %v2332_v5, %v7782_v27  ;;  %vm2338_vm9 = vweird.f32 %v7788_v37  ;;  %v2342_v14 = vxor.u32 2147483648, %v7790_v18  ;;  %v7807_v5 = vld [vmem:[#allocation51_spill] sm:$0xff] }
 0x3ac   :  { %vm7793_vm15 = vnez %v7792_v63  ;;  %vm3580_vm10 = vcmp.eq.s32.totalorder %v6912_v33, 2  ;;  %v2133_v13 = vand.u32 3, %v2129_v39  ;;  %vm7795_vm5 = vnez %v7794_v56  ;;  %v7816_v56 = vld [vmem:[#allocation88_spill] sm:$0xff] }
 0x3ad   :  { %v2026_v10 = vsel %vm7793_vm15, 0, %v7791_v1  ;;  %v2335_v7 = vsel %vm7795_vm5, 0, %v2333_v46  ;;  %v2345_v48 = vxor.u32 2147483648, %v7796_v50  ;;  %vm3577_vm6 = vcmp.eq.s32.totalorder %v6912_v33, 0  ;;  %v7812_v1 = vld [vmem:[#allocation79_spill] sm:$0xff] }
 0x3ae   :  { %v2030_v2 = vand.u32 3, %v2026_v10  ;;  %v2339_v26 = vand.u32 3, %v2335_v7  ;;  %vm2029_vm7 = vweird.f32 %v7797_v3  ;;  %v2033_v59 = vxor.u32 2147483648, %v7798_v52  ;;  %v7814_v10 = vld [vmem:[#allocation52_spill] sm:$0xff] }
 0x3af   :  { %v2036_v32 = vxor.u32 2147483648, %v7799_v23  ;;  %vm3576_vm11 = vcmp.lt.s32.totalorder %v6912_v33, 2  ;;  %vm2134_vm8 = vcmp.lt.s32.totalorder %v2133_v13, 2  ;;  %vm2135_vm14 = vcmp.eq.s32.totalorder %v2133_v13, 0 }
 0x3b0   :  { %vm2138_vm13 = vcmp.eq.s32.totalorder %v2133_v13, 2  ;;  %vm7802_vm12 = vnez %v7801_v34  ;;  %vm3574_vm0 = vweird.f32 %v6645_v53  ;;  %v2137_v28 = vsel %vm2135_vm14, %v7785_v58, %v2136_v24  ;;  %v7808_v24 = vld [vmem:[#allocation87_spill] sm:$0xff] }
 0x3b1   :  { %v2232_v0 = vsel %vm7802_vm12, 0, %v7800_v19  ;;  %v2140_v36 = vsel %vm2138_vm13, %v2139_v22, %v7784_v51  ;;  %vm2340_vm3 = vcmp.lt.s32.totalorder %v2339_v26, 2  ;;  %vm2341_vm2 = vcmp.eq.s32.totalorder %v2339_v26, 0  ;;  %v7809_v22 = vld [vmem:[#allocation68_spill] sm:$0xff]  ;;  %v7823_v19 = vld [vmem:[#allocation78_spill] sm:$0xff] }
 0x3b2   :  { %v2141_v8 = vsel %vm2134_vm8, %v2137_v28, %v2140_v36  ;;  %v2343_v57 = vsel %vm2341_vm2, %v7796_v50, %v2342_v14  ;;  %vm2344_vm1 = vcmp.eq.s32.totalorder %v2339_v26, 2  ;;  %vm2032_vm15 = vcmp.eq.s32.totalorder %v2030_v2, 0  ;;  %v4183_v43 = vpop.eup %4182  ;;  %v7818_v50 = vld [vmem:[#allocation97_spill] sm:$0xff]  ;;  %v7820_v26 = vld [vmem:[#allocation70_spill] sm:$0xff] }
 0x3b3   :  { %v2142_v54 = vsel %vm2132_vm4, nan, %v2141_v8  ;;  %v2346_v30 = vsel %vm2344_vm1, %v2345_v48, %v7790_v18  ;;  %v2034_v62 = vsel %vm2032_vm15, %v7799_v23, %v2033_v59  ;;  %vm2035_vm5 = vcmp.eq.s32.totalorder %v2030_v2, 2  ;;  %v4185_v40 = vpop.eup %4184  ;;  %v7811_v18 = vld [vmem:[#allocation86_spill] sm:$0xff]  ;;  %v7822_v59 = vld [vmem:[#allocation95_spill] sm:$0xff] }
 0x3b4   :  { %3612 = vmatprep.subr.mxu0 %v2142_v54  ;;  %v2347_v41 = vsel %vm2340_vm3, %v2343_v57, %v2346_v30  ;;  %vm2031_vm14 = vcmp.lt.s32.totalorder %v2030_v2, 2  ;;  %v2037_v15 = vsel %vm2035_vm5, %v2036_v32, %v7798_v52  ;;  %v2236_v35 = vand.u32 3, %v2232_v0  ;;  %v7819_v2 = vld [vmem:[#allocation81_spill] sm:$0xff]  ;;  %v7825_v30 = vld [vmem:[#allocation82_spill] sm:$0xff] }
 0x3b5   :  { %v3581_v31 = vxor.u32 2147483648, %v4183_v43  ;;  %v2038_v38 = vsel %vm2031_vm14, %v2034_v62, %v2037_v15  ;;  %vm2235_vm8 = vweird.f32 %v7803_v47  ;;  %v2239_v4 = vxor.u32 2147483648, %v7804_v6  ;;  %v7826_v62 = vld [vmem:[#allocation77_spill] sm:$0xff]  ;;  %v7828_v15 = vld [vmem:[#allocation39_spill] sm:$0xff] }
 0x3b6   :  { %v3578_v45 = vxor.u32 2147483648, %v4185_v40  ;;  %v2348_v55 = vsel %vm2338_vm9, nan, %v2347_v41  ;;  %v2039_v61 = vsel %vm2029_vm7, nan, %v2038_v38  ;;  %vm2238_vm4 = vcmp.eq.s32.totalorder %v2236_v35, 0  ;;  %v7829_v38 = vld [vmem:[#allocation85_spill] sm:$0xff] }
 0x3b7   :  { %v3582_v60 = vsel %vm3580_vm10, %v3581_v31, %v4185_v40  ;;  %3613 = vmatpush1.msra.mxu0 %v2039_v61  ;;  %vm2237_vm13 = vcmp.lt.s32.totalorder %v2236_v35, 2  ;;  %v2240_v9 = vsel %vm2238_vm4, %v7805_v21, %v2239_v4  ;;  %v2242_v16 = vxor.u32 2147483648, %v7805_v21  ;;  %v7832_v61 = vld [vmem:[#allocation44_spill] sm:$0xff] }
 0x3b8   :  { %v3579_v49 = vsel %vm3577_vm6, %v4183_v43, %v3578_v45  ;;  %vm2241_vm12 = vcmp.eq.s32.totalorder %v2236_v35, 2  ;;  %v1714_v27 = vsub.s32 4, %v7806_v11  ;;  %vm1720_vm9 = vweird.f32 %v7807_v5  ;;  %v7831_v45 = vld [vmem:[#allocation40_spill] sm:$0xff] }
 0x3b9   :  { %v3583_v25 = vsel %vm3576_vm11, %v3579_v49, %v3582_v60  ;;  %v2243_v51 = vsel %vm2241_vm12, %v2242_v16, %v7804_v6  ;;  %v1724_v58 = vxor.u32 2147483648, %v7808_v24  ;;  %v1920_v42 = vsub.s32 4, %v7809_v22  ;;  %v7830_v6 = vld [vmem:[#allocation84_spill] sm:$0xff]  ;;  %v7835_v49 = vld [vmem:[#allocation71_spill] sm:$0xff] }
 0x3ba   :  { %v3584_v39 = vsel %vm3574_vm0, nan, %v3583_v25  ;;  %v2244_v37 = vsel %vm2237_vm13, %v2240_v9, %v2243_v51  ;;  %vm7810_vm10 = vcmp.lt.s32.totalorder %v7807_v5, 0  ;;  %v1727_v14 = vxor.u32 2147483648, %v7811_v18  ;;  %v7833_v9 = vld [vmem:[#allocation29_spill] sm:$0xff]  ;;  %v7836_v5 = vld [vmem:[#allocation56_spill] sm:$0xff] }
 0x3bb   :  { %v1715_v46 = vsel %vm7810_vm10, %v1714_v27, %v7806_v11  ;;  %3677 = vmatprep.subr.mxu1 %v3584_v39  ;;  %v2245_v33 = vsel %vm2235_vm8, nan, %v2244_v37  ;;  %vm7813_vm6 = vnez %v7812_v1  ;;  %vm7815_vm7 = vcmp.lt.s32.totalorder %v7814_v10, 0  ;;  %v7838_v51 = vld [vmem:[#allocation69_spill] sm:$0xff]  ;;  %v7840_v37 = vld [vmem:[#allocation35_spill] sm:$0xff] }
 0x3bc   :  { %v1717_v63 = vsel %vm7813_vm6, 0, %v1715_v46  ;;  %v1921_v13 = vsel %vm7815_vm7, %v1920_v42, %v7809_v22  ;;  %vm1926_vm11 = vweird.f32 %v7814_v10  ;;  %3678 = vmatpush1.msra.mxu1 %v6927_v12  ;;  %vm7817_vm0 = vnez %v7816_v56  ;;  %v7824_v12 = vld [vmem:[#allocation76_spill] sm:$0xff]  ;;  %v7845_v10 = vld [vmem:[#allocation49_spill] sm:$0xff] }
 0x3bd   :  { %v1721_v53 = vand.u32 3, %v1717_v63  ;;  %v1923_v7 = vsel %vm7817_vm0, 0, %v1921_v13  ;;  %v1930_v48 = vxor.u32 2147483648, %v7818_v50  ;;  %vm7821_vm3 = vnez %v7820_v26  ;;  %3679 = vmatprep.subr.mxu1 %v6936_v20  ;;  %v7844_v63 = vld [vmem:[#allocation66_spill] sm:$0xff] }
 0x3be   :  { %v1614_v3 = vsel %vm7821_vm3, 0, %v7819_v2  ;;  %v1927_v52 = vand.u32 3, %v1923_v7  ;;  %v1933_v23 = vxor.u32 2147483648, %v7822_v59  ;;  %v1621_v34 = vxor.u32 2147483648, %v7823_v19  ;;  %3680 = vmatpush1.msra.mxu1 %v6974_v44 }
 0x3bf   :  { %v1618_v32 = vand.u32 3, %v1614_v3  ;;  %vm1722_vm2 = vcmp.lt.s32.totalorder %v1721_v53, 2  ;;  %vm1723_vm1 = vcmp.eq.s32.totalorder %v1721_v53, 0  ;;  %vm1726_vm15 = vcmp.eq.s32.totalorder %v1721_v53, 2  ;;  %3681 = vmatprep.subr.mxu1 %v7004_v17  ;;  %v7847_v53 = vld [vmem:[#allocation64_spill] sm:$0xff]  ;;  %v7849_v3 = vld [vmem:[#allocation19_spill] sm:$0xff] }
 0x3c0   :  { %v1624_v0 = vxor.u32 2147483648, %v7824_v12  ;;  %v1725_v28 = vsel %vm1723_vm1, %v7811_v18, %v1724_v58  ;;  %v1728_v36 = vsel %vm1726_vm15, %v1727_v14, %v7808_v24  ;;  %vm1928_vm5 = vcmp.lt.s32.totalorder %v1927_v52, 2  ;;  %3682 = vmatpush1.msra.mxu1 %v7014_v29  ;;  %v7839_v58 = vld [vmem:[#allocation45_spill] sm:$0xff]  ;;  %v7842_v18 = vld [vmem:[#allocation74_spill] sm:$0xff] }
 0x3c1   :  { %vm1929_vm14 = vcmp.eq.s32.totalorder %v1927_v52, 0  ;;  %v1729_v20 = vsel %vm1722_vm2, %v1725_v28, %v1728_v36  ;;  %vm1932_vm8 = vcmp.eq.s32.totalorder %v1927_v52, 2  ;;  %vm1619_vm4 = vcmp.lt.s32.totalorder %v1618_v32, 2  ;;  %3683 = vmatprep.subr.mxu1 %v2348_v55  ;;  %v7850_v52 = vld [vmem:[#allocation59_spill] sm:$0xff] }
 0x3c2   :  { %v1931_v8 = vsel %vm1929_vm14, %v7822_v59, %v1930_v48  ;;  %v1730_v44 = vsel %vm1720_vm9, nan, %v1729_v20  ;;  %v1934_v57 = vsel %vm1932_vm8, %v1933_v23, %v7818_v50  ;;  %vm1620_vm13 = vcmp.eq.s32.totalorder %v1618_v32, 0  ;;  %3684 = vmatpush1.msra.mxu1 %v2245_v33  ;;  %v7843_v33 = vld [vmem:[#allocation73_spill] sm:$0xff]  ;;  %v7851_v23 = vld [vmem:[#allocation58_spill] sm:$0xff] }
 0x3c3   :  { %vm1623_vm12 = vcmp.eq.s32.totalorder %v1618_v32, 2  ;;  %3614 = vmatprep.subr.mxu0 %v1730_v44  ;;  %v1935_v17 = vsel %vm1928_vm5, %v1931_v8, %v1934_v57  ;;  %v1622_v54 = vsel %vm1620_vm13, %v7824_v12, %v1621_v34  ;;  %vm7827_vm10 = vnez %v7826_v62  ;;  %v7852_v34 = vld [vmem:[#allocation67_spill] sm:$0xff]  ;;  %v7853_v12 = vld [vmem:[#allocation50_spill] sm:$0xff] }
 0x3c4   :  { %v1625_v29 = vsel %vm1623_vm12, %v1624_v0, %v7823_v19  ;;  %v1820_v43 = vsel %vm7827_vm10, 0, %v7825_v30  ;;  %v1936_v41 = vsel %vm1926_vm11, nan, %v1935_v17  ;;  %vm1617_vm9 = vweird.f32 %v7828_v15  ;;  %v7856_v62 = vld [vmem:[#allocation23_spill] sm:$0xff]  ;;  %v7858_v15 = vld [vmem:[#allocation20_spill] sm:$0xff] }
 0x3c5   :  { %v1626_v35 = vsel %vm1619_vm4, %v1622_v54, %v1625_v29  ;;  %v1824_v40 = vand.u32 3, %v1820_v43  ;;  %3685 = vmatprep.subr.mxu1 %v1936_v41  ;;  %v1827_v47 = vxor.u32 2147483648, %v7829_v38  ;;  %v1830_v4 = vxor.u32 2147483648, %v7830_v6  ;;  %v7855_v54 = vld [vmem:[#allocation63_spill] sm:$0xff]  ;;  %v7857_v43 = vld [vmem:[#allocation60_spill] sm:$0xff] }
 0x3c6   :  { %v1627_v31 = vsel %vm1617_vm9, nan, %v1626_v35  ;;  %v1302_v55 = vsub.s32 4, %v7831_v45  ;;  %vm1823_vm6 = vweird.f32 %v7832_v61  ;;  %vm7834_vm11 = vcmp.lt.s32.totalorder %v7833_v9, 0  ;;  %v7862_v61 = vld [vmem:[#allocation38_spill] sm:$0xff] }
 0x3c7   :  { %3615 = vmatpush1.msra.mxu0 %v1627_v31  ;;  %vm1825_vm7 = vcmp.lt.s32.totalorder %v1824_v40, 2  ;;  %vm1826_vm0 = vcmp.eq.s32.totalorder %v1824_v40, 0  ;;  %vm1829_vm3 = vcmp.eq.s32.totalorder %v1824_v40, 2  ;;  %v1312_v11 = vxor.u32 2147483648, %v7835_v49 }
 0x3c8   :  { %v1828_v60 = vsel %vm1826_vm0, %v7830_v6, %v1827_v47  ;;  %v1831_v21 = vsel %vm1829_vm3, %v1830_v4, %v7829_v38  ;;  %v1303_v16 = vsel %vm7834_vm11, %v1302_v55, %v7831_v45  ;;  %vm7837_vm2 = vnez %v7836_v5  ;;  %v7859_v47 = vld [vmem:[#allocation14_spill] sm:$0xff]  ;;  %v7866_v5 = vld [vmem:[#allocation16_spill] sm:$0xff] }
 0x3c9   :  { %v1832_v27 = vsel %vm1825_vm7, %v1828_v60, %v1831_v21  ;;  %v1305_v25 = vsel %vm7837_vm2, 0, %v1303_v16  ;;  %v1315_v24 = vxor.u32 2147483648, %v7838_v51  ;;  %v1508_v22 = vsub.s32 4, %v7839_v58  ;;  %v7861_v4 = vld [vmem:[#allocation54_spill] sm:$0xff]  ;;  %v7864_v21 = vld [vmem:[#allocation48_spill] sm:$0xff] }
 0x3ca   :  { %v1833_v42 = vsel %vm1823_vm6, nan, %v1832_v27  ;;  %vm1308_vm1 = vweird.f32 %v7833_v9  ;;  %v1309_v39 = vand.u32 3, %v1305_v25  ;;  %vm1514_vm15 = vweird.f32 %v7840_v37  ;;  %v7865_v16 = vld [vmem:[#allocation24_spill] sm:$0xff] }
 0x3cb   :  { %3686 = vmatpush1.msra.mxu1 %v1833_v42  ;;  %vm7841_vm5 = vcmp.lt.s32.totalorder %v7840_v37, 0  ;;  %v1518_v14 = vxor.u32 2147483648, %v7842_v18  ;;  %v1521_v1 = vxor.u32 2147483648, %v7843_v33  ;;  %vm7846_vm14 = vnez %v7845_v10  ;;  %v7870_v42 = vld [vmem:[#allocation30_spill] sm:$0xff] }
 0x3cc   :  { %v1509_v46 = vsel %vm7841_vm5, %v1508_v22, %v7839_v58  ;;  %v1202_v13 = vsel %vm7846_vm14, 0, %v7844_v63  ;;  %vm1310_vm8 = vcmp.lt.s32.totalorder %v1309_v39, 2  ;;  %vm1311_vm4 = vcmp.eq.s32.totalorder %v1309_v39, 0  ;;  %v7869_v58 = vld [vmem:[#allocation55_spill] sm:$0xff] }
 0x3cd   :  { %vm1314_vm13 = vcmp.eq.s32.totalorder %v1309_v39, 2  ;;  %vm7848_vm12 = vnez %v7847_v53  ;;  %v1313_v7 = vsel %vm1311_vm4, %v7838_v51, %v1312_v11  ;;  %v1206_v2 = vand.u32 3, %v1202_v13  ;;  %v7868_v51 = vld [vmem:[#allocation57_spill] sm:$0xff]  ;;  %v7875_v13 = vld [vmem:[#allocation11_spill] sm:$0xff]  ;;  %v7876_v53 = vld [vmem:[#allocation42_spill] sm:$0xff] }
 0x3ce   :  { %v1511_v56 = vsel %vm7848_vm12, 0, %v1509_v46  ;;  %v1316_v50 = vsel %vm1314_vm13, %v1315_v24, %v7835_v49  ;;  %vm1205_vm10 = vweird.f32 %v7849_v3  ;;  %v1209_v59 = vxor.u32 2147483648, %v7850_v52  ;;  %v7871_v39 = vld [vmem:[#allocation33_spill] sm:$0xff]  ;;  %v7873_v46 = vld [vmem:[#allocation46_spill] sm:$0xff] }
 0x3cf   :  { %v1515_v48 = vand.u32 3, %v1511_v56  ;;  %v1317_v26 = vsel %vm1310_vm8, %v1313_v7, %v1316_v50  ;;  %v1212_v32 = vxor.u32 2147483648, %v7851_v23  ;;  %vm7854_vm7 = vnez %v7853_v12  ;;  %v7877_v7 = vld [vmem:[#allocation41_spill] sm:$0xff] }
 0x3d0   :  { %v1318_v19 = vsel %vm1308_vm1, nan, %v1317_v26  ;;  %v1408_v0 = vsel %vm7854_vm7, 0, %v7852_v34  ;;  %vm1208_vm3 = vcmp.eq.s32.totalorder %v1206_v2, 0  ;;  %vm1207_vm11 = vcmp.lt.s32.totalorder %v1206_v2, 2  ;;  %v7879_v26 = vld [vmem:[#allocation36_spill] sm:$0xff] }
 0x3d1   :  { %vm1517_vm9 = vcmp.eq.s32.totalorder %v1515_v48, 0  ;;  %vm1520_vm6 = vcmp.eq.s32.totalorder %v1515_v48, 2  ;;  %3616 = vmatprep.subr.mxu0 %v1318_v19  ;;  %vm1516_vm0 = vcmp.lt.s32.totalorder %v1515_v48, 2  ;;  %v1210_v8 = vsel %vm1208_vm3, %v7851_v23, %v1209_v59 }
 0x3d2   :  { %v1519_v28 = vsel %vm1517_vm9, %v7843_v33, %v1518_v14  ;;  %v1522_v36 = vsel %vm1520_vm6, %v1521_v1, %v7842_v18  ;;  %vm1211_vm2 = vcmp.eq.s32.totalorder %v1206_v2, 2  ;;  %v1412_v17 = vand.u32 3, %v1408_v0  ;;  %v7878_v2 = vld [vmem:[#allocation53_spill] sm:$0xff]  ;;  %v7881_v0 = vld [vmem:[#allocation47_spill] sm:$0xff] }
 0x3d3   :  { %v1523_v20 = vsel %vm1516_vm0, %v1519_v28, %v1522_v36  ;;  %v1213_v57 = vsel %vm1211_vm2, %v1212_v32, %v7850_v52  ;;  %v1415_v29 = vxor.u32 2147483648, %v7855_v54  ;;  %vm1411_vm1 = vweird.f32 %v7856_v62  ;;  %v7885_v62 = vld [vmem:[#allocation7_spill] sm:$0xff] }
 0x3d4   :  { %v1524_v44 = vsel %vm1514_vm15, nan, %v1523_v20  ;;  %v1214_v30 = vsel %vm1207_vm11, %v1210_v8, %v1213_v57  ;;  %v1418_v41 = vxor.u32 2147483648, %v7857_v43  ;;  %v890_v35 = vsub.s32 4, %v7858_v15  ;;  %v7882_v20 = vld [vmem:[#allocation12_spill] sm:$0xff]  ;;  %v7883_v8 = vld [vmem:[#allocation43_spill] sm:$0xff]  ;;  %v7884_v57 = vld [vmem:[#allocation10_spill] sm:$0xff] }
 0x3d5   :  { %3687 = vmatprep.subr.mxu1 %v1524_v44  ;;  %v1215_v40 = vsel %vm1205_vm10, nan, %v1214_v30  ;;  %vm1413_vm5 = vcmp.lt.s32.totalorder %v1412_v17, 2  ;;  %vm1414_vm14 = vcmp.eq.s32.totalorder %v1412_v17, 0  ;;  %vm1417_vm8 = vcmp.eq.s32.totalorder %v1412_v17, 2 }
 0x3d6   :  { %3617 = vmatpush1.msra.mxu0 %v1215_v40  ;;  %v1416_v31 = vsel %vm1414_vm14, %v7857_v43, %v1415_v29  ;;  %v1419_v38 = vsel %vm1417_vm8, %v1418_v41, %v7855_v54  ;;  %vm7860_vm15 = vcmp.lt.s32.totalorder %v7859_v47, 0  ;;  %v900_v45 = vxor.u32 2147483648, %v7861_v4  ;;  %v7887_v41 = vld [vmem:[#allocation32_spill] sm:$0xff]  ;;  %v7888_v40 = vld [vmem:[#allocation21_spill] sm:$0xff] }
 0x3d7   :  { %v891_v6 = vsel %vm7860_vm15, %v890_v35, %v7858_v15  ;;  %v1420_v55 = vsel %vm1413_vm5, %v1416_v31, %v1419_v38  ;;  %vm7863_vm4 = vnez %v7862_v61  ;;  %v903_v9 = vxor.u32 2147483648, %v7864_v21  ;;  %v7890_v38 = vld [vmem:[#allocation31_spill] sm:$0xff]  ;;  %v7894_v61 = vld [vmem:[#allocation6_spill] sm:$0xff] }
 0x3d8   :  { %v893_v60 = vsel %vm7863_vm4, 0, %v891_v6  ;;  %v1096_v49 = vsub.s32 4, %v7865_v16  ;;  %v1421_v11 = vsel %vm1411_vm1, nan, %v1420_v55  ;;  %vm896_vm13 = vweird.f32 %v7859_v47  ;;  %v7891_v6 = vld [vmem:[#allocation13_spill] sm:$0xff] }
 0x3d9   :  { %v897_v27 = vand.u32 3, %v893_v60  ;;  %vm1102_vm12 = vweird.f32 %v7866_v5  ;;  %3688 = vmatpush1.msra.mxu1 %v1421_v11  ;;  %vm7867_vm10 = vcmp.lt.s32.totalorder %v7866_v5, 0  ;;  %v1106_v24 = vxor.u32 2147483648, %v7868_v51  ;;  %v7898_v11 = vld [vmem:[#allocation37_spill] sm:$0xff]  ;;  %v7899_v5 = vld [vmem:[#allocation34_spill] sm:$0xff] }
 0x3da   :  { %v1097_v25 = vsel %vm7867_vm10, %v1096_v49, %v7865_v16  ;;  %v1109_v22 = vxor.u32 2147483648, %v7869_v58  ;;  %vm7872_vm9 = vnez %v7871_v39  ;;  %vm7874_vm3 = vnez %v7873_v46  ;;  %v7896_v16 = vld [vmem:[#allocation8_spill] sm:$0xff] }
 0x3db   :  { %v790_v37 = vsel %vm7872_vm9, 0, %v7870_v42  ;;  %vm898_vm6 = vcmp.lt.s32.totalorder %v897_v27, 2  ;;  %vm899_vm7 = vcmp.eq.s32.totalorder %v897_v27, 0  ;;  %vm902_vm0 = vcmp.eq.s32.totalorder %v897_v27, 2 }
 0x3dc   :  { %v1099_v18 = vsel %vm7874_vm3, 0, %v1097_v25  ;;  %v901_v14 = vsel %vm899_vm7, %v7864_v21, %v900_v45  ;;  %v904_v33 = vsel %vm902_vm0, %v903_v9, %v7861_v4  ;;  %v794_v63 = vand.u32 3, %v790_v37  ;;  %v7892_v45 = vld [vmem:[#allocation9_spill] sm:$0xff] }
 0x3dd   :  { %v1103_v1 = vand.u32 3, %v1099_v18  ;;  %v905_v10 = vsel %vm898_vm6, %v901_v14, %v904_v33  ;;  %vm793_vm11 = vweird.f32 %v7875_v13  ;;  %v797_v56 = vxor.u32 2147483648, %v7876_v53  ;;  %v7905_v33 = vld [vmem:[#allocation25_spill] sm:$0xff] }
 0x3de   :  { %v800_v50 = vxor.u32 2147483648, %v7877_v7  ;;  %v906_v48 = vsel %vm896_vm13, nan, %v905_v10  ;;  %vm7880_vm5 = vnez %v7879_v26  ;;  %vm796_vm8 = vcmp.eq.s32.totalorder %v794_v63, 0 }
 0x3df   :  { %vm1105_vm2 = vcmp.eq.s32.totalorder %v1103_v1, 0  ;;  %vm1108_vm1 = vcmp.eq.s32.totalorder %v1103_v1, 2  ;;  %v996_v3 = vsel %vm7880_vm5, 0, %v7878_v2  ;;  %3618 = vmatprep.subr.mxu0 %v906_v48  ;;  %vm1104_vm14 = vcmp.lt.s32.totalorder %v1103_v1, 2 }
 0x3e0   :  { %v1107_v52 = vsel %vm1105_vm2, %v7869_v58, %v1106_v24  ;;  %v1110_v59 = vsel %vm1108_vm1, %v1109_v22, %v7868_v51  ;;  %vm795_vm15 = vcmp.lt.s32.totalorder %v794_v63, 2  ;;  %v798_v32 = vsel %vm796_vm8, %v7877_v7, %v797_v56  ;;  %v7900_v51 = vld [vmem:[#allocation15_spill] sm:$0xff]  ;;  %v7901_v24 = vld [vmem:[#allocation17_spill] sm:$0xff] }
 0x3e1   :  { %v1111_v23 = vsel %vm1104_vm14, %v1107_v52, %v1110_v59  ;;  %vm799_vm4 = vcmp.eq.s32.totalorder %v794_v63, 2  ;;  %v1000_v12 = vand.u32 3, %v996_v3  ;;  %v1003_v28 = vxor.u32 2147483648, %v7881_v0  ;;  %v7903_v22 = vld [vmem:[#allocation27_spill] sm:$0xff]  ;;  %v7906_v63 = vld [vmem:[#allocation22_spill] sm:$0xff]  ;;  %v7909_v59 = vld [vmem:[#allocation28_spill] sm:$0xff] }
 0x3e2   :  { %v1112_v19 = vsel %vm1102_vm12, nan, %v1111_v23  ;;  %v801_v34 = vsel %vm799_vm4, %v800_v50, %v7876_v53  ;;  %vm999_vm13 = vweird.f32 %v7882_v20  ;;  %v1006_v44 = vxor.u32 2147483648, %v7883_v8  ;;  %v7907_v53 = vld [vmem:[#allocation18_spill] sm:$0xff] }
 0x3e3   :  { %3689 = vmatprep.subr.mxu1 %v1112_v19  ;;  %v802_v36 = vsel %vm795_vm15, %v798_v32, %v801_v34  ;;  %v478_v17 = vsub.s32 4, %v7884_v57  ;;  %vm1001_vm10 = vcmp.lt.s32.totalorder %v1000_v12, 2  ;;  %vm1002_vm9 = vcmp.eq.s32.totalorder %v1000_v12, 0  ;;  %v7910_v32 = vld [vmem:[#allocation5_spill] sm:$0xff]  ;;  %v7911_v34 = vld [vmem:[#allocation26_spill] sm:$0xff] }
 0x3e4   :  { %v803_v54 = vsel %vm793_vm11, nan, %v802_v36  ;;  %vm1005_vm6 = vcmp.eq.s32.totalorder %v1000_v12, 2  ;;  %v1004_v29 = vsel %vm1002_vm9, %v7883_v8, %v1003_v28  ;;  %vm7886_vm12 = vcmp.lt.s32.totalorder %v7885_v62, 0 }
 0x3e5   :  { %3619 = vmatpush1.msra.mxu0 %v803_v54  ;;  %v1007_v30 = vsel %vm1005_vm6, %v1006_v44, %v7881_v0  ;;  %v479_v43 = vsel %vm7886_vm12, %v478_v17, %v7884_v57  ;;  %v488_v15 = vxor.u32 2147483648, %v7887_v41  ;;  %vm7889_vm7 = vnez %v7888_v40  ;;  %v3585_v0 = vld [vmem:[%s7263_s1] sm:$0x3]  ;;  %s4216_s1 = smov [#allocation2]  }
 0x3e6   :  { %v1008_v35 = vsel %vm1001_vm10, %v1004_v29, %v1007_v30  ;;  %v481_v31 = vsel %vm7889_vm7, 0, %v479_v43  ;;  %v491_v47 = vxor.u32 2147483648, %v7890_v38  ;;  %v684_v4 = vsub.s32 4, %v7891_v6  ;;  %s3761_s5 = sshll.u32 %s4216_s1, 4  ;;  %s3762_s5 = int_to_ptr.vmem [resolvable:$true] %s3761_s5 }
 0x3e7   :  { %v7893_v55 = vsub.s32 4, %v7892_v45  ;;  %vm7895_vm0 = vcmp.lt.s32.totalorder %v7894_v61, 0  ;;  %v1009_v21 = vsel %vm999_vm13, nan, %v1008_v35  ;;  %vm484_vm3 = vweird.f32 %v7885_v62  ;;  %s4186_s6 = scalar_lea.vmem %s3762_s5, 128  ;;  %p4191_p1 = scmp.lt.s32.totalorder %s3762_s5, %s3762_s5 }
 0x3e8   :  { %v485_v9 = vand.u32 3, %v481_v31  ;;  %3690 = vmatpush1.msra.mxu1 %v1009_v21  ;;  %vm7897_vm11 = vcmp.lt.s32.totalorder %v7896_v16, 0  ;;  %v694_v27 = vxor.u32 2147483648, %v7898_v11  ;;  %v697_v25 = vxor.u32 2147483648, %v7899_v5  ;;  %p4187_p0 = scmp.ne.s32.totalorder %s3762_s5, %s4186_s6  ;;  %p4192_p2 = scmp.lt.s32.totalorder %s4186_s6, %s4186_s6 }
 0x3e9   :  { %v582_v60 = vsel %vm7895_vm0, %v7893_v55, %v7892_v45  ;;  %v685_v49 = vsel %vm7897_vm11, %v684_v4, %v7891_v6  ;;  %vm7902_vm2 = vnez %v7901_v24  ;;  %vm7904_vm8 = vnez %v7903_v22 }
 0x3ea   :  { %v378_v58 = vsel %vm7902_vm2, 0, %v7900_v51  ;;  %vm486_vm1 = vcmp.lt.s32.totalorder %v485_v9, 2  ;;  %vm487_vm5 = vcmp.eq.s32.totalorder %v485_v9, 0  ;;  %vm490_vm14 = vcmp.eq.s32.totalorder %v485_v9, 2  ;;  %p4193_p3 = por %p4192_p2, %p4191_p1 }
 0x3eb   :  { %v687_v42 = vsel %vm7904_vm8, 0, %v685_v49  ;;  %v489_v39 = vsel %vm487_vm5, %v7890_v38, %v488_v15  ;;  %v492_v37 = vsel %vm490_vm14, %v491_v47, %v7887_v41  ;;  %v382_v18 = vand.u32 3, %v378_v58 }
 0x3ec   :  { %v691_v46 = vand.u32 3, %v687_v42  ;;  %v493_v14 = vsel %vm486_vm1, %v489_v39, %v492_v37  ;;  %vm690_vm15 = vweird.f32 %v7896_v16  ;;  %v385_v1 = vxor.u32 2147483648, %v7905_v33  ;;  %p4194_p4 = pnand %p4193_p3, %p4187_p0 }
 0x3ed   :  { %v388_v10 = vxor.u32 2147483648, %v7906_v63  ;;  %v494_v13 = vsel %vm484_vm3, nan, %v493_v14  ;;  %vm7908_vm10 = vnez %v7907_v53  ;;  %vm384_vm6 = vcmp.eq.s32.totalorder %v382_v18, 0 }
 0x3ee   :  { %vm693_vm4 = vcmp.eq.s32.totalorder %v691_v46, 0  ;;  %vm696_vm13 = vcmp.eq.s32.totalorder %v691_v46, 2  ;;  %v584_v56 = vsel %vm7908_vm10, 0, %v582_v60  ;;  %3620 = vmatprep.subr.mxu0 %v494_v13  ;;  %vm692_vm9 = vcmp.lt.s32.totalorder %v691_v46, 2 }
 0x3ef   :  { %v695_v7 = vsel %vm693_vm4, %v7899_v5, %v694_v27  ;;  %v698_v50 = vsel %vm696_vm13, %v697_v25, %v7898_v11  ;;  %vm383_vm12 = vcmp.lt.s32.totalorder %v382_v18, 2  ;;  %v386_v2 = vsel %vm384_vm6, %v7906_v63, %v385_v1 }
 0x3f0   :  { %v699_v48 = vsel %vm692_vm9, %v695_v7, %v698_v50  ;;  %vm387_vm7 = vcmp.eq.s32.totalorder %v382_v18, 2  ;;  %v588_v52 = vand.u32 3, %v584_v56  ;;  %v591_v23 = vxor.u32 2147483648, %v7909_v59 }
 0x3f1   :  { %v700_v26 = vsel %vm690_vm15, nan, %v699_v48  ;;  %v389_v3 = vsel %vm387_vm7, %v388_v10, %v7905_v33  ;;  %vm381_vm0 = vweird.f32 %v7910_v32  ;;  %v594_v12 = vxor.u32 2147483648, %v7911_v34 }
 0x3f2   :  { %3691 = vmatprep.subr.mxu1 %v700_v26  ;;  %v390_v19 = vsel %vm383_vm12, %v386_v2, %v389_v3  ;;  %vm3586_vm3 = vcmask 523264   ;;  %vm590_vm11 = vcmp.eq.s32.totalorder %v588_v52, 0  ;;  %vm593_vm2 = vcmp.eq.s32.totalorder %v588_v52, 2 }
 0x3f3   :  { %v391_v28 = vsel %vm381_vm0, nan, %v390_v19  ;;  %vm589_vm1 = vcmp.lt.s32.totalorder %v588_v52, 2  ;;  %v592_v36 = vsel %vm590_vm11, %v7911_v34, %v591_v23  ;;  %v595_v20 = vsel %vm593_vm2, %v594_v12, %v7909_v59 }
 0x3f4   :  { %3621 = vmatpush1.msra.mxu0 %v391_v28  ;;  %vm587_vm5 = vweird.f32 %v7894_v61  ;;  %v596_v8 = vsel %vm589_vm1, %v592_v36, %v595_v20  ;;  %v4215_v57 = vmov 1983009808   ;;  %v3741_v54 = vlaneseq }
 0x3f5   :  { %3917 = vmatmul.mubr.msk.f32.vlgmr.msra.gmra.mxu0 %vm3586_vm3, %v3585_v0  ;;  %v597_v44 = vsel %vm587_vm5, nan, %v596_v8  ;;  %v3739_v17 = vunpack.c.l.s4 %v4215_v57 }
 0x3f6   :  { %3692 = vmatpush1.msra.mxu1 %v597_v44  ;;  %v3742_v30 = vshrl.u32 %v3741_v54, 7 }
 0x3f7   :  { %3918 = vmatmul.mubr.msk.f32.vlgmr.msra.gmra.mxu1 %vm3586_vm3, %v3585_v0  ;;  %v3740_v29 = vunpack.c.0.s8 %v3739_v17 }
 0x3f9   :  { %v3743_v41 = vsub.s32 %v3740_v29, %v3742_v30 }
 0x4b5   :  { %v3656_v62 = vpop.f32.mrf.mxu0 }
 0x4b7   :  { %v3658_v43 = vpop.f32.mrf.mxu0  ;;  %v3727_v15 = vpop.f32.mrf.mxu1 }
 0x4b8   :  { %v3736_v35 = vcombine.low %v3656_v62, %v3658_v43 }
 0x4b9   :  { %v3729_v40 = vpop.f32.mrf.mxu1 }
 0x4ba   :  { %v3744_v31 = vrot.slane %v3736_v35, %v3743_v41  ;;  %v3737_v38 = vcombine.low %v3727_v15, %v3729_v40 }
 0x4bc   :  { %v3751_v47 = vrot.slane %v3737_v38, %v3743_v41 }
 0x4be   :  { %v3752_v6 = vcombine.low %v3744_v31, %v3751_v47 }
 0x4c0   :  { %3754 = vst [vmem:[#allocation2] sm:$0xff] %v3752_v6 }
 0x4c1   :  { %4197 = shalt.err (!%p4194_p4)
}
 0x4c2   :  { %3764 = dma.vmem_to_hbm [thread:$0]  %s3762_s5, 128, %s7265_s3, [#allocation3]  }
 0x4c3   :  { %4206 = dma.done.wait [#allocation3], 128  }
 0x4c4   :  { %4207 = vsyncadd [#allocation3], 4294967168 }
 0x4c5   :  { %3768 = vsyncpa [#allocation3], 1 }

</bundles_post_ra>
